<compile_context>
chip_gen: v7x
topology: tpu7x:2x2x1
jax: 0.10.0
libtpu: 0.0.40
codegen_flags: <defaults>
</compile_context>

<pallas_src>
import math

import jax
import jax.numpy as jnp
import numpy as np
from jax.experimental import pallas as pl
from jax.experimental.pallas import tpu as pltpu


# ----------------------------- Pallas kernel -------------------------------


def _make_fused_kernel(T, Bp, H, num_layers):
    """Build the fused (num_layers x LSTM) + fc kernel for static T, Bp, H."""

    def kernel(x_ref, *rest):
        # rest = [w_ih_0, w_hh_0, b_0, ..., w_ih_{L-1}, w_hh_{L-1}, b_{L-1},
        #         fc_w, fc_b, out_ref, seq_scratch, gates_scratch]
        layer_refs = rest[: 3 * num_layers]
        fcw_ref = rest[3 * num_layers]               # (H, O)
        fcb_ref = rest[3 * num_layers + 1]           # (1, O)
        out_ref = rest[3 * num_layers + 2]           # (Bp, O)
        seq_scr = rest[3 * num_layers + 3]           # (T*Bp, H)  inter-layer seq
        gates_scr = rest[3 * num_layers + 4]         # (T*Bp, 4H) per-layer gate slab

        h = None
        for layer in range(num_layers):              # static: unrolled at trace
            w_ih_ref = layer_refs[3 * layer]         # (Din, 4H)  gate order (i,f,o,g)
            w_hh_ref = layer_refs[3 * layer + 1]     # (H,   4H)
            bias_ref = layer_refs[3 * layer + 2]     # (1,   4H)
            src_ref = x_ref if layer == 0 else seq_scr

            # Whole-sequence input projection: one (T*Bp, Din) @ (Din, 4H) MXU
            # matmul; bias broadcast hoisted out of the time loop; result parked
            # in VMEM scratch so it is not held live in vregs across the loop.
            gates_scr[...] = (
                jnp.dot(src_ref[...], w_ih_ref[...],
                        preferred_element_type=jnp.float32)
                + bias_ref[...]
            )

            w_hh = w_hh_ref[...]                     # load once per layer
            last_layer = layer == num_layers - 1
            c = None

            for t in range(T):                       # static T -> fully unrolled
                gx = gates_scr[t * Bp:(t + 1) * Bp, :]          # (Bp, 4H), aligned
                if t == 0:
                    g = gx                           # h0 == 0: skip recurrent matmul
                else:
                    g = gx + jnp.dot(h, w_hh,
                                     preferred_element_type=jnp.float32)
                # Gate order is (i, f, o, g): one sigmoid slab + one tanh slab
                # => exactly 4H transcendentals per step on the EUP.
                sig = jax.nn.sigmoid(g[:, : 3 * H])
                i_g = sig[:, 0 * H:1 * H]
                f_g = sig[:, 1 * H:2 * H]
                o_g = sig[:, 2 * H:3 * H]
                g_g = jnp.tanh(g[:, 3 * H:4 * H])
                if t == 0:
                    c = i_g * g_g                    # c0 == 0: skip f*c term
                else:
                    c = f_g * c + i_g * g_g
                h = o_g * jnp.tanh(c)
                if not last_layer:
                    # sublane-aligned (Bp=8) store of this step's hidden state
                    seq_scr[t * Bp:(t + 1) * Bp, :] = h

        # Final fc on the last layer's final hidden state (== out[:, -1, :]).
        out_ref[...] = (
            jnp.dot(h, fcw_ref[...], preferred_element_type=jnp.float32)
            + fcb_ref[...]
        )

    return kernel


# ------------------------------ JAX wrappers -------------------------------


def _reorder_gate_rows(w):
    """Permute the leading 4H gate axis from PyTorch (i,f,g,o) to (i,f,o,g)."""
    H = w.shape[0] // 4
    return jnp.concatenate([w[:H], w[H:2 * H], w[3 * H:], w[2 * H:3 * H]], axis=0)


def prepare_params(layer_params, fc_w, fc_b):
    """One-time param prep (gate permutation + transposes + combined bias)."""
    prepped = []
    for (w_ih, w_hh, b_ih, b_hh) in layer_params:
        prepped.append((
            jnp.transpose(_reorder_gate_rows(w_ih)),           # (Din, 4H)
            jnp.transpose(_reorder_gate_rows(w_hh)),           # (H,   4H)
            _reorder_gate_rows(b_ih + b_hh)[None, :],          # (1,   4H)
        ))
    return tuple(prepped), jnp.transpose(fc_w), fc_b[None, :]


@jax.jit
def stock_price_lstm_forward(x, prepped_layers, fc_w_t, fc_b_row):
    """Fused Pallas forward for StockPriceLSTM.  x: (B, T, D) -> (B, output_dim)."""
    B, T, D = x.shape
    num_layers = len(prepped_layers)
    H = prepped_layers[0][1].shape[0]
    O = fc_w_t.shape[1]
    Bp = ((B + 7) // 8) * 8                # pad batch to fp32 sublane count

    # time-major, batch padded, flattened to (T*Bp, D); padded rows are zeros
    # and never mix with real rows (all ops are row-wise).
    x_tm = jnp.transpose(x, (1, 0, 2)).astype(jnp.float32)     # (T, B, D)
    x_tm = jnp.pad(x_tm, ((0, 0), (0, Bp - B), (0, 0)))        # (T, Bp, D)
    x_flat = x_tm.reshape(T * Bp, D)

    flat_weights = []
    for (w_ih_t, w_hh_t, bias) in prepped_layers:
        flat_weights += [w_ih_t, w_hh_t, bias]
    flat_weights += [fc_w_t, fc_b_row]

    out_padded = pl.pallas_call(
        _make_fused_kernel(T, Bp, H, num_layers),
        out_shape=jax.ShapeDtypeStruct((Bp, O), jnp.float32),
        in_specs=[pl.BlockSpec(memory_space=pltpu.MemorySpace.VMEM)]
        * (1 + len(flat_weights)),
        out_specs=pl.BlockSpec(memory_space=pltpu.MemorySpace.VMEM),
        scratch_shapes=[
            pltpu.VMEM((T * Bp, H), jnp.float32),       # inter-layer sequence
            pltpu.VMEM((T * Bp, 4 * H), jnp.float32),   # per-layer gate slab
        ],
    )(x_flat, *flat_weights)
    return out_padded[:B]


# -------------------------- reference (pure JAX) ----------------------------


def stock_price_lstm_ref(x, layer_params, fc_w, fc_b):
    B, T, _ = x.shape
    h_seq = x.astype(jnp.float32)
    for (w_ih, w_hh, b_ih, b_hh) in layer_params:
        H = w_hh.shape[1]
        h = jnp.zeros((B, H), jnp.float32)
        c = jnp.zeros((B, H), jnp.float32)
        outs = []
        for t in range(T):
            gates = h_seq[:, t, :] @ w_ih.T + b_ih + h @ w_hh.T + b_hh
            i_g, f_g, g_g, o_g = jnp.split(gates, 4, axis=-1)
            i_g = jax.nn.sigmoid(i_g)
            f_g = jax.nn.sigmoid(f_g)
            g_g = jnp.tanh(g_g)
            o_g = jax.nn.sigmoid(o_g)
            c = f_g * c + i_g * g_g
            h = o_g * jnp.tanh(c)
            outs.append(h)
        h_seq = jnp.stack(outs, axis=1)
    return h_seq[:, -1, :] @ fc_w.T + fc_b


# ------------------------------ param init ---------------------------------


def init_params(key, input_dim, hidden_dim, output_dim, num_layers):
    """Deterministic PyTorch-style init: U(-1/sqrt(H), 1/sqrt(H))."""
    bound = 1.0 / math.sqrt(hidden_dim)
    keys = jax.random.split(key, num_layers * 4 + 2)
    layer_params = []
    for layer in range(num_layers):
        din = input_dim if layer == 0 else hidden_dim
        k0, k1, k2, k3 = keys[layer * 4: layer * 4 + 4]
        w_ih = jax.random.uniform(k0, (4 * hidden_dim, din), jnp.float32, -bound, bound)
        w_hh = jax.random.uniform(k1, (4 * hidden_dim, hidden_dim), jnp.float32, -bound, bound)
        b_ih = jax.random.uniform(k2, (4 * hidden_dim,), jnp.float32, -bound, bound)
        b_hh = jax.random.uniform(k3, (4 * hidden_dim,), jnp.float32, -bound, bound)
        layer_params.append((w_ih, w_hh, b_ih, b_hh))
    fc_w = jax.random.uniform(keys[-2], (output_dim, hidden_dim), jnp.float32, -bound, bound)
    fc_b = jax.random.uniform(keys[-1], (output_dim,), jnp.float32, -bound, bound)
    return layer_params, fc_w, fc_b


# ---------------------------------- main ------------------------------------


if __name__ == "__main__":
    # Small shapes consistent with the module's forward: x is (batch, seq, input_dim).
    batch, seq_len, input_dim = 2, 8, 8
    hidden_dim, output_dim, num_layers = 32, 1, 4

    key = jax.random.PRNGKey(0)
    kx, kp = jax.random.split(key)
    x = jax.random.normal(kx, (batch, seq_len, input_dim), dtype=jnp.float32)
    layer_params, fc_w, fc_b = init_params(kp, input_dim, hidden_dim, output_dim, num_layers)

    # One-time param prep (gate permutation, transposes, combined bias).
    prepped_layers, fc_w_t, fc_b_row = prepare_params(layer_params, fc_w, fc_b)

    out = stock_price_lstm_forward(x, prepped_layers, fc_w_t, fc_b_row)
    out = jax.block_until_ready(out)

    ref = stock_price_lstm_ref(x, layer_params, fc_w, fc_b)
    np.testing.assert_allclose(np.asarray(out), np.asarray(ref), rtol=1e-5, atol=1e-5)
    assert out.shape == (batch, output_dim)

    print("KERNEL_OK")
</pallas_src>

<mosaic_0001>
module attributes {stable_mosaic.version = 11 : i64} {
  func.func @kernel(%arg0: memref<64x8xf32, #tpu.memory_space<vmem>>, %arg1: memref<8x128xf32, #tpu.memory_space<vmem>>, %arg2: memref<32x128xf32, #tpu.memory_space<vmem>>, %arg3: memref<1x128xf32, #tpu.memory_space<vmem>>, %arg4: memref<32x128xf32, #tpu.memory_space<vmem>>, %arg5: memref<32x128xf32, #tpu.memory_space<vmem>>, %arg6: memref<1x128xf32, #tpu.memory_space<vmem>>, %arg7: memref<32x128xf32, #tpu.memory_space<vmem>>, %arg8: memref<32x128xf32, #tpu.memory_space<vmem>>, %arg9: memref<1x128xf32, #tpu.memory_space<vmem>>, %arg10: memref<32x128xf32, #tpu.memory_space<vmem>>, %arg11: memref<32x128xf32, #tpu.memory_space<vmem>>, %arg12: memref<1x128xf32, #tpu.memory_space<vmem>>, %arg13: memref<32x1xf32, #tpu.memory_space<vmem>>, %arg14: memref<1x1xf32, #tpu.memory_space<vmem>>, %arg15: memref<8x1xf32, #tpu.memory_space<vmem>>, %arg16: memref<64x32xf32, #tpu.memory_space<vmem>>, %arg17: memref<64x128xf32, #tpu.memory_space<vmem>>) attributes {dimension_semantics = [], scalar_prefetch = 0 : i64, scratch_operands = 2 : i64, tpu.core_type = #tpu.core_type<tc>} {
    %c0 = arith.constant 0 : index
    %c0_0 = arith.constant 0 : index
    %0 = vector.load %arg0[%c0, %c0_0] : memref<64x8xf32, #tpu.memory_space<vmem>>, vector<64x8xf32>
    %c0_1 = arith.constant 0 : index
    %c0_2 = arith.constant 0 : index
    %1 = vector.load %arg1[%c0_1, %c0_2] : memref<8x128xf32, #tpu.memory_space<vmem>>, vector<8x128xf32>
    %cst = arith.constant dense<0.000000e+00> : vector<64x128xf32>
    %2 = tpu.matmul %0, %1, %cst {dimension_numbers = #tpu.dot_dimension_numbers<[1], [0], [0], [1], [0, 0, 1, 1], [], []>} : vector<64x8xf32>, vector<8x128xf32>, vector<64x128xf32> -> vector<64x128xf32>
    %c0_3 = arith.constant 0 : index
    %c0_4 = arith.constant 0 : index
    %3 = vector.load %arg3[%c0_3, %c0_4] : memref<1x128xf32, #tpu.memory_space<vmem>>, vector<1x128xf32>
    %4 = vector.broadcast %3 : vector<1x128xf32> to vector<64x128xf32>
    %5 = arith.addf %2, %4 : vector<64x128xf32>
    %c0_5 = arith.constant 0 : index
    %c0_6 = arith.constant 0 : index
    %6 = vector.load %arg17[%c0_5, %c0_6] : memref<64x128xf32, #tpu.memory_space<vmem>>, vector<64x128xf32>
    tpu.vector_store %arg17[%c0_5, %c0_6], %5 {strides = array<i32>} : memref<64x128xf32, #tpu.memory_space<vmem>>, vector<64x128xf32>,
    %c0_7 = arith.constant 0 : index
    %c0_8 = arith.constant 0 : index
    %7 = vector.load %arg2[%c0_7, %c0_8] : memref<32x128xf32, #tpu.memory_space<vmem>>, vector<32x128xf32>
    %c0_9 = arith.constant 0 : index
    %c0_10 = arith.constant 0 : index
    %8 = vector.load %arg17[%c0_9, %c0_10] : memref<64x128xf32, #tpu.memory_space<vmem>>, vector<8x128xf32>
    %9 = vector.extract_strided_slice %8 {offsets = [0, 0], sizes = [8, 96], strides = [1, 1]} : vector<8x128xf32> to vector<8x96xf32>
    %10 = arith.negf %9 : vector<8x96xf32>
    %11 = math.exp %10 : vector<8x96xf32>
    %cst_11 = arith.constant 1.000000e+00 : f32
    %12 = vector.broadcast %cst_11 : f32 to vector<8x96xf32>
    %13 = arith.addf %12, %11 : vector<8x96xf32>
    %14 = arith.divf %12, %13 : vector<8x96xf32>
    %15 = vector.extract_strided_slice %14 {offsets = [0, 0], sizes = [8, 32], strides = [1, 1]} : vector<8x96xf32> to vector<8x32xf32>
    %16 = vector.extract_strided_slice %14 {offsets = [0, 64], sizes = [8, 32], strides = [1, 1]} : vector<8x96xf32> to vector<8x32xf32>
    %17 = vector.extract_strided_slice %8 {offsets = [0, 96], sizes = [8, 32], strides = [1, 1]} : vector<8x128xf32> to vector<8x32xf32>
    %18 = math.tanh %17 : vector<8x32xf32>
    %19 = arith.mulf %15, %18 : vector<8x32xf32>
    %20 = math.tanh %19 : vector<8x32xf32>
    %21 = arith.mulf %16, %20 : vector<8x32xf32>
    %c0_12 = arith.constant 0 : index
    %c0_13 = arith.constant 0 : index
    %22 = vector.load %arg16[%c0_12, %c0_13] : memref<64x32xf32, #tpu.memory_space<vmem>>, vector<8x32xf32>
    tpu.vector_store %arg16[%c0_12, %c0_13], %21 {strides = array<i32>} : memref<64x32xf32, #tpu.memory_space<vmem>>, vector<8x32xf32>,
    %c8 = arith.constant 8 : index
    %c0_14 = arith.constant 0 : index
    %23 = vector.load %arg17[%c8, %c0_14] : memref<64x128xf32, #tpu.memory_space<vmem>>, vector<8x128xf32>
    %cst_15 = arith.constant dense<0.000000e+00> : vector<8x128xf32>
    %24 = tpu.matmul %21, %7, %cst_15 {dimension_numbers = #tpu.dot_dimension_numbers<[1], [0], [0], [1], [0, 0, 1, 1], [], []>} : vector<8x32xf32>, vector<32x128xf32>, vector<8x128xf32> -> vector<8x128xf32>
    %25 = arith.addf %23, %24 : vector<8x128xf32>
    %26 = vector.extract_strided_slice %25 {offsets = [0, 0], sizes = [8, 96], strides = [1, 1]} : vector<8x128xf32> to vector<8x96xf32>
    %27 = arith.negf %26 : vector<8x96xf32>
    %28 = math.exp %27 : vector<8x96xf32>
    %cst_16 = arith.constant 1.000000e+00 : f32
    %29 = vector.broadcast %cst_16 : f32 to vector<8x96xf32>
    %30 = arith.addf %29, %28 : vector<8x96xf32>
    %31 = arith.divf %29, %30 : vector<8x96xf32>
    %32 = vector.extract_strided_slice %31 {offsets = [0, 0], sizes = [8, 32], strides = [1, 1]} : vector<8x96xf32> to vector<8x32xf32>
    %33 = vector.extract_strided_slice %31 {offsets = [0, 32], sizes = [8, 32], strides = [1, 1]} : vector<8x96xf32> to vector<8x32xf32>
    %34 = vector.extract_strided_slice %31 {offsets = [0, 64], sizes = [8, 32], strides = [1, 1]} : vector<8x96xf32> to vector<8x32xf32>
    %35 = vector.extract_strided_slice %25 {offsets = [0, 96], sizes = [8, 32], strides = [1, 1]} : vector<8x128xf32> to vector<8x32xf32>
    %36 = math.tanh %35 : vector<8x32xf32>
    %37 = arith.mulf %33, %19 : vector<8x32xf32>
    %38 = arith.mulf %32, %36 : vector<8x32xf32>
    %39 = arith.addf %37, %38 : vector<8x32xf32>
    %40 = math.tanh %39 : vector<8x32xf32>
    %41 = arith.mulf %34, %40 : vector<8x32xf32>
    %c8_17 = arith.constant 8 : index
    %c0_18 = arith.constant 0 : index
    %42 = vector.load %arg16[%c8_17, %c0_18] : memref<64x32xf32, #tpu.memory_space<vmem>>, vector<8x32xf32>
    tpu.vector_store %arg16[%c8_17, %c0_18], %41 {strides = array<i32>} : memref<64x32xf32, #tpu.memory_space<vmem>>, vector<8x32xf32>,
    %c16 = arith.constant 16 : index
    %c0_19 = arith.constant 0 : index
    %43 = vector.load %arg17[%c16, %c0_19] : memref<64x128xf32, #tpu.memory_space<vmem>>, vector<8x128xf32>
    %cst_20 = arith.constant dense<0.000000e+00> : vector<8x128xf32>
    %44 = tpu.matmul %41, %7, %cst_20 {dimension_numbers = #tpu.dot_dimension_numbers<[1], [0], [0], [1], [0, 0, 1, 1], [], []>} : vector<8x32xf32>, vector<32x128xf32>, vector<8x128xf32> -> vector<8x128xf32>
    %45 = arith.addf %43, %44 : vector<8x128xf32>
    %46 = vector.extract_strided_slice %45 {offsets = [0, 0], sizes = [8, 96], strides = [1, 1]} : vector<8x128xf32> to vector<8x96xf32>
    %47 = arith.negf %46 : vector<8x96xf32>
    %48 = math.exp %47 : vector<8x96xf32>
    %cst_21 = arith.constant 1.000000e+00 : f32
    %49 = vector.broadcast %cst_21 : f32 to vector<8x96xf32>
    %50 = arith.addf %49, %48 : vector<8x96xf32>
    %51 = arith.divf %49, %50 : vector<8x96xf32>
    %52 = vector.extract_strided_slice %51 {offsets = [0, 0], sizes = [8, 32], strides = [1, 1]} : vector<8x96xf32> to vector<8x32xf32>
    %53 = vector.extract_strided_slice %51 {offsets = [0, 32], sizes = [8, 32], strides = [1, 1]} : vector<8x96xf32> to vector<8x32xf32>
    %54 = vector.extract_strided_slice %51 {offsets = [0, 64], sizes = [8, 32], strides = [1, 1]} : vector<8x96xf32> to vector<8x32xf32>
    %55 = vector.extract_strided_slice %45 {offsets = [0, 96], sizes = [8, 32], strides = [1, 1]} : vector<8x128xf32> to vector<8x32xf32>
    %56 = math.tanh %55 : vector<8x32xf32>
    %57 = arith.mulf %53, %39 : vector<8x32xf32>
    %58 = arith.mulf %52, %56 : vector<8x32xf32>
    %59 = arith.addf %57, %58 : vector<8x32xf32>
    %60 = math.tanh %59 : vector<8x32xf32>
    %61 = arith.mulf %54, %60 : vector<8x32xf32>
    %c16_22 = arith.constant 16 : index
    %c0_23 = arith.constant 0 : index
    %62 = vector.load %arg16[%c16_22, %c0_23] : memref<64x32xf32, #tpu.memory_space<vmem>>, vector<8x32xf32>
    tpu.vector_store %arg16[%c16_22, %c0_23], %61 {strides = array<i32>} : memref<64x32xf32, #tpu.memory_space<vmem>>, vector<8x32xf32>,
    %c24 = arith.constant 24 : index
    %c0_24 = arith.constant 0 : index
    %63 = vector.load %arg17[%c24, %c0_24] : memref<64x128xf32, #tpu.memory_space<vmem>>, vector<8x128xf32>
    %cst_25 = arith.constant dense<0.000000e+00> : vector<8x128xf32>
    %64 = tpu.matmul %61, %7, %cst_25 {dimension_numbers = #tpu.dot_dimension_numbers<[1], [0], [0], [1], [0, 0, 1, 1], [], []>} : vector<8x32xf32>, vector<32x128xf32>, vector<8x128xf32> -> vector<8x128xf32>
    %65 = arith.addf %63, %64 : vector<8x128xf32>
    %66 = vector.extract_strided_slice %65 {offsets = [0, 0], sizes = [8, 96], strides = [1, 1]} : vector<8x128xf32> to vector<8x96xf32>
    %67 = arith.negf %66 : vector<8x96xf32>
    %68 = math.exp %67 : vector<8x96xf32>
    %cst_26 = arith.constant 1.000000e+00 : f32
    %69 = vector.broadcast %cst_26 : f32 to vector<8x96xf32>
    %70 = arith.addf %69, %68 : vector<8x96xf32>
    %71 = arith.divf %69, %70 : vector<8x96xf32>
    %72 = vector.extract_strided_slice %71 {offsets = [0, 0], sizes = [8, 32], strides = [1, 1]} : vector<8x96xf32> to vector<8x32xf32>
    %73 = vector.extract_strided_slice %71 {offsets = [0, 32], sizes = [8, 32], strides = [1, 1]} : vector<8x96xf32> to vector<8x32xf32>
    %74 = vector.extract_strided_slice %71 {offsets = [0, 64], sizes = [8, 32], strides = [1, 1]} : vector<8x96xf32> to vector<8x32xf32>
    %75 = vector.extract_strided_slice %65 {offsets = [0, 96], sizes = [8, 32], strides = [1, 1]} : vector<8x128xf32> to vector<8x32xf32>
    %76 = math.tanh %75 : vector<8x32xf32>
    %77 = arith.mulf %73, %59 : vector<8x32xf32>
    %78 = arith.mulf %72, %76 : vector<8x32xf32>
    %79 = arith.addf %77, %78 : vector<8x32xf32>
    %80 = math.tanh %79 : vector<8x32xf32>
    %81 = arith.mulf %74, %80 : vector<8x32xf32>
    %c24_27 = arith.constant 24 : index
    %c0_28 = arith.constant 0 : index
    %82 = vector.load %arg16[%c24_27, %c0_28] : memref<64x32xf32, #tpu.memory_space<vmem>>, vector<8x32xf32>
    tpu.vector_store %arg16[%c24_27, %c0_28], %81 {strides = array<i32>} : memref<64x32xf32, #tpu.memory_space<vmem>>, vector<8x32xf32>,
    %c32 = arith.constant 32 : index
    %c0_29 = arith.constant 0 : index
    %83 = vector.load %arg17[%c32, %c0_29] : memref<64x128xf32, #tpu.memory_space<vmem>>, vector<8x128xf32>
    %cst_30 = arith.constant dense<0.000000e+00> : vector<8x128xf32>
    %84 = tpu.matmul %81, %7, %cst_30 {dimension_numbers = #tpu.dot_dimension_numbers<[1], [0], [0], [1], [0, 0, 1, 1], [], []>} : vector<8x32xf32>, vector<32x128xf32>, vector<8x128xf32> -> vector<8x128xf32>
    %85 = arith.addf %83, %84 : vector<8x128xf32>
    %86 = vector.extract_strided_slice %85 {offsets = [0, 0], sizes = [8, 96], strides = [1, 1]} : vector<8x128xf32> to vector<8x96xf32>
    %87 = arith.negf %86 : vector<8x96xf32>
    %88 = math.exp %87 : vector<8x96xf32>
    %cst_31 = arith.constant 1.000000e+00 : f32
    %89 = vector.broadcast %cst_31 : f32 to vector<8x96xf32>
    %90 = arith.addf %89, %88 : vector<8x96xf32>
    %91 = arith.divf %89, %90 : vector<8x96xf32>
    %92 = vector.extract_strided_slice %91 {offsets = [0, 0], sizes = [8, 32], strides = [1, 1]} : vector<8x96xf32> to vector<8x32xf32>
    %93 = vector.extract_strided_slice %91 {offsets = [0, 32], sizes = [8, 32], strides = [1, 1]} : vector<8x96xf32> to vector<8x32xf32>
    %94 = vector.extract_strided_slice %91 {offsets = [0, 64], sizes = [8, 32], strides = [1, 1]} : vector<8x96xf32> to vector<8x32xf32>
    %95 = vector.extract_strided_slice %85 {offsets = [0, 96], sizes = [8, 32], strides = [1, 1]} : vector<8x128xf32> to vector<8x32xf32>
    %96 = math.tanh %95 : vector<8x32xf32>
    %97 = arith.mulf %93, %79 : vector<8x32xf32>
    %98 = arith.mulf %92, %96 : vector<8x32xf32>
    %99 = arith.addf %97, %98 : vector<8x32xf32>
    %100 = math.tanh %99 : vector<8x32xf32>
    %101 = arith.mulf %94, %100 : vector<8x32xf32>
    %c32_32 = arith.constant 32 : index
    %c0_33 = arith.constant 0 : index
    %102 = vector.load %arg16[%c32_32, %c0_33] : memref<64x32xf32, #tpu.memory_space<vmem>>, vector<8x32xf32>
    tpu.vector_store %arg16[%c32_32, %c0_33], %101 {strides = array<i32>} : memref<64x32xf32, #tpu.memory_space<vmem>>, vector<8x32xf32>,
    %c40 = arith.constant 40 : index
    %c0_34 = arith.constant 0 : index
    %103 = vector.load %arg17[%c40, %c0_34] : memref<64x128xf32, #tpu.memory_space<vmem>>, vector<8x128xf32>
    %cst_35 = arith.constant dense<0.000000e+00> : vector<8x128xf32>
    %104 = tpu.matmul %101, %7, %cst_35 {dimension_numbers = #tpu.dot_dimension_numbers<[1], [0], [0], [1], [0, 0, 1, 1], [], []>} : vector<8x32xf32>, vector<32x128xf32>, vector<8x128xf32> -> vector<8x128xf32>
    %105 = arith.addf %103, %104 : vector<8x128xf32>
    %106 = vector.extract_strided_slice %105 {offsets = [0, 0], sizes = [8, 96], strides = [1, 1]} : vector<8x128xf32> to vector<8x96xf32>
    %107 = arith.negf %106 : vector<8x96xf32>
    %108 = math.exp %107 : vector<8x96xf32>
    %cst_36 = arith.constant 1.000000e+00 : f32
    %109 = vector.broadcast %cst_36 : f32 to vector<8x96xf32>
    %110 = arith.addf %109, %108 : vector<8x96xf32>
    %111 = arith.divf %109, %110 : vector<8x96xf32>
    %112 = vector.extract_strided_slice %111 {offsets = [0, 0], sizes = [8, 32], strides = [1, 1]} : vector<8x96xf32> to vector<8x32xf32>
    %113 = vector.extract_strided_slice %111 {offsets = [0, 32], sizes = [8, 32], strides = [1, 1]} : vector<8x96xf32> to vector<8x32xf32>
    %114 = vector.extract_strided_slice %111 {offsets = [0, 64], sizes = [8, 32], strides = [1, 1]} : vector<8x96xf32> to vector<8x32xf32>
    %115 = vector.extract_strided_slice %105 {offsets = [0, 96], sizes = [8, 32], strides = [1, 1]} : vector<8x128xf32> to vector<8x32xf32>
    %116 = math.tanh %115 : vector<8x32xf32>
    %117 = arith.mulf %113, %99 : vector<8x32xf32>
    %118 = arith.mulf %112, %116 : vector<8x32xf32>
    %119 = arith.addf %117, %118 : vector<8x32xf32>
    %120 = math.tanh %119 : vector<8x32xf32>
    %121 = arith.mulf %114, %120 : vector<8x32xf32>
    %c40_37 = arith.constant 40 : index
    %c0_38 = arith.constant 0 : index
    %122 = vector.load %arg16[%c40_37, %c0_38] : memref<64x32xf32, #tpu.memory_space<vmem>>, vector<8x32xf32>
    tpu.vector_store %arg16[%c40_37, %c0_38], %121 {strides = array<i32>} : memref<64x32xf32, #tpu.memory_space<vmem>>, vector<8x32xf32>,
    %c48 = arith.constant 48 : index
    %c0_39 = arith.constant 0 : index
    %123 = vector.load %arg17[%c48, %c0_39] : memref<64x128xf32, #tpu.memory_space<vmem>>, vector<8x128xf32>
    %cst_40 = arith.constant dense<0.000000e+00> : vector<8x128xf32>
    %124 = tpu.matmul %121, %7, %cst_40 {dimension_numbers = #tpu.dot_dimension_numbers<[1], [0], [0], [1], [0, 0, 1, 1], [], []>} : vector<8x32xf32>, vector<32x128xf32>, vector<8x128xf32> -> vector<8x128xf32>
    %125 = arith.addf %123, %124 : vector<8x128xf32>
    %126 = vector.extract_strided_slice %125 {offsets = [0, 0], sizes = [8, 96], strides = [1, 1]} : vector<8x128xf32> to vector<8x96xf32>
    %127 = arith.negf %126 : vector<8x96xf32>
    %128 = math.exp %127 : vector<8x96xf32>
    %cst_41 = arith.constant 1.000000e+00 : f32
    %129 = vector.broadcast %cst_41 : f32 to vector<8x96xf32>
    %130 = arith.addf %129, %128 : vector<8x96xf32>
    %131 = arith.divf %129, %130 : vector<8x96xf32>
    %132 = vector.extract_strided_slice %131 {offsets = [0, 0], sizes = [8, 32], strides = [1, 1]} : vector<8x96xf32> to vector<8x32xf32>
    %133 = vector.extract_strided_slice %131 {offsets = [0, 32], sizes = [8, 32], strides = [1, 1]} : vector<8x96xf32> to vector<8x32xf32>
    %134 = vector.extract_strided_slice %131 {offsets = [0, 64], sizes = [8, 32], strides = [1, 1]} : vector<8x96xf32> to vector<8x32xf32>
    %135 = vector.extract_strided_slice %125 {offsets = [0, 96], sizes = [8, 32], strides = [1, 1]} : vector<8x128xf32> to vector<8x32xf32>
    %136 = math.tanh %135 : vector<8x32xf32>
    %137 = arith.mulf %133, %119 : vector<8x32xf32>
    %138 = arith.mulf %132, %136 : vector<8x32xf32>
    %139 = arith.addf %137, %138 : vector<8x32xf32>
    %140 = math.tanh %139 : vector<8x32xf32>
    %141 = arith.mulf %134, %140 : vector<8x32xf32>
    %c48_42 = arith.constant 48 : index
    %c0_43 = arith.constant 0 : index
    %142 = vector.load %arg16[%c48_42, %c0_43] : memref<64x32xf32, #tpu.memory_space<vmem>>, vector<8x32xf32>
    tpu.vector_store %arg16[%c48_42, %c0_43], %141 {strides = array<i32>} : memref<64x32xf32, #tpu.memory_space<vmem>>, vector<8x32xf32>,
    %c56 = arith.constant 56 : index
    %c0_44 = arith.constant 0 : index
    %143 = vector.load %arg17[%c56, %c0_44] : memref<64x128xf32, #tpu.memory_space<vmem>>, vector<8x128xf32>
    %cst_45 = arith.constant dense<0.000000e+00> : vector<8x128xf32>
    %144 = tpu.matmul %141, %7, %cst_45 {dimension_numbers = #tpu.dot_dimension_numbers<[1], [0], [0], [1], [0, 0, 1, 1], [], []>} : vector<8x32xf32>, vector<32x128xf32>, vector<8x128xf32> -> vector<8x128xf32>
    %145 = arith.addf %143, %144 : vector<8x128xf32>
    %146 = vector.extract_strided_slice %145 {offsets = [0, 0], sizes = [8, 96], strides = [1, 1]} : vector<8x128xf32> to vector<8x96xf32>
    %147 = arith.negf %146 : vector<8x96xf32>
    %148 = math.exp %147 : vector<8x96xf32>
    %cst_46 = arith.constant 1.000000e+00 : f32
    %149 = vector.broadcast %cst_46 : f32 to vector<8x96xf32>
    %150 = arith.addf %149, %148 : vector<8x96xf32>
    %151 = arith.divf %149, %150 : vector<8x96xf32>
    %152 = vector.extract_strided_slice %151 {offsets = [0, 0], sizes = [8, 32], strides = [1, 1]} : vector<8x96xf32> to vector<8x32xf32>
    %153 = vector.extract_strided_slice %151 {offsets = [0, 32], sizes = [8, 32], strides = [1, 1]} : vector<8x96xf32> to vector<8x32xf32>
    %154 = vector.extract_strided_slice %151 {offsets = [0, 64], sizes = [8, 32], strides = [1, 1]} : vector<8x96xf32> to vector<8x32xf32>
    %155 = vector.extract_strided_slice %145 {offsets = [0, 96], sizes = [8, 32], strides = [1, 1]} : vector<8x128xf32> to vector<8x32xf32>
    %156 = math.tanh %155 : vector<8x32xf32>
    %157 = arith.mulf %153, %139 : vector<8x32xf32>
    %158 = arith.mulf %152, %156 : vector<8x32xf32>
    %159 = arith.addf %157, %158 : vector<8x32xf32>
    %160 = math.tanh %159 : vector<8x32xf32>
    %161 = arith.mulf %154, %160 : vector<8x32xf32>
    %c56_47 = arith.constant 56 : index
    %c0_48 = arith.constant 0 : index
    %162 = vector.load %arg16[%c56_47, %c0_48] : memref<64x32xf32, #tpu.memory_space<vmem>>, vector<8x32xf32>
    tpu.vector_store %arg16[%c56_47, %c0_48], %161 {strides = array<i32>} : memref<64x32xf32, #tpu.memory_space<vmem>>, vector<8x32xf32>,
    %c0_49 = arith.constant 0 : index
    %c0_50 = arith.constant 0 : index
    %163 = vector.load %arg16[%c0_49, %c0_50] : memref<64x32xf32, #tpu.memory_space<vmem>>, vector<64x32xf32>
    %c0_51 = arith.constant 0 : index
    %c0_52 = arith.constant 0 : index
    %164 = vector.load %arg4[%c0_51, %c0_52] : memref<32x128xf32, #tpu.memory_space<vmem>>, vector<32x128xf32>
    %cst_53 = arith.constant dense<0.000000e+00> : vector<64x128xf32>
    %165 = tpu.matmul %163, %164, %cst_53 {dimension_numbers = #tpu.dot_dimension_numbers<[1], [0], [0], [1], [0, 0, 1, 1], [], []>} : vector<64x32xf32>, vector<32x128xf32>, vector<64x128xf32> -> vector<64x128xf32>
    %c0_54 = arith.constant 0 : index
    %c0_55 = arith.constant 0 : index
    %166 = vector.load %arg6[%c0_54, %c0_55] : memref<1x128xf32, #tpu.memory_space<vmem>>, vector<1x128xf32>
    %167 = vector.broadcast %166 : vector<1x128xf32> to vector<64x128xf32>
    %168 = arith.addf %165, %167 : vector<64x128xf32>
    %c0_56 = arith.constant 0 : index
    %c0_57 = arith.constant 0 : index
    %169 = vector.load %arg17[%c0_56, %c0_57] : memref<64x128xf32, #tpu.memory_space<vmem>>, vector<64x128xf32>
    tpu.vector_store %arg17[%c0_56, %c0_57], %168 {strides = array<i32>} : memref<64x128xf32, #tpu.memory_space<vmem>>, vector<64x128xf32>,
    %c0_58 = arith.constant 0 : index
    %c0_59 = arith.constant 0 : index
    %170 = vector.load %arg5[%c0_58, %c0_59] : memref<32x128xf32, #tpu.memory_space<vmem>>, vector<32x128xf32>
    %c0_60 = arith.constant 0 : index
    %c0_61 = arith.constant 0 : index
    %171 = vector.load %arg17[%c0_60, %c0_61] : memref<64x128xf32, #tpu.memory_space<vmem>>, vector<8x128xf32>
    %172 = vector.extract_strided_slice %171 {offsets = [0, 0], sizes = [8, 96], strides = [1, 1]} : vector<8x128xf32> to vector<8x96xf32>
    %173 = arith.negf %172 : vector<8x96xf32>
    %174 = math.exp %173 : vector<8x96xf32>
    %cst_62 = arith.constant 1.000000e+00 : f32
    %175 = vector.broadcast %cst_62 : f32 to vector<8x96xf32>
    %176 = arith.addf %175, %174 : vector<8x96xf32>
    %177 = arith.divf %175, %176 : vector<8x96xf32>
    %178 = vector.extract_strided_slice %177 {offsets = [0, 0], sizes = [8, 32], strides = [1, 1]} : vector<8x96xf32> to vector<8x32xf32>
    %179 = vector.extract_strided_slice %177 {offsets = [0, 64], sizes = [8, 32], strides = [1, 1]} : vector<8x96xf32> to vector<8x32xf32>
    %180 = vector.extract_strided_slice %171 {offsets = [0, 96], sizes = [8, 32], strides = [1, 1]} : vector<8x128xf32> to vector<8x32xf32>
    %181 = math.tanh %180 : vector<8x32xf32>
    %182 = arith.mulf %178, %181 : vector<8x32xf32>
    %183 = math.tanh %182 : vector<8x32xf32>
    %184 = arith.mulf %179, %183 : vector<8x32xf32>
    %c0_63 = arith.constant 0 : index
    %c0_64 = arith.constant 0 : index
    %185 = vector.load %arg16[%c0_63, %c0_64] : memref<64x32xf32, #tpu.memory_space<vmem>>, vector<8x32xf32>
    tpu.vector_store %arg16[%c0_63, %c0_64], %184 {strides = array<i32>} : memref<64x32xf32, #tpu.memory_space<vmem>>, vector<8x32xf32>,
    %c8_65 = arith.constant 8 : index
    %c0_66 = arith.constant 0 : index
    %186 = vector.load %arg17[%c8_65, %c0_66] : memref<64x128xf32, #tpu.memory_space<vmem>>, vector<8x128xf32>
    %cst_67 = arith.constant dense<0.000000e+00> : vector<8x128xf32>
    %187 = tpu.matmul %184, %170, %cst_67 {dimension_numbers = #tpu.dot_dimension_numbers<[1], [0], [0], [1], [0, 0, 1, 1], [], []>} : vector<8x32xf32>, vector<32x128xf32>, vector<8x128xf32> -> vector<8x128xf32>
    %188 = arith.addf %186, %187 : vector<8x128xf32>
    %189 = vector.extract_strided_slice %188 {offsets = [0, 0], sizes = [8, 96], strides = [1, 1]} : vector<8x128xf32> to vector<8x96xf32>
    %190 = arith.negf %189 : vector<8x96xf32>
    %191 = math.exp %190 : vector<8x96xf32>
    %cst_68 = arith.constant 1.000000e+00 : f32
    %192 = vector.broadcast %cst_68 : f32 to vector<8x96xf32>
    %193 = arith.addf %192, %191 : vector<8x96xf32>
    %194 = arith.divf %192, %193 : vector<8x96xf32>
    %195 = vector.extract_strided_slice %194 {offsets = [0, 0], sizes = [8, 32], strides = [1, 1]} : vector<8x96xf32> to vector<8x32xf32>
    %196 = vector.extract_strided_slice %194 {offsets = [0, 32], sizes = [8, 32], strides = [1, 1]} : vector<8x96xf32> to vector<8x32xf32>
    %197 = vector.extract_strided_slice %194 {offsets = [0, 64], sizes = [8, 32], strides = [1, 1]} : vector<8x96xf32> to vector<8x32xf32>
    %198 = vector.extract_strided_slice %188 {offsets = [0, 96], sizes = [8, 32], strides = [1, 1]} : vector<8x128xf32> to vector<8x32xf32>
    %199 = math.tanh %198 : vector<8x32xf32>
    %200 = arith.mulf %196, %182 : vector<8x32xf32>
    %201 = arith.mulf %195, %199 : vector<8x32xf32>
    %202 = arith.addf %200, %201 : vector<8x32xf32>
    %203 = math.tanh %202 : vector<8x32xf32>
    %204 = arith.mulf %197, %203 : vector<8x32xf32>
    %c8_69 = arith.constant 8 : index
    %c0_70 = arith.constant 0 : index
    %205 = vector.load %arg16[%c8_69, %c0_70] : memref<64x32xf32, #tpu.memory_space<vmem>>, vector<8x32xf32>
    tpu.vector_store %arg16[%c8_69, %c0_70], %204 {strides = array<i32>} : memref<64x32xf32, #tpu.memory_space<vmem>>, vector<8x32xf32>,
    %c16_71 = arith.constant 16 : index
    %c0_72 = arith.constant 0 : index
    %206 = vector.load %arg17[%c16_71, %c0_72] : memref<64x128xf32, #tpu.memory_space<vmem>>, vector<8x128xf32>
    %cst_73 = arith.constant dense<0.000000e+00> : vector<8x128xf32>
    %207 = tpu.matmul %204, %170, %cst_73 {dimension_numbers = #tpu.dot_dimension_numbers<[1], [0], [0], [1], [0, 0, 1, 1], [], []>} : vector<8x32xf32>, vector<32x128xf32>, vector<8x128xf32> -> vector<8x128xf32>
    %208 = arith.addf %206, %207 : vector<8x128xf32>
    %209 = vector.extract_strided_slice %208 {offsets = [0, 0], sizes = [8, 96], strides = [1, 1]} : vector<8x128xf32> to vector<8x96xf32>
    %210 = arith.negf %209 : vector<8x96xf32>
    %211 = math.exp %210 : vector<8x96xf32>
    %cst_74 = arith.constant 1.000000e+00 : f32
    %212 = vector.broadcast %cst_74 : f32 to vector<8x96xf32>
    %213 = arith.addf %212, %211 : vector<8x96xf32>
    %214 = arith.divf %212, %213 : vector<8x96xf32>
    %215 = vector.extract_strided_slice %214 {offsets = [0, 0], sizes = [8, 32], strides = [1, 1]} : vector<8x96xf32> to vector<8x32xf32>
    %216 = vector.extract_strided_slice %214 {offsets = [0, 32], sizes = [8, 32], strides = [1, 1]} : vector<8x96xf32> to vector<8x32xf32>
    %217 = vector.extract_strided_slice %214 {offsets = [0, 64], sizes = [8, 32], strides = [1, 1]} : vector<8x96xf32> to vector<8x32xf32>
    %218 = vector.extract_strided_slice %208 {offsets = [0, 96], sizes = [8, 32], strides = [1, 1]} : vector<8x128xf32> to vector<8x32xf32>
    %219 = math.tanh %218 : vector<8x32xf32>
    %220 = arith.mulf %216, %202 : vector<8x32xf32>
    %221 = arith.mulf %215, %219 : vector<8x32xf32>
    %222 = arith.addf %220, %221 : vector<8x32xf32>
    %223 = math.tanh %222 : vector<8x32xf32>
    %224 = arith.mulf %217, %223 : vector<8x32xf32>
    %c16_75 = arith.constant 16 : index
    %c0_76 = arith.constant 0 : index
    %225 = vector.load %arg16[%c16_75, %c0_76] : memref<64x32xf32, #tpu.memory_space<vmem>>, vector<8x32xf32>
    tpu.vector_store %arg16[%c16_75, %c0_76], %224 {strides = array<i32>} : memref<64x32xf32, #tpu.memory_space<vmem>>, vector<8x32xf32>,
    %c24_77 = arith.constant 24 : index
    %c0_78 = arith.constant 0 : index
    %226 = vector.load %arg17[%c24_77, %c0_78] : memref<64x128xf32, #tpu.memory_space<vmem>>, vector<8x128xf32>
    %cst_79 = arith.constant dense<0.000000e+00> : vector<8x128xf32>
    %227 = tpu.matmul %224, %170, %cst_79 {dimension_numbers = #tpu.dot_dimension_numbers<[1], [0], [0], [1], [0, 0, 1, 1], [], []>} : vector<8x32xf32>, vector<32x128xf32>, vector<8x128xf32> -> vector<8x128xf32>
    %228 = arith.addf %226, %227 : vector<8x128xf32>
    %229 = vector.extract_strided_slice %228 {offsets = [0, 0], sizes = [8, 96], strides = [1, 1]} : vector<8x128xf32> to vector<8x96xf32>
    %230 = arith.negf %229 : vector<8x96xf32>
    %231 = math.exp %230 : vector<8x96xf32>
    %cst_80 = arith.constant 1.000000e+00 : f32
    %232 = vector.broadcast %cst_80 : f32 to vector<8x96xf32>
    %233 = arith.addf %232, %231 : vector<8x96xf32>
    %234 = arith.divf %232, %233 : vector<8x96xf32>
    %235 = vector.extract_strided_slice %234 {offsets = [0, 0], sizes = [8, 32], strides = [1, 1]} : vector<8x96xf32> to vector<8x32xf32>
    %236 = vector.extract_strided_slice %234 {offsets = [0, 32], sizes = [8, 32], strides = [1, 1]} : vector<8x96xf32> to vector<8x32xf32>
    %237 = vector.extract_strided_slice %234 {offsets = [0, 64], sizes = [8, 32], strides = [1, 1]} : vector<8x96xf32> to vector<8x32xf32>
    %238 = vector.extract_strided_slice %228 {offsets = [0, 96], sizes = [8, 32], strides = [1, 1]} : vector<8x128xf32> to vector<8x32xf32>
    %239 = math.tanh %238 : vector<8x32xf32>
    %240 = arith.mulf %236, %222 : vector<8x32xf32>
    %241 = arith.mulf %235, %239 : vector<8x32xf32>
    %242 = arith.addf %240, %241 : vector<8x32xf32>
    %243 = math.tanh %242 : vector<8x32xf32>
    %244 = arith.mulf %237, %243 : vector<8x32xf32>
    %c24_81 = arith.constant 24 : index
    %c0_82 = arith.constant 0 : index
    %245 = vector.load %arg16[%c24_81, %c0_82] : memref<64x32xf32, #tpu.memory_space<vmem>>, vector<8x32xf32>
    tpu.vector_store %arg16[%c24_81, %c0_82], %244 {strides = array<i32>} : memref<64x32xf32, #tpu.memory_space<vmem>>, vector<8x32xf32>,
    %c32_83 = arith.constant 32 : index
    %c0_84 = arith.constant 0 : index
    %246 = vector.load %arg17[%c32_83, %c0_84] : memref<64x128xf32, #tpu.memory_space<vmem>>, vector<8x128xf32>
    %cst_85 = arith.constant dense<0.000000e+00> : vector<8x128xf32>
    %247 = tpu.matmul %244, %170, %cst_85 {dimension_numbers = #tpu.dot_dimension_numbers<[1], [0], [0], [1], [0, 0, 1, 1], [], []>} : vector<8x32xf32>, vector<32x128xf32>, vector<8x128xf32> -> vector<8x128xf32>
    %248 = arith.addf %246, %247 : vector<8x128xf32>
    %249 = vector.extract_strided_slice %248 {offsets = [0, 0], sizes = [8, 96], strides = [1, 1]} : vector<8x128xf32> to vector<8x96xf32>
    %250 = arith.negf %249 : vector<8x96xf32>
    %251 = math.exp %250 : vector<8x96xf32>
    %cst_86 = arith.constant 1.000000e+00 : f32
    %252 = vector.broadcast %cst_86 : f32 to vector<8x96xf32>
    %253 = arith.addf %252, %251 : vector<8x96xf32>
    %254 = arith.divf %252, %253 : vector<8x96xf32>
    %255 = vector.extract_strided_slice %254 {offsets = [0, 0], sizes = [8, 32], strides = [1, 1]} : vector<8x96xf32> to vector<8x32xf32>
    %256 = vector.extract_strided_slice %254 {offsets = [0, 32], sizes = [8, 32], strides = [1, 1]} : vector<8x96xf32> to vector<8x32xf32>
    %257 = vector.extract_strided_slice %254 {offsets = [0, 64], sizes = [8, 32], strides = [1, 1]} : vector<8x96xf32> to vector<8x32xf32>
    %258 = vector.extract_strided_slice %248 {offsets = [0, 96], sizes = [8, 32], strides = [1, 1]} : vector<8x128xf32> to vector<8x32xf32>
    %259 = math.tanh %258 : vector<8x32xf32>
    %260 = arith.mulf %256, %242 : vector<8x32xf32>
    %261 = arith.mulf %255, %259 : vector<8x32xf32>
    %262 = arith.addf %260, %261 : vector<8x32xf32>
    %263 = math.tanh %262 : vector<8x32xf32>
    %264 = arith.mulf %257, %263 : vector<8x32xf32>
    %c32_87 = arith.constant 32 : index
    %c0_88 = arith.constant 0 : index
    %265 = vector.load %arg16[%c32_87, %c0_88] : memref<64x32xf32, #tpu.memory_space<vmem>>, vector<8x32xf32>
    tpu.vector_store %arg16[%c32_87, %c0_88], %264 {strides = array<i32>} : memref<64x32xf32, #tpu.memory_space<vmem>>, vector<8x32xf32>,
    %c40_89 = arith.constant 40 : index
    %c0_90 = arith.constant 0 : index
    %266 = vector.load %arg17[%c40_89, %c0_90] : memref<64x128xf32, #tpu.memory_space<vmem>>, vector<8x128xf32>
    %cst_91 = arith.constant dense<0.000000e+00> : vector<8x128xf32>
    %267 = tpu.matmul %264, %170, %cst_91 {dimension_numbers = #tpu.dot_dimension_numbers<[1], [0], [0], [1], [0, 0, 1, 1], [], []>} : vector<8x32xf32>, vector<32x128xf32>, vector<8x128xf32> -> vector<8x128xf32>
    %268 = arith.addf %266, %267 : vector<8x128xf32>
    %269 = vector.extract_strided_slice %268 {offsets = [0, 0], sizes = [8, 96], strides = [1, 1]} : vector<8x128xf32> to vector<8x96xf32>
    %270 = arith.negf %269 : vector<8x96xf32>
    %271 = math.exp %270 : vector<8x96xf32>
    %cst_92 = arith.constant 1.000000e+00 : f32
    %272 = vector.broadcast %cst_92 : f32 to vector<8x96xf32>
    %273 = arith.addf %272, %271 : vector<8x96xf32>
    %274 = arith.divf %272, %273 : vector<8x96xf32>
    %275 = vector.extract_strided_slice %274 {offsets = [0, 0], sizes = [8, 32], strides = [1, 1]} : vector<8x96xf32> to vector<8x32xf32>
    %276 = vector.extract_strided_slice %274 {offsets = [0, 32], sizes = [8, 32], strides = [1, 1]} : vector<8x96xf32> to vector<8x32xf32>
    %277 = vector.extract_strided_slice %274 {offsets = [0, 64], sizes = [8, 32], strides = [1, 1]} : vector<8x96xf32> to vector<8x32xf32>
    %278 = vector.extract_strided_slice %268 {offsets = [0, 96], sizes = [8, 32], strides = [1, 1]} : vector<8x128xf32> to vector<8x32xf32>
    %279 = math.tanh %278 : vector<8x32xf32>
    %280 = arith.mulf %276, %262 : vector<8x32xf32>
    %281 = arith.mulf %275, %279 : vector<8x32xf32>
    %282 = arith.addf %280, %281 : vector<8x32xf32>
    %283 = math.tanh %282 : vector<8x32xf32>
    %284 = arith.mulf %277, %283 : vector<8x32xf32>
    %c40_93 = arith.constant 40 : index
    %c0_94 = arith.constant 0 : index
    %285 = vector.load %arg16[%c40_93, %c0_94] : memref<64x32xf32, #tpu.memory_space<vmem>>, vector<8x32xf32>
    tpu.vector_store %arg16[%c40_93, %c0_94], %284 {strides = array<i32>} : memref<64x32xf32, #tpu.memory_space<vmem>>, vector<8x32xf32>,
    %c48_95 = arith.constant 48 : index
    %c0_96 = arith.constant 0 : index
    %286 = vector.load %arg17[%c48_95, %c0_96] : memref<64x128xf32, #tpu.memory_space<vmem>>, vector<8x128xf32>
    %cst_97 = arith.constant dense<0.000000e+00> : vector<8x128xf32>
    %287 = tpu.matmul %284, %170, %cst_97 {dimension_numbers = #tpu.dot_dimension_numbers<[1], [0], [0], [1], [0, 0, 1, 1], [], []>} : vector<8x32xf32>, vector<32x128xf32>, vector<8x128xf32> -> vector<8x128xf32>
    %288 = arith.addf %286, %287 : vector<8x128xf32>
    %289 = vector.extract_strided_slice %288 {offsets = [0, 0], sizes = [8, 96], strides = [1, 1]} : vector<8x128xf32> to vector<8x96xf32>
    %290 = arith.negf %289 : vector<8x96xf32>
    %291 = math.exp %290 : vector<8x96xf32>
    %cst_98 = arith.constant 1.000000e+00 : f32
    %292 = vector.broadcast %cst_98 : f32 to vector<8x96xf32>
    %293 = arith.addf %292, %291 : vector<8x96xf32>
    %294 = arith.divf %292, %293 : vector<8x96xf32>
    %295 = vector.extract_strided_slice %294 {offsets = [0, 0], sizes = [8, 32], strides = [1, 1]} : vector<8x96xf32> to vector<8x32xf32>
    %296 = vector.extract_strided_slice %294 {offsets = [0, 32], sizes = [8, 32], strides = [1, 1]} : vector<8x96xf32> to vector<8x32xf32>
    %297 = vector.extract_strided_slice %294 {offsets = [0, 64], sizes = [8, 32], strides = [1, 1]} : vector<8x96xf32> to vector<8x32xf32>
    %298 = vector.extract_strided_slice %288 {offsets = [0, 96], sizes = [8, 32], strides = [1, 1]} : vector<8x128xf32> to vector<8x32xf32>
    %299 = math.tanh %298 : vector<8x32xf32>
    %300 = arith.mulf %296, %282 : vector<8x32xf32>
    %301 = arith.mulf %295, %299 : vector<8x32xf32>
    %302 = arith.addf %300, %301 : vector<8x32xf32>
    %303 = math.tanh %302 : vector<8x32xf32>
    %304 = arith.mulf %297, %303 : vector<8x32xf32>
    %c48_99 = arith.constant 48 : index
    %c0_100 = arith.constant 0 : index
    %305 = vector.load %arg16[%c48_99, %c0_100] : memref<64x32xf32, #tpu.memory_space<vmem>>, vector<8x32xf32>
    tpu.vector_store %arg16[%c48_99, %c0_100], %304 {strides = array<i32>} : memref<64x32xf32, #tpu.memory_space<vmem>>, vector<8x32xf32>,
    %c56_101 = arith.constant 56 : index
    %c0_102 = arith.constant 0 : index
    %306 = vector.load %arg17[%c56_101, %c0_102] : memref<64x128xf32, #tpu.memory_space<vmem>>, vector<8x128xf32>
    %cst_103 = arith.constant dense<0.000000e+00> : vector<8x128xf32>
    %307 = tpu.matmul %304, %170, %cst_103 {dimension_numbers = #tpu.dot_dimension_numbers<[1], [0], [0], [1], [0, 0, 1, 1], [], []>} : vector<8x32xf32>, vector<32x128xf32>, vector<8x128xf32> -> vector<8x128xf32>
    %308 = arith.addf %306, %307 : vector<8x128xf32>
    %309 = vector.extract_strided_slice %308 {offsets = [0, 0], sizes = [8, 96], strides = [1, 1]} : vector<8x128xf32> to vector<8x96xf32>
    %310 = arith.negf %309 : vector<8x96xf32>
    %311 = math.exp %310 : vector<8x96xf32>
    %cst_104 = arith.constant 1.000000e+00 : f32
    %312 = vector.broadcast %cst_104 : f32 to vector<8x96xf32>
    %313 = arith.addf %312, %311 : vector<8x96xf32>
    %314 = arith.divf %312, %313 : vector<8x96xf32>
    %315 = vector.extract_strided_slice %314 {offsets = [0, 0], sizes = [8, 32], strides = [1, 1]} : vector<8x96xf32> to vector<8x32xf32>
    %316 = vector.extract_strided_slice %314 {offsets = [0, 32], sizes = [8, 32], strides = [1, 1]} : vector<8x96xf32> to vector<8x32xf32>
    %317 = vector.extract_strided_slice %314 {offsets = [0, 64], sizes = [8, 32], strides = [1, 1]} : vector<8x96xf32> to vector<8x32xf32>
    %318 = vector.extract_strided_slice %308 {offsets = [0, 96], sizes = [8, 32], strides = [1, 1]} : vector<8x128xf32> to vector<8x32xf32>
    %319 = math.tanh %318 : vector<8x32xf32>
    %320 = arith.mulf %316, %302 : vector<8x32xf32>
    %321 = arith.mulf %315, %319 : vector<8x32xf32>
    %322 = arith.addf %320, %321 : vector<8x32xf32>
    %323 = math.tanh %322 : vector<8x32xf32>
    %324 = arith.mulf %317, %323 : vector<8x32xf32>
    %c56_105 = arith.constant 56 : index
    %c0_106 = arith.constant 0 : index
    %325 = vector.load %arg16[%c56_105, %c0_106] : memref<64x32xf32, #tpu.memory_space<vmem>>, vector<8x32xf32>
    tpu.vector_store %arg16[%c56_105, %c0_106], %324 {strides = array<i32>} : memref<64x32xf32, #tpu.memory_space<vmem>>, vector<8x32xf32>,
    %c0_107 = arith.constant 0 : index
    %c0_108 = arith.constant 0 : index
    %326 = vector.load %arg16[%c0_107, %c0_108] : memref<64x32xf32, #tpu.memory_space<vmem>>, vector<64x32xf32>
    %c0_109 = arith.constant 0 : index
    %c0_110 = arith.constant 0 : index
    %327 = vector.load %arg7[%c0_109, %c0_110] : memref<32x128xf32, #tpu.memory_space<vmem>>, vector<32x128xf32>
    %cst_111 = arith.constant dense<0.000000e+00> : vector<64x128xf32>
    %328 = tpu.matmul %326, %327, %cst_111 {dimension_numbers = #tpu.dot_dimension_numbers<[1], [0], [0], [1], [0, 0, 1, 1], [], []>} : vector<64x32xf32>, vector<32x128xf32>, vector<64x128xf32> -> vector<64x128xf32>
    %c0_112 = arith.constant 0 : index
    %c0_113 = arith.constant 0 : index
    %329 = vector.load %arg9[%c0_112, %c0_113] : memref<1x128xf32, #tpu.memory_space<vmem>>, vector<1x128xf32>
    %330 = vector.broadcast %329 : vector<1x128xf32> to vector<64x128xf32>
    %331 = arith.addf %328, %330 : vector<64x128xf32>
    %c0_114 = arith.constant 0 : index
    %c0_115 = arith.constant 0 : index
    %332 = vector.load %arg17[%c0_114, %c0_115] : memref<64x128xf32, #tpu.memory_space<vmem>>, vector<64x128xf32>
    tpu.vector_store %arg17[%c0_114, %c0_115], %331 {strides = array<i32>} : memref<64x128xf32, #tpu.memory_space<vmem>>, vector<64x128xf32>,
    %c0_116 = arith.constant 0 : index
    %c0_117 = arith.constant 0 : index
    %333 = vector.load %arg8[%c0_116, %c0_117] : memref<32x128xf32, #tpu.memory_space<vmem>>, vector<32x128xf32>
    %c0_118 = arith.constant 0 : index
    %c0_119 = arith.constant 0 : index
    %334 = vector.load %arg17[%c0_118, %c0_119] : memref<64x128xf32, #tpu.memory_space<vmem>>, vector<8x128xf32>
    %335 = vector.extract_strided_slice %334 {offsets = [0, 0], sizes = [8, 96], strides = [1, 1]} : vector<8x128xf32> to vector<8x96xf32>
    %336 = arith.negf %335 : vector<8x96xf32>
    %337 = math.exp %336 : vector<8x96xf32>
    %cst_120 = arith.constant 1.000000e+00 : f32
    %338 = vector.broadcast %cst_120 : f32 to vector<8x96xf32>
    %339 = arith.addf %338, %337 : vector<8x96xf32>
    %340 = arith.divf %338, %339 : vector<8x96xf32>
    %341 = vector.extract_strided_slice %340 {offsets = [0, 0], sizes = [8, 32], strides = [1, 1]} : vector<8x96xf32> to vector<8x32xf32>
    %342 = vector.extract_strided_slice %340 {offsets = [0, 64], sizes = [8, 32], strides = [1, 1]} : vector<8x96xf32> to vector<8x32xf32>
    %343 = vector.extract_strided_slice %334 {offsets = [0, 96], sizes = [8, 32], strides = [1, 1]} : vector<8x128xf32> to vector<8x32xf32>
    %344 = math.tanh %343 : vector<8x32xf32>
    %345 = arith.mulf %341, %344 : vector<8x32xf32>
    %346 = math.tanh %345 : vector<8x32xf32>
    %347 = arith.mulf %342, %346 : vector<8x32xf32>
    %c0_121 = arith.constant 0 : index
    %c0_122 = arith.constant 0 : index
    %348 = vector.load %arg16[%c0_121, %c0_122] : memref<64x32xf32, #tpu.memory_space<vmem>>, vector<8x32xf32>
    tpu.vector_store %arg16[%c0_121, %c0_122], %347 {strides = array<i32>} : memref<64x32xf32, #tpu.memory_space<vmem>>, vector<8x32xf32>,
    %c8_123 = arith.constant 8 : index
    %c0_124 = arith.constant 0 : index
    %349 = vector.load %arg17[%c8_123, %c0_124] : memref<64x128xf32, #tpu.memory_space<vmem>>, vector<8x128xf32>
    %cst_125 = arith.constant dense<0.000000e+00> : vector<8x128xf32>
    %350 = tpu.matmul %347, %333, %cst_125 {dimension_numbers = #tpu.dot_dimension_numbers<[1], [0], [0], [1], [0, 0, 1, 1], [], []>} : vector<8x32xf32>, vector<32x128xf32>, vector<8x128xf32> -> vector<8x128xf32>
    %351 = arith.addf %349, %350 : vector<8x128xf32>
    %352 = vector.extract_strided_slice %351 {offsets = [0, 0], sizes = [8, 96], strides = [1, 1]} : vector<8x128xf32> to vector<8x96xf32>
    %353 = arith.negf %352 : vector<8x96xf32>
    %354 = math.exp %353 : vector<8x96xf32>
    %cst_126 = arith.constant 1.000000e+00 : f32
    %355 = vector.broadcast %cst_126 : f32 to vector<8x96xf32>
    %356 = arith.addf %355, %354 : vector<8x96xf32>
    %357 = arith.divf %355, %356 : vector<8x96xf32>
    %358 = vector.extract_strided_slice %357 {offsets = [0, 0], sizes = [8, 32], strides = [1, 1]} : vector<8x96xf32> to vector<8x32xf32>
    %359 = vector.extract_strided_slice %357 {offsets = [0, 32], sizes = [8, 32], strides = [1, 1]} : vector<8x96xf32> to vector<8x32xf32>
    %360 = vector.extract_strided_slice %357 {offsets = [0, 64], sizes = [8, 32], strides = [1, 1]} : vector<8x96xf32> to vector<8x32xf32>
    %361 = vector.extract_strided_slice %351 {offsets = [0, 96], sizes = [8, 32], strides = [1, 1]} : vector<8x128xf32> to vector<8x32xf32>
    %362 = math.tanh %361 : vector<8x32xf32>
    %363 = arith.mulf %359, %345 : vector<8x32xf32>
    %364 = arith.mulf %358, %362 : vector<8x32xf32>
    %365 = arith.addf %363, %364 : vector<8x32xf32>
    %366 = math.tanh %365 : vector<8x32xf32>
    %367 = arith.mulf %360, %366 : vector<8x32xf32>
    %c8_127 = arith.constant 8 : index
    %c0_128 = arith.constant 0 : index
    %368 = vector.load %arg16[%c8_127, %c0_128] : memref<64x32xf32, #tpu.memory_space<vmem>>, vector<8x32xf32>
    tpu.vector_store %arg16[%c8_127, %c0_128], %367 {strides = array<i32>} : memref<64x32xf32, #tpu.memory_space<vmem>>, vector<8x32xf32>,
    %c16_129 = arith.constant 16 : index
    %c0_130 = arith.constant 0 : index
    %369 = vector.load %arg17[%c16_129, %c0_130] : memref<64x128xf32, #tpu.memory_space<vmem>>, vector<8x128xf32>
    %cst_131 = arith.constant dense<0.000000e+00> : vector<8x128xf32>
    %370 = tpu.matmul %367, %333, %cst_131 {dimension_numbers = #tpu.dot_dimension_numbers<[1], [0], [0], [1], [0, 0, 1, 1], [], []>} : vector<8x32xf32>, vector<32x128xf32>, vector<8x128xf32> -> vector<8x128xf32>
    %371 = arith.addf %369, %370 : vector<8x128xf32>
    %372 = vector.extract_strided_slice %371 {offsets = [0, 0], sizes = [8, 96], strides = [1, 1]} : vector<8x128xf32> to vector<8x96xf32>
    %373 = arith.negf %372 : vector<8x96xf32>
    %374 = math.exp %373 : vector<8x96xf32>
    %cst_132 = arith.constant 1.000000e+00 : f32
    %375 = vector.broadcast %cst_132 : f32 to vector<8x96xf32>
    %376 = arith.addf %375, %374 : vector<8x96xf32>
    %377 = arith.divf %375, %376 : vector<8x96xf32>
    %378 = vector.extract_strided_slice %377 {offsets = [0, 0], sizes = [8, 32], strides = [1, 1]} : vector<8x96xf32> to vector<8x32xf32>
    %379 = vector.extract_strided_slice %377 {offsets = [0, 32], sizes = [8, 32], strides = [1, 1]} : vector<8x96xf32> to vector<8x32xf32>
    %380 = vector.extract_strided_slice %377 {offsets = [0, 64], sizes = [8, 32], strides = [1, 1]} : vector<8x96xf32> to vector<8x32xf32>
    %381 = vector.extract_strided_slice %371 {offsets = [0, 96], sizes = [8, 32], strides = [1, 1]} : vector<8x128xf32> to vector<8x32xf32>
    %382 = math.tanh %381 : vector<8x32xf32>
    %383 = arith.mulf %379, %365 : vector<8x32xf32>
    %384 = arith.mulf %378, %382 : vector<8x32xf32>
    %385 = arith.addf %383, %384 : vector<8x32xf32>
    %386 = math.tanh %385 : vector<8x32xf32>
    %387 = arith.mulf %380, %386 : vector<8x32xf32>
    %c16_133 = arith.constant 16 : index
    %c0_134 = arith.constant 0 : index
    %388 = vector.load %arg16[%c16_133, %c0_134] : memref<64x32xf32, #tpu.memory_space<vmem>>, vector<8x32xf32>
    tpu.vector_store %arg16[%c16_133, %c0_134], %387 {strides = array<i32>} : memref<64x32xf32, #tpu.memory_space<vmem>>, vector<8x32xf32>,
    %c24_135 = arith.constant 24 : index
    %c0_136 = arith.constant 0 : index
    %389 = vector.load %arg17[%c24_135, %c0_136] : memref<64x128xf32, #tpu.memory_space<vmem>>, vector<8x128xf32>
    %cst_137 = arith.constant dense<0.000000e+00> : vector<8x128xf32>
    %390 = tpu.matmul %387, %333, %cst_137 {dimension_numbers = #tpu.dot_dimension_numbers<[1], [0], [0], [1], [0, 0, 1, 1], [], []>} : vector<8x32xf32>, vector<32x128xf32>, vector<8x128xf32> -> vector<8x128xf32>
    %391 = arith.addf %389, %390 : vector<8x128xf32>
    %392 = vector.extract_strided_slice %391 {offsets = [0, 0], sizes = [8, 96], strides = [1, 1]} : vector<8x128xf32> to vector<8x96xf32>
    %393 = arith.negf %392 : vector<8x96xf32>
    %394 = math.exp %393 : vector<8x96xf32>
    %cst_138 = arith.constant 1.000000e+00 : f32
    %395 = vector.broadcast %cst_138 : f32 to vector<8x96xf32>
    %396 = arith.addf %395, %394 : vector<8x96xf32>
    %397 = arith.divf %395, %396 : vector<8x96xf32>
    %398 = vector.extract_strided_slice %397 {offsets = [0, 0], sizes = [8, 32], strides = [1, 1]} : vector<8x96xf32> to vector<8x32xf32>
    %399 = vector.extract_strided_slice %397 {offsets = [0, 32], sizes = [8, 32], strides = [1, 1]} : vector<8x96xf32> to vector<8x32xf32>
    %400 = vector.extract_strided_slice %397 {offsets = [0, 64], sizes = [8, 32], strides = [1, 1]} : vector<8x96xf32> to vector<8x32xf32>
    %401 = vector.extract_strided_slice %391 {offsets = [0, 96], sizes = [8, 32], strides = [1, 1]} : vector<8x128xf32> to vector<8x32xf32>
    %402 = math.tanh %401 : vector<8x32xf32>
    %403 = arith.mulf %399, %385 : vector<8x32xf32>
    %404 = arith.mulf %398, %402 : vector<8x32xf32>
    %405 = arith.addf %403, %404 : vector<8x32xf32>
    %406 = math.tanh %405 : vector<8x32xf32>
    %407 = arith.mulf %400, %406 : vector<8x32xf32>
    %c24_139 = arith.constant 24 : index
    %c0_140 = arith.constant 0 : index
    %408 = vector.load %arg16[%c24_139, %c0_140] : memref<64x32xf32, #tpu.memory_space<vmem>>, vector<8x32xf32>
    tpu.vector_store %arg16[%c24_139, %c0_140], %407 {strides = array<i32>} : memref<64x32xf32, #tpu.memory_space<vmem>>, vector<8x32xf32>,
    %c32_141 = arith.constant 32 : index
    %c0_142 = arith.constant 0 : index
    %409 = vector.load %arg17[%c32_141, %c0_142] : memref<64x128xf32, #tpu.memory_space<vmem>>, vector<8x128xf32>
    %cst_143 = arith.constant dense<0.000000e+00> : vector<8x128xf32>
    %410 = tpu.matmul %407, %333, %cst_143 {dimension_numbers = #tpu.dot_dimension_numbers<[1], [0], [0], [1], [0, 0, 1, 1], [], []>} : vector<8x32xf32>, vector<32x128xf32>, vector<8x128xf32> -> vector<8x128xf32>
    %411 = arith.addf %409, %410 : vector<8x128xf32>
    %412 = vector.extract_strided_slice %411 {offsets = [0, 0], sizes = [8, 96], strides = [1, 1]} : vector<8x128xf32> to vector<8x96xf32>
    %413 = arith.negf %412 : vector<8x96xf32>
    %414 = math.exp %413 : vector<8x96xf32>
    %cst_144 = arith.constant 1.000000e+00 : f32
    %415 = vector.broadcast %cst_144 : f32 to vector<8x96xf32>
    %416 = arith.addf %415, %414 : vector<8x96xf32>
    %417 = arith.divf %415, %416 : vector<8x96xf32>
    %418 = vector.extract_strided_slice %417 {offsets = [0, 0], sizes = [8, 32], strides = [1, 1]} : vector<8x96xf32> to vector<8x32xf32>
    %419 = vector.extract_strided_slice %417 {offsets = [0, 32], sizes = [8, 32], strides = [1, 1]} : vector<8x96xf32> to vector<8x32xf32>
    %420 = vector.extract_strided_slice %417 {offsets = [0, 64], sizes = [8, 32], strides = [1, 1]} : vector<8x96xf32> to vector<8x32xf32>
    %421 = vector.extract_strided_slice %411 {offsets = [0, 96], sizes = [8, 32], strides = [1, 1]} : vector<8x128xf32> to vector<8x32xf32>
    %422 = math.tanh %421 : vector<8x32xf32>
    %423 = arith.mulf %419, %405 : vector<8x32xf32>
    %424 = arith.mulf %418, %422 : vector<8x32xf32>
    %425 = arith.addf %423, %424 : vector<8x32xf32>
    %426 = math.tanh %425 : vector<8x32xf32>
    %427 = arith.mulf %420, %426 : vector<8x32xf32>
    %c32_145 = arith.constant 32 : index
    %c0_146 = arith.constant 0 : index
    %428 = vector.load %arg16[%c32_145, %c0_146] : memref<64x32xf32, #tpu.memory_space<vmem>>, vector<8x32xf32>
    tpu.vector_store %arg16[%c32_145, %c0_146], %427 {strides = array<i32>} : memref<64x32xf32, #tpu.memory_space<vmem>>, vector<8x32xf32>,
    %c40_147 = arith.constant 40 : index
    %c0_148 = arith.constant 0 : index
    %429 = vector.load %arg17[%c40_147, %c0_148] : memref<64x128xf32, #tpu.memory_space<vmem>>, vector<8x128xf32>
    %cst_149 = arith.constant dense<0.000000e+00> : vector<8x128xf32>
    %430 = tpu.matmul %427, %333, %cst_149 {dimension_numbers = #tpu.dot_dimension_numbers<[1], [0], [0], [1], [0, 0, 1, 1], [], []>} : vector<8x32xf32>, vector<32x128xf32>, vector<8x128xf32> -> vector<8x128xf32>
    %431 = arith.addf %429, %430 : vector<8x128xf32>
    %432 = vector.extract_strided_slice %431 {offsets = [0, 0], sizes = [8, 96], strides = [1, 1]} : vector<8x128xf32> to vector<8x96xf32>
    %433 = arith.negf %432 : vector<8x96xf32>
    %434 = math.exp %433 : vector<8x96xf32>
    %cst_150 = arith.constant 1.000000e+00 : f32
    %435 = vector.broadcast %cst_150 : f32 to vector<8x96xf32>
    %436 = arith.addf %435, %434 : vector<8x96xf32>
    %437 = arith.divf %435, %436 : vector<8x96xf32>
    %438 = vector.extract_strided_slice %437 {offsets = [0, 0], sizes = [8, 32], strides = [1, 1]} : vector<8x96xf32> to vector<8x32xf32>
    %439 = vector.extract_strided_slice %437 {offsets = [0, 32], sizes = [8, 32], strides = [1, 1]} : vector<8x96xf32> to vector<8x32xf32>
    %440 = vector.extract_strided_slice %437 {offsets = [0, 64], sizes = [8, 32], strides = [1, 1]} : vector<8x96xf32> to vector<8x32xf32>
    %441 = vector.extract_strided_slice %431 {offsets = [0, 96], sizes = [8, 32], strides = [1, 1]} : vector<8x128xf32> to vector<8x32xf32>
    %442 = math.tanh %441 : vector<8x32xf32>
    %443 = arith.mulf %439, %425 : vector<8x32xf32>
    %444 = arith.mulf %438, %442 : vector<8x32xf32>
    %445 = arith.addf %443, %444 : vector<8x32xf32>
    %446 = math.tanh %445 : vector<8x32xf32>
    %447 = arith.mulf %440, %446 : vector<8x32xf32>
    %c40_151 = arith.constant 40 : index
    %c0_152 = arith.constant 0 : index
    %448 = vector.load %arg16[%c40_151, %c0_152] : memref<64x32xf32, #tpu.memory_space<vmem>>, vector<8x32xf32>
    tpu.vector_store %arg16[%c40_151, %c0_152], %447 {strides = array<i32>} : memref<64x32xf32, #tpu.memory_space<vmem>>, vector<8x32xf32>,
    %c48_153 = arith.constant 48 : index
    %c0_154 = arith.constant 0 : index
    %449 = vector.load %arg17[%c48_153, %c0_154] : memref<64x128xf32, #tpu.memory_space<vmem>>, vector<8x128xf32>
    %cst_155 = arith.constant dense<0.000000e+00> : vector<8x128xf32>
    %450 = tpu.matmul %447, %333, %cst_155 {dimension_numbers = #tpu.dot_dimension_numbers<[1], [0], [0], [1], [0, 0, 1, 1], [], []>} : vector<8x32xf32>, vector<32x128xf32>, vector<8x128xf32> -> vector<8x128xf32>
    %451 = arith.addf %449, %450 : vector<8x128xf32>
    %452 = vector.extract_strided_slice %451 {offsets = [0, 0], sizes = [8, 96], strides = [1, 1]} : vector<8x128xf32> to vector<8x96xf32>
    %453 = arith.negf %452 : vector<8x96xf32>
    %454 = math.exp %453 : vector<8x96xf32>
    %cst_156 = arith.constant 1.000000e+00 : f32
    %455 = vector.broadcast %cst_156 : f32 to vector<8x96xf32>
    %456 = arith.addf %455, %454 : vector<8x96xf32>
    %457 = arith.divf %455, %456 : vector<8x96xf32>
    %458 = vector.extract_strided_slice %457 {offsets = [0, 0], sizes = [8, 32], strides = [1, 1]} : vector<8x96xf32> to vector<8x32xf32>
    %459 = vector.extract_strided_slice %457 {offsets = [0, 32], sizes = [8, 32], strides = [1, 1]} : vector<8x96xf32> to vector<8x32xf32>
    %460 = vector.extract_strided_slice %457 {offsets = [0, 64], sizes = [8, 32], strides = [1, 1]} : vector<8x96xf32> to vector<8x32xf32>
    %461 = vector.extract_strided_slice %451 {offsets = [0, 96], sizes = [8, 32], strides = [1, 1]} : vector<8x128xf32> to vector<8x32xf32>
    %462 = math.tanh %461 : vector<8x32xf32>
    %463 = arith.mulf %459, %445 : vector<8x32xf32>
    %464 = arith.mulf %458, %462 : vector<8x32xf32>
    %465 = arith.addf %463, %464 : vector<8x32xf32>
    %466 = math.tanh %465 : vector<8x32xf32>
    %467 = arith.mulf %460, %466 : vector<8x32xf32>
    %c48_157 = arith.constant 48 : index
    %c0_158 = arith.constant 0 : index
    %468 = vector.load %arg16[%c48_157, %c0_158] : memref<64x32xf32, #tpu.memory_space<vmem>>, vector<8x32xf32>
    tpu.vector_store %arg16[%c48_157, %c0_158], %467 {strides = array<i32>} : memref<64x32xf32, #tpu.memory_space<vmem>>, vector<8x32xf32>,
    %c56_159 = arith.constant 56 : index
    %c0_160 = arith.constant 0 : index
    %469 = vector.load %arg17[%c56_159, %c0_160] : memref<64x128xf32, #tpu.memory_space<vmem>>, vector<8x128xf32>
    %cst_161 = arith.constant dense<0.000000e+00> : vector<8x128xf32>
    %470 = tpu.matmul %467, %333, %cst_161 {dimension_numbers = #tpu.dot_dimension_numbers<[1], [0], [0], [1], [0, 0, 1, 1], [], []>} : vector<8x32xf32>, vector<32x128xf32>, vector<8x128xf32> -> vector<8x128xf32>
    %471 = arith.addf %469, %470 : vector<8x128xf32>
    %472 = vector.extract_strided_slice %471 {offsets = [0, 0], sizes = [8, 96], strides = [1, 1]} : vector<8x128xf32> to vector<8x96xf32>
    %473 = arith.negf %472 : vector<8x96xf32>
    %474 = math.exp %473 : vector<8x96xf32>
    %cst_162 = arith.constant 1.000000e+00 : f32
    %475 = vector.broadcast %cst_162 : f32 to vector<8x96xf32>
    %476 = arith.addf %475, %474 : vector<8x96xf32>
    %477 = arith.divf %475, %476 : vector<8x96xf32>
    %478 = vector.extract_strided_slice %477 {offsets = [0, 0], sizes = [8, 32], strides = [1, 1]} : vector<8x96xf32> to vector<8x32xf32>
    %479 = vector.extract_strided_slice %477 {offsets = [0, 32], sizes = [8, 32], strides = [1, 1]} : vector<8x96xf32> to vector<8x32xf32>
    %480 = vector.extract_strided_slice %477 {offsets = [0, 64], sizes = [8, 32], strides = [1, 1]} : vector<8x96xf32> to vector<8x32xf32>
    %481 = vector.extract_strided_slice %471 {offsets = [0, 96], sizes = [8, 32], strides = [1, 1]} : vector<8x128xf32> to vector<8x32xf32>
    %482 = math.tanh %481 : vector<8x32xf32>
    %483 = arith.mulf %479, %465 : vector<8x32xf32>
    %484 = arith.mulf %478, %482 : vector<8x32xf32>
    %485 = arith.addf %483, %484 : vector<8x32xf32>
    %486 = math.tanh %485 : vector<8x32xf32>
    %487 = arith.mulf %480, %486 : vector<8x32xf32>
    %c56_163 = arith.constant 56 : index
    %c0_164 = arith.constant 0 : index
    %488 = vector.load %arg16[%c56_163, %c0_164] : memref<64x32xf32, #tpu.memory_space<vmem>>, vector<8x32xf32>
    tpu.vector_store %arg16[%c56_163, %c0_164], %487 {strides = array<i32>} : memref<64x32xf32, #tpu.memory_space<vmem>>, vector<8x32xf32>,
    %c0_165 = arith.constant 0 : index
    %c0_166 = arith.constant 0 : index
    %489 = vector.load %arg16[%c0_165, %c0_166] : memref<64x32xf32, #tpu.memory_space<vmem>>, vector<64x32xf32>
    %c0_167 = arith.constant 0 : index
    %c0_168 = arith.constant 0 : index
    %490 = vector.load %arg10[%c0_167, %c0_168] : memref<32x128xf32, #tpu.memory_space<vmem>>, vector<32x128xf32>
    %cst_169 = arith.constant dense<0.000000e+00> : vector<64x128xf32>
    %491 = tpu.matmul %489, %490, %cst_169 {dimension_numbers = #tpu.dot_dimension_numbers<[1], [0], [0], [1], [0, 0, 1, 1], [], []>} : vector<64x32xf32>, vector<32x128xf32>, vector<64x128xf32> -> vector<64x128xf32>
    %c0_170 = arith.constant 0 : index
    %c0_171 = arith.constant 0 : index
    %492 = vector.load %arg12[%c0_170, %c0_171] : memref<1x128xf32, #tpu.memory_space<vmem>>, vector<1x128xf32>
    %493 = vector.broadcast %492 : vector<1x128xf32> to vector<64x128xf32>
    %494 = arith.addf %491, %493 : vector<64x128xf32>
    %c0_172 = arith.constant 0 : index
    %c0_173 = arith.constant 0 : index
    %495 = vector.load %arg17[%c0_172, %c0_173] : memref<64x128xf32, #tpu.memory_space<vmem>>, vector<64x128xf32>
    tpu.vector_store %arg17[%c0_172, %c0_173], %494 {strides = array<i32>} : memref<64x128xf32, #tpu.memory_space<vmem>>, vector<64x128xf32>,
    %c0_174 = arith.constant 0 : index
    %c0_175 = arith.constant 0 : index
    %496 = vector.load %arg11[%c0_174, %c0_175] : memref<32x128xf32, #tpu.memory_space<vmem>>, vector<32x128xf32>
    %c0_176 = arith.constant 0 : index
    %c0_177 = arith.constant 0 : index
    %497 = vector.load %arg17[%c0_176, %c0_177] : memref<64x128xf32, #tpu.memory_space<vmem>>, vector<8x128xf32>
    %498 = vector.extract_strided_slice %497 {offsets = [0, 0], sizes = [8, 96], strides = [1, 1]} : vector<8x128xf32> to vector<8x96xf32>
    %499 = arith.negf %498 : vector<8x96xf32>
    %500 = math.exp %499 : vector<8x96xf32>
    %cst_178 = arith.constant 1.000000e+00 : f32
    %501 = vector.broadcast %cst_178 : f32 to vector<8x96xf32>
    %502 = arith.addf %501, %500 : vector<8x96xf32>
    %503 = arith.divf %501, %502 : vector<8x96xf32>
    %504 = vector.extract_strided_slice %503 {offsets = [0, 0], sizes = [8, 32], strides = [1, 1]} : vector<8x96xf32> to vector<8x32xf32>
    %505 = vector.extract_strided_slice %503 {offsets = [0, 64], sizes = [8, 32], strides = [1, 1]} : vector<8x96xf32> to vector<8x32xf32>
    %506 = vector.extract_strided_slice %497 {offsets = [0, 96], sizes = [8, 32], strides = [1, 1]} : vector<8x128xf32> to vector<8x32xf32>
    %507 = math.tanh %506 : vector<8x32xf32>
    %508 = arith.mulf %504, %507 : vector<8x32xf32>
    %509 = math.tanh %508 : vector<8x32xf32>
    %510 = arith.mulf %505, %509 : vector<8x32xf32>
    %c8_179 = arith.constant 8 : index
    %c0_180 = arith.constant 0 : index
    %511 = vector.load %arg17[%c8_179, %c0_180] : memref<64x128xf32, #tpu.memory_space<vmem>>, vector<8x128xf32>
    %cst_181 = arith.constant dense<0.000000e+00> : vector<8x128xf32>
    %512 = tpu.matmul %510, %496, %cst_181 {dimension_numbers = #tpu.dot_dimension_numbers<[1], [0], [0], [1], [0, 0, 1, 1], [], []>} : vector<8x32xf32>, vector<32x128xf32>, vector<8x128xf32> -> vector<8x128xf32>
    %513 = arith.addf %511, %512 : vector<8x128xf32>
    %514 = vector.extract_strided_slice %513 {offsets = [0, 0], sizes = [8, 96], strides = [1, 1]} : vector<8x128xf32> to vector<8x96xf32>
    %515 = arith.negf %514 : vector<8x96xf32>
    %516 = math.exp %515 : vector<8x96xf32>
    %cst_182 = arith.constant 1.000000e+00 : f32
    %517 = vector.broadcast %cst_182 : f32 to vector<8x96xf32>
    %518 = arith.addf %517, %516 : vector<8x96xf32>
    %519 = arith.divf %517, %518 : vector<8x96xf32>
    %520 = vector.extract_strided_slice %519 {offsets = [0, 0], sizes = [8, 32], strides = [1, 1]} : vector<8x96xf32> to vector<8x32xf32>
    %521 = vector.extract_strided_slice %519 {offsets = [0, 32], sizes = [8, 32], strides = [1, 1]} : vector<8x96xf32> to vector<8x32xf32>
    %522 = vector.extract_strided_slice %519 {offsets = [0, 64], sizes = [8, 32], strides = [1, 1]} : vector<8x96xf32> to vector<8x32xf32>
    %523 = vector.extract_strided_slice %513 {offsets = [0, 96], sizes = [8, 32], strides = [1, 1]} : vector<8x128xf32> to vector<8x32xf32>
    %524 = math.tanh %523 : vector<8x32xf32>
    %525 = arith.mulf %521, %508 : vector<8x32xf32>
    %526 = arith.mulf %520, %524 : vector<8x32xf32>
    %527 = arith.addf %525, %526 : vector<8x32xf32>
    %528 = math.tanh %527 : vector<8x32xf32>
    %529 = arith.mulf %522, %528 : vector<8x32xf32>
    %c16_183 = arith.constant 16 : index
    %c0_184 = arith.constant 0 : index
    %530 = vector.load %arg17[%c16_183, %c0_184] : memref<64x128xf32, #tpu.memory_space<vmem>>, vector<8x128xf32>
    %cst_185 = arith.constant dense<0.000000e+00> : vector<8x128xf32>
    %531 = tpu.matmul %529, %496, %cst_185 {dimension_numbers = #tpu.dot_dimension_numbers<[1], [0], [0], [1], [0, 0, 1, 1], [], []>} : vector<8x32xf32>, vector<32x128xf32>, vector<8x128xf32> -> vector<8x128xf32>
    %532 = arith.addf %530, %531 : vector<8x128xf32>
    %533 = vector.extract_strided_slice %532 {offsets = [0, 0], sizes = [8, 96], strides = [1, 1]} : vector<8x128xf32> to vector<8x96xf32>
    %534 = arith.negf %533 : vector<8x96xf32>
    %535 = math.exp %534 : vector<8x96xf32>
    %cst_186 = arith.constant 1.000000e+00 : f32
    %536 = vector.broadcast %cst_186 : f32 to vector<8x96xf32>
    %537 = arith.addf %536, %535 : vector<8x96xf32>
    %538 = arith.divf %536, %537 : vector<8x96xf32>
    %539 = vector.extract_strided_slice %538 {offsets = [0, 0], sizes = [8, 32], strides = [1, 1]} : vector<8x96xf32> to vector<8x32xf32>
    %540 = vector.extract_strided_slice %538 {offsets = [0, 32], sizes = [8, 32], strides = [1, 1]} : vector<8x96xf32> to vector<8x32xf32>
    %541 = vector.extract_strided_slice %538 {offsets = [0, 64], sizes = [8, 32], strides = [1, 1]} : vector<8x96xf32> to vector<8x32xf32>
    %542 = vector.extract_strided_slice %532 {offsets = [0, 96], sizes = [8, 32], strides = [1, 1]} : vector<8x128xf32> to vector<8x32xf32>
    %543 = math.tanh %542 : vector<8x32xf32>
    %544 = arith.mulf %540, %527 : vector<8x32xf32>
    %545 = arith.mulf %539, %543 : vector<8x32xf32>
    %546 = arith.addf %544, %545 : vector<8x32xf32>
    %547 = math.tanh %546 : vector<8x32xf32>
    %548 = arith.mulf %541, %547 : vector<8x32xf32>
    %c24_187 = arith.constant 24 : index
    %c0_188 = arith.constant 0 : index
    %549 = vector.load %arg17[%c24_187, %c0_188] : memref<64x128xf32, #tpu.memory_space<vmem>>, vector<8x128xf32>
    %cst_189 = arith.constant dense<0.000000e+00> : vector<8x128xf32>
    %550 = tpu.matmul %548, %496, %cst_189 {dimension_numbers = #tpu.dot_dimension_numbers<[1], [0], [0], [1], [0, 0, 1, 1], [], []>} : vector<8x32xf32>, vector<32x128xf32>, vector<8x128xf32> -> vector<8x128xf32>
    %551 = arith.addf %549, %550 : vector<8x128xf32>
    %552 = vector.extract_strided_slice %551 {offsets = [0, 0], sizes = [8, 96], strides = [1, 1]} : vector<8x128xf32> to vector<8x96xf32>
    %553 = arith.negf %552 : vector<8x96xf32>
    %554 = math.exp %553 : vector<8x96xf32>
    %cst_190 = arith.constant 1.000000e+00 : f32
    %555 = vector.broadcast %cst_190 : f32 to vector<8x96xf32>
    %556 = arith.addf %555, %554 : vector<8x96xf32>
    %557 = arith.divf %555, %556 : vector<8x96xf32>
    %558 = vector.extract_strided_slice %557 {offsets = [0, 0], sizes = [8, 32], strides = [1, 1]} : vector<8x96xf32> to vector<8x32xf32>
    %559 = vector.extract_strided_slice %557 {offsets = [0, 32], sizes = [8, 32], strides = [1, 1]} : vector<8x96xf32> to vector<8x32xf32>
    %560 = vector.extract_strided_slice %557 {offsets = [0, 64], sizes = [8, 32], strides = [1, 1]} : vector<8x96xf32> to vector<8x32xf32>
    %561 = vector.extract_strided_slice %551 {offsets = [0, 96], sizes = [8, 32], strides = [1, 1]} : vector<8x128xf32> to vector<8x32xf32>
    %562 = math.tanh %561 : vector<8x32xf32>
    %563 = arith.mulf %559, %546 : vector<8x32xf32>
    %564 = arith.mulf %558, %562 : vector<8x32xf32>
    %565 = arith.addf %563, %564 : vector<8x32xf32>
    %566 = math.tanh %565 : vector<8x32xf32>
    %567 = arith.mulf %560, %566 : vector<8x32xf32>
    %c32_191 = arith.constant 32 : index
    %c0_192 = arith.constant 0 : index
    %568 = vector.load %arg17[%c32_191, %c0_192] : memref<64x128xf32, #tpu.memory_space<vmem>>, vector<8x128xf32>
    %cst_193 = arith.constant dense<0.000000e+00> : vector<8x128xf32>
    %569 = tpu.matmul %567, %496, %cst_193 {dimension_numbers = #tpu.dot_dimension_numbers<[1], [0], [0], [1], [0, 0, 1, 1], [], []>} : vector<8x32xf32>, vector<32x128xf32>, vector<8x128xf32> -> vector<8x128xf32>
    %570 = arith.addf %568, %569 : vector<8x128xf32>
    %571 = vector.extract_strided_slice %570 {offsets = [0, 0], sizes = [8, 96], strides = [1, 1]} : vector<8x128xf32> to vector<8x96xf32>
    %572 = arith.negf %571 : vector<8x96xf32>
    %573 = math.exp %572 : vector<8x96xf32>
    %cst_194 = arith.constant 1.000000e+00 : f32
    %574 = vector.broadcast %cst_194 : f32 to vector<8x96xf32>
    %575 = arith.addf %574, %573 : vector<8x96xf32>
    %576 = arith.divf %574, %575 : vector<8x96xf32>
    %577 = vector.extract_strided_slice %576 {offsets = [0, 0], sizes = [8, 32], strides = [1, 1]} : vector<8x96xf32> to vector<8x32xf32>
    %578 = vector.extract_strided_slice %576 {offsets = [0, 32], sizes = [8, 32], strides = [1, 1]} : vector<8x96xf32> to vector<8x32xf32>
    %579 = vector.extract_strided_slice %576 {offsets = [0, 64], sizes = [8, 32], strides = [1, 1]} : vector<8x96xf32> to vector<8x32xf32>
    %580 = vector.extract_strided_slice %570 {offsets = [0, 96], sizes = [8, 32], strides = [1, 1]} : vector<8x128xf32> to vector<8x32xf32>
    %581 = math.tanh %580 : vector<8x32xf32>
    %582 = arith.mulf %578, %565 : vector<8x32xf32>
    %583 = arith.mulf %577, %581 : vector<8x32xf32>
    %584 = arith.addf %582, %583 : vector<8x32xf32>
    %585 = math.tanh %584 : vector<8x32xf32>
    %586 = arith.mulf %579, %585 : vector<8x32xf32>
    %c40_195 = arith.constant 40 : index
    %c0_196 = arith.constant 0 : index
    %587 = vector.load %arg17[%c40_195, %c0_196] : memref<64x128xf32, #tpu.memory_space<vmem>>, vector<8x128xf32>
    %cst_197 = arith.constant dense<0.000000e+00> : vector<8x128xf32>
    %588 = tpu.matmul %586, %496, %cst_197 {dimension_numbers = #tpu.dot_dimension_numbers<[1], [0], [0], [1], [0, 0, 1, 1], [], []>} : vector<8x32xf32>, vector<32x128xf32>, vector<8x128xf32> -> vector<8x128xf32>
    %589 = arith.addf %587, %588 : vector<8x128xf32>
    %590 = vector.extract_strided_slice %589 {offsets = [0, 0], sizes = [8, 96], strides = [1, 1]} : vector<8x128xf32> to vector<8x96xf32>
    %591 = arith.negf %590 : vector<8x96xf32>
    %592 = math.exp %591 : vector<8x96xf32>
    %cst_198 = arith.constant 1.000000e+00 : f32
    %593 = vector.broadcast %cst_198 : f32 to vector<8x96xf32>
    %594 = arith.addf %593, %592 : vector<8x96xf32>
    %595 = arith.divf %593, %594 : vector<8x96xf32>
    %596 = vector.extract_strided_slice %595 {offsets = [0, 0], sizes = [8, 32], strides = [1, 1]} : vector<8x96xf32> to vector<8x32xf32>
    %597 = vector.extract_strided_slice %595 {offsets = [0, 32], sizes = [8, 32], strides = [1, 1]} : vector<8x96xf32> to vector<8x32xf32>
    %598 = vector.extract_strided_slice %595 {offsets = [0, 64], sizes = [8, 32], strides = [1, 1]} : vector<8x96xf32> to vector<8x32xf32>
    %599 = vector.extract_strided_slice %589 {offsets = [0, 96], sizes = [8, 32], strides = [1, 1]} : vector<8x128xf32> to vector<8x32xf32>
    %600 = math.tanh %599 : vector<8x32xf32>
    %601 = arith.mulf %597, %584 : vector<8x32xf32>
    %602 = arith.mulf %596, %600 : vector<8x32xf32>
    %603 = arith.addf %601, %602 : vector<8x32xf32>
    %604 = math.tanh %603 : vector<8x32xf32>
    %605 = arith.mulf %598, %604 : vector<8x32xf32>
    %c48_199 = arith.constant 48 : index
    %c0_200 = arith.constant 0 : index
    %606 = vector.load %arg17[%c48_199, %c0_200] : memref<64x128xf32, #tpu.memory_space<vmem>>, vector<8x128xf32>
    %cst_201 = arith.constant dense<0.000000e+00> : vector<8x128xf32>
    %607 = tpu.matmul %605, %496, %cst_201 {dimension_numbers = #tpu.dot_dimension_numbers<[1], [0], [0], [1], [0, 0, 1, 1], [], []>} : vector<8x32xf32>, vector<32x128xf32>, vector<8x128xf32> -> vector<8x128xf32>
    %608 = arith.addf %606, %607 : vector<8x128xf32>
    %609 = vector.extract_strided_slice %608 {offsets = [0, 0], sizes = [8, 96], strides = [1, 1]} : vector<8x128xf32> to vector<8x96xf32>
    %610 = arith.negf %609 : vector<8x96xf32>
    %611 = math.exp %610 : vector<8x96xf32>
    %cst_202 = arith.constant 1.000000e+00 : f32
    %612 = vector.broadcast %cst_202 : f32 to vector<8x96xf32>
    %613 = arith.addf %612, %611 : vector<8x96xf32>
    %614 = arith.divf %612, %613 : vector<8x96xf32>
    %615 = vector.extract_strided_slice %614 {offsets = [0, 0], sizes = [8, 32], strides = [1, 1]} : vector<8x96xf32> to vector<8x32xf32>
    %616 = vector.extract_strided_slice %614 {offsets = [0, 32], sizes = [8, 32], strides = [1, 1]} : vector<8x96xf32> to vector<8x32xf32>
    %617 = vector.extract_strided_slice %614 {offsets = [0, 64], sizes = [8, 32], strides = [1, 1]} : vector<8x96xf32> to vector<8x32xf32>
    %618 = vector.extract_strided_slice %608 {offsets = [0, 96], sizes = [8, 32], strides = [1, 1]} : vector<8x128xf32> to vector<8x32xf32>
    %619 = math.tanh %618 : vector<8x32xf32>
    %620 = arith.mulf %616, %603 : vector<8x32xf32>
    %621 = arith.mulf %615, %619 : vector<8x32xf32>
    %622 = arith.addf %620, %621 : vector<8x32xf32>
    %623 = math.tanh %622 : vector<8x32xf32>
    %624 = arith.mulf %617, %623 : vector<8x32xf32>
    %c56_203 = arith.constant 56 : index
    %c0_204 = arith.constant 0 : index
    %625 = vector.load %arg17[%c56_203, %c0_204] : memref<64x128xf32, #tpu.memory_space<vmem>>, vector<8x128xf32>
    %cst_205 = arith.constant dense<0.000000e+00> : vector<8x128xf32>
    %626 = tpu.matmul %624, %496, %cst_205 {dimension_numbers = #tpu.dot_dimension_numbers<[1], [0], [0], [1], [0, 0, 1, 1], [], []>} : vector<8x32xf32>, vector<32x128xf32>, vector<8x128xf32> -> vector<8x128xf32>
    %627 = arith.addf %625, %626 : vector<8x128xf32>
    %628 = vector.extract_strided_slice %627 {offsets = [0, 0], sizes = [8, 96], strides = [1, 1]} : vector<8x128xf32> to vector<8x96xf32>
    %629 = arith.negf %628 : vector<8x96xf32>
    %630 = math.exp %629 : vector<8x96xf32>
    %cst_206 = arith.constant 1.000000e+00 : f32
    %631 = vector.broadcast %cst_206 : f32 to vector<8x96xf32>
    %632 = arith.addf %631, %630 : vector<8x96xf32>
    %633 = arith.divf %631, %632 : vector<8x96xf32>
    %634 = vector.extract_strided_slice %633 {offsets = [0, 0], sizes = [8, 32], strides = [1, 1]} : vector<8x96xf32> to vector<8x32xf32>
    %635 = vector.extract_strided_slice %633 {offsets = [0, 32], sizes = [8, 32], strides = [1, 1]} : vector<8x96xf32> to vector<8x32xf32>
    %636 = vector.extract_strided_slice %633 {offsets = [0, 64], sizes = [8, 32], strides = [1, 1]} : vector<8x96xf32> to vector<8x32xf32>
    %637 = vector.extract_strided_slice %627 {offsets = [0, 96], sizes = [8, 32], strides = [1, 1]} : vector<8x128xf32> to vector<8x32xf32>
    %638 = math.tanh %637 : vector<8x32xf32>
    %639 = arith.mulf %635, %622 : vector<8x32xf32>
    %640 = arith.mulf %634, %638 : vector<8x32xf32>
    %641 = arith.addf %639, %640 : vector<8x32xf32>
    %642 = math.tanh %641 : vector<8x32xf32>
    %643 = arith.mulf %636, %642 : vector<8x32xf32>
    %c0_207 = arith.constant 0 : index
    %c0_208 = arith.constant 0 : index
    %644 = vector.load %arg13[%c0_207, %c0_208] : memref<32x1xf32, #tpu.memory_space<vmem>>, vector<32x1xf32>
    %cst_209 = arith.constant dense<0.000000e+00> : vector<8x1xf32>
    %645 = tpu.matmul %643, %644, %cst_209 {dimension_numbers = #tpu.dot_dimension_numbers<[1], [0], [0], [1], [0, 0, 1, 1], [], []>} : vector<8x32xf32>, vector<32x1xf32>, vector<8x1xf32> -> vector<8x1xf32>
    %c0_210 = arith.constant 0 : index
    %c0_211 = arith.constant 0 : index
    %646 = vector.load %arg14[%c0_210, %c0_211] : memref<1x1xf32, #tpu.memory_space<vmem>>, vector<1x1xf32>
    %647 = vector.broadcast %646 : vector<1x1xf32> to vector<8x1xf32>
    %648 = arith.addf %645, %647 : vector<8x1xf32>
    %c0_212 = arith.constant 0 : index
    %c0_213 = arith.constant 0 : index
    %649 = vector.load %arg15[%c0_212, %c0_213] : memref<8x1xf32, #tpu.memory_space<vmem>>, vector<8x1xf32>
    tpu.vector_store %arg15[%c0_212, %c0_213], %648 {strides = array<i32>} : memref<8x1xf32, #tpu.memory_space<vmem>>, vector<8x1xf32>,
    return
  }
}

</mosaic_0001>

<bundles_post_ra>
// kernel: stock_price_lstm_forward.1
= control target key start
LH: loop header
LB: loop body
LE: loop exit
PB: predicated region body
PF: predicated region fallthrough
CT: control target
= control target key end

     0   :  { %s5847_s0 = inlined_call_operand.vmem [shape: f32[64,8], index: 0, kind: input, shape index: {}]   ;;  %s5848_s1 = inlined_call_operand.vmem [shape: f32[8,128], index: 1, kind: input, shape index: {}]   ;;  %s5849_s2 = inlined_call_operand.vmem [shape: f32[32,128], index: 2, kind: input, shape index: {}]   ;;  %s5850_s3 = inlined_call_operand.vmem [shape: f32[1,128], index: 3, kind: input, shape index: {}]   ;;  %s5851_s4 = inlined_call_operand.vmem [shape: f32[32,128], index: 4, kind: input, shape index: {}]   ;;  %s5852_s5 = inlined_call_operand.vmem [shape: f32[32,128], index: 5, kind: input, shape index: {}]   ;;  %s5853_s6 = inlined_call_operand.vmem [shape: f32[1,128], index: 6, kind: input, shape index: {}]   ;;  %s5854_s7 = inlined_call_operand.vmem [shape: f32[32,128], index: 7, kind: input, shape index: {}]   ;;  %s5855_s8 = inlined_call_operand.vmem [shape: f32[32,128], index: 8, kind: input, shape index: {}]   ;;  %s5856_s9 = inlined_call_operand.hbm [shape: f32[1,128], index: 9, kind: input, shape index: {}]   ;;  %s5857_s10 = inlined_call_operand.hbm [shape: f32[32,128], index: 10, kind: input, shape index: {}]   ;;  %s5858_s11 = inlined_call_operand.hbm [shape: f32[32,128], index: 11, kind: input, shape index: {}]   ;;  %s5859_s12 = inlined_call_operand.hbm [shape: f32[1,128], index: 12, kind: input, shape index: {}]   ;;  %s5860_s13 = inlined_call_operand.vmem [shape: f32[32,1], index: 13, kind: input, shape index: {}]   ;;  %s5861_s14 = inlined_call_operand.<no memory space> [shape: f32[1,1], index: 14, kind: input, shape index: {}]   ;;  %s5862_s15 = inlined_call_operand.vmem [shape: f32[8,1], index: 15, kind: output, shape index: {}]  }
   0x1   :  { %v20_v0 = vstv %s5861_s14 }
   0x2   :  { %21 = vst [vmem:[#allocation4] sm:$0x1] %v20_v0 }
   0x3   :  { %22 = vsyncpa [#allocation6], 0 }
   0x4   :  { %23 = vsyncpa [#allocation8], 0 }
   0x5   :  { %24 = vsyncpa [#allocation11], 0  ;;  %s5054_s20 = smov [#allocation7]   ;;  %s4960_s24 = scalar_lea.hbm %s5857_s10, 512 }
   0x6   :  { %s58_s21 = sshll.u32 %s5054_s20, 4  ;;  %p4961_p0 = scmp.ne.s32.totalorder %s5857_s10, %s4960_s24  ;;  %s59_s21 = int_to_ptr.vmem [resolvable:$true] %s58_s21 }
   0x7   :  { %p4964_p1 = scmp.lt.u32.totalorder %s4960_s24, %s5857_s10 }
   0x9   :  { %p4966_p2 = pnand %p4964_p1, %p4961_p0 }
   0xb   :  { %4969 = shalt.err (!%p4966_p2)
}
   0xc   :  { %s4970_s14 = scalar_lea.vmem %s59_s21, 512  ;;  %p4975_p4 = scmp.lt.s32.totalorder %s59_s21, %s59_s21 }
   0xd   :  { %p4971_p3 = scmp.ne.s32.totalorder %s59_s21, %s4970_s14  ;;  %p4976_p5 = scmp.lt.s32.totalorder %s4970_s14, %s4970_s14 }
   0xf   :  { %p4977_p6 = por %p4976_p5, %p4975_p4 }
  0x11   :  { %p4978_p7 = pnand %p4977_p6, %p4971_p3 }
  0x13   :  { %4981 = shalt.err (!%p4978_p7)
}
  0x14   :  { %s5055_s29 = smov 128   ;;  %s5056_s30 = smov 8  }
  0x15   :  { %64 = dma.hbm_to_vmem [thread:$0]  %s5857_s10, 512, %s59_s21, [#allocation8], %s5055_s29, %s5055_s29, %s5056_s30  }
  0x16   :  { %s5057_s18 = smov [#allocation5]   ;;  %s5058_s20 = smov [#allocation9]  }
  0x17   :  { %s49_s19 = sshll.u32 %s5057_s18, 4  ;;  %s70_s22 = sshll.u32 %s5058_s20, 4  ;;  %s50_s19 = int_to_ptr.vmem [resolvable:$true] %s49_s19  ;;  %s71_s22 = int_to_ptr.vmem [resolvable:$true] %s70_s22 }
  0x18   :  { %s4982_s25 = scalar_lea.hbm %s5856_s9, 16 }
  0x19   :  { %p4983_p8 = scmp.ne.s32.totalorder %s5856_s9, %s4982_s25  ;;  %p4986_p9 = scmp.lt.u32.totalorder %s4982_s25, %s5856_s9 }
  0x1b   :  { %p4988_p10 = pnand %p4986_p9, %p4983_p8 }
  0x1d   :  { %4991 = shalt.err (!%p4988_p10)
}
  0x1e   :  { %s4992_s10 = scalar_lea.vmem %s50_s19, 16  ;;  %s4996_s21 = scalar_lea.vmem %s50_s19, 32 }
  0x1f   :  { %p4993_p11 = scmp.ne.s32.totalorder %s50_s19, %s4992_s10  ;;  %p4997_p12 = scmp.lt.s32.totalorder %s50_s19, %s50_s19 }
  0x20   :  { %p4998_p13 = scmp.lt.s32.totalorder %s4996_s21, %s4992_s10 }
  0x22   :  { %p4999_p0 = por %p4998_p13, %p4997_p12 }
  0x24   :  { %p5000_p1 = pnand %p4999_p0, %p4993_p11 }
  0x26   :  { %5003 = shalt.err (!%p5000_p1)
}
  0x27   :  { %52 = dma.hbm_to_vmem [thread:$0]  %s5856_s9, 16, %s50_s19, [#allocation6]  }
  0x28   :  { %s5004_s23 = scalar_lea.hbm %s5858_s11, 512 }
  0x29   :  { %p5005_p2 = scmp.ne.s32.totalorder %s5858_s11, %s5004_s23  ;;  %p5008_p3 = scmp.lt.u32.totalorder %s5004_s23, %s5858_s11 }
  0x2b   :  { %p5010_p4 = pnand %p5008_p3, %p5005_p2 }
  0x2d   :  { %5013 = shalt.err (!%p5010_p4)
}
  0x2e   :  { %s5014_s28 = scalar_lea.vmem %s71_s22, 512  ;;  %p5019_p6 = scmp.lt.s32.totalorder %s71_s22, %s71_s22 }
  0x2f   :  { %p5015_p5 = scmp.ne.s32.totalorder %s71_s22, %s5014_s28  ;;  %p5020_p7 = scmp.lt.s32.totalorder %s5014_s28, %s5014_s28 }
  0x31   :  { %p5021_p8 = por %p5020_p7, %p5019_p6 }
  0x33   :  { %p5022_p9 = pnand %p5021_p8, %p5015_p5 }
  0x35   :  { %5025 = shalt.err (!%p5022_p9)
}
  0x36   :  { %76 = dma.hbm_to_vmem [thread:$0]  %s5858_s11, 512, %s71_s22, [#allocation8], %s5055_s29, %s5055_s29, %s5056_s30  }
  0x37   :  { %s5059_s14 = smov [#allocation10]   ;;  %s5026_s17 = scalar_lea.hbm %s5859_s12, 16 }
  0x38   :  { %s83_s10 = sshll.u32 %s5059_s14, 4  ;;  %p5027_p10 = scmp.ne.s32.totalorder %s5859_s12, %s5026_s17  ;;  %s84_s10 = int_to_ptr.vmem [resolvable:$true] %s83_s10 }
  0x39   :  { %p5030_p11 = scmp.lt.u32.totalorder %s5026_s17, %s5859_s12 }
  0x3b   :  { %p5032_p12 = pnand %p5030_p11, %p5027_p10 }
  0x3d   :  { %5035 = shalt.err (!%p5032_p12)
}
  0x3e   :  { %s5036_s25 = scalar_lea.vmem %s84_s10, 16  ;;  %s5040_s11 = scalar_lea.vmem %s84_s10, 32 }
  0x3f   :  { %p5037_p13 = scmp.ne.s32.totalorder %s84_s10, %s5036_s25  ;;  %p5041_p0 = scmp.lt.s32.totalorder %s84_s10, %s84_s10 }
  0x40   :  { %p5042_p1 = scmp.lt.s32.totalorder %s5040_s11, %s5036_s25 }
  0x42   :  { %p5043_p2 = por %p5042_p1, %p5041_p0 }
  0x44   :  { %p5044_p3 = pnand %p5043_p2, %p5037_p13 }
  0x46   :  { %5047 = shalt.err (!%p5044_p3)
}
  0x47   :  { %86 = dma.hbm_to_vmem [thread:$0]  %s5859_s12, 16, %s84_s10, [#allocation11]  }
  0x48   :  { %5048 = dma.done.wait [#allocation6], 16  }
  0x49   :  { %5049 = vsyncadd [#allocation6], 4294967280 }
  0x4a   :  { %5050 = dma.done.wait [#allocation8], 1024  }
  0x4b   :  { %5051 = vsyncadd [#allocation8], 4294966272 }
  0x4c   :  { %5052 = dma.done.wait [#allocation11], 16  }
  0x4d   :  { %5053 = vsyncadd [#allocation11], 4294967280  ;;  %vm119_vm0 = vcmask 64512   ;;  %v111_v1 = vld [vmem:[%s5848_s1] sm:$0xff]  ;;  %v104_v3 = vld [vmem:[%s5847_s0 + $0x8] sm:$0xff]  ;;  %s5060_s1 = smov 32  }
  0x4e   :  { %v103_v2 = vld [vmem:[%s5847_s0] sm:$0xff]  ;;  %4102 = vmatprep.subr.mxu0 %v111_v1  ;;  %v258_v16 = vld [vmem:[%s5849_s2 + $0x8] sm:$0xff]  ;;  %v259_v17 = vld [vmem:[%s5849_s2 + $0x10] sm:$0xff]  ;;  %v5061_v18 = vmov 0.0|0.0   ;;  %vm5062_vm1 = vmmov 0   ;;  %v5063_v21 = vmov 0.0  }
  0x4f   :  { %4104 = vmatprep.mubr.msk.f32.mxu0 %vm119_vm0, %v103_v2  ;;  %4103 = vmatpush3.msra.mxu0 %v111_v1  ;;  %v5216_v4 = vld [vmem:[%s5850_s3] ss:$0 sm:$0xff]  ;;  %v260_v20 = vld [vmem:[%s5849_s2 + $0x18] sm:$0xff]  ;;  %vm284_vm2 = vcmask 261120   ;;  %v105_v42 = vld [vmem:[%s5847_s0 + $0x10] sm:$0xff]  ;;  %vm3805_vm3 = vcmask 7168  }
  0x50   :  { %4105 = vmatmul.mubr.msk.f32.vlgmr.msra.gmra.mrb[0].mxu0 %vm119_vm0, %v104_v3  ;;  %v257_v15 = vld [vmem:[%s5849_s2] sm:$0xff]  ;;  %4495 = vmatprep.subr.bf16.mxu1 %v5061_v18  ;;  %v5239_v22 = vpack.c.bf16 %v260_v20, %v259_v17  ;;  %s5064_s2 = smov 64   ;;  %v106_v43 = vld [vmem:[%s5847_s0 + $0x18] sm:$0xff]  ;;  %v108_v1 = vld [vmem:[%s5847_s0 + $0x28] sm:$0xff] }
  0x51   :  { %v5230_v19 = vpack.c.bf16 %v258_v16, %v257_v15  ;;  %4124 = vmatprep.mubr.msk.f32.mxu1 %vm5062_vm1, %v5063_v21  ;;  %4507 = vmatprep.subr.bf16.mxu0 %v5061_v18  ;;  %v107_v0 = vld [vmem:[%s5847_s0 + $0x20] sm:$0xff]  ;;  %v109_v2 = vld [vmem:[%s5847_s0 + $0x30] sm:$0xff]  ;;  %v110_v3 = vld [vmem:[%s5847_s0 + $0x38] sm:$0xff] }
  0x52   :  { %4107 = vmatprep.mubr.msk.f32.mxu0 %vm119_vm0, %v105_v42 }
  0x53   :  { %4497 = vmatpush3.bf16.msra.mxu1 %v5230_v19  ;;  %4509 = vmatpush3.bf16.msra.mxu0 %v5230_v19 }
  0x54   :  { %4498 = vmatprep.subr.bf16.mxu1 %v5061_v18  ;;  %4510 = vmatprep.subr.bf16.mxu0 %v5061_v18 }
  0x55   :  { %4108 = vmatmul.mubr.msk.f32.gmra.mrb[2].mxu0 %vm119_vm0, %v106_v43 }
  0x56   :  { %4110 = vmatprep.mubr.msk.f32.mxu0 %vm119_vm0, %v107_v0 }
  0x57   :  { %4500 = vmatpush3.bf16.msra.mxu1 %v5239_v22  ;;  %4512 = vmatpush3.bf16.msra.mxu0 %v5239_v22 }
  0x58   :  { %4501 = vmatprep.subr.bf16.mxu1 %v5061_v18  ;;  %4519 = vmatprep.subr.bf16.mxu0 %v5061_v18 }
  0x59   :  { %4111 = vmatmul.mubr.msk.f32.gmra.mrb[4].mxu0 %vm119_vm0, %v108_v1  ;;  %v1019_v1 = vld [vmem:[%s5851_s4] sm:$0xff] }
  0x5a   :  { %4113 = vmatprep.mubr.msk.f32.mxu0 %vm119_vm0, %v109_v2  ;;  %v1020_v2 = vld [vmem:[%s5851_s4 + $0x8] sm:$0xff] }
  0x5d   :  { %4114 = vmatmul.mubr.msk.f32.gmra.mrb[6].mxu0 %vm119_vm0, %v110_v3  ;;  %v4537_v3 = vpack.c.bf16 %v1020_v2, %v1019_v1 }
  0x5e   :  { %4146 = vmatprep.mubr.msk.f32.mxu0 %vm5062_vm1, %v5063_v21 }
 0x123   :  { %v4106_v5 = vpop.f32.mrb[0].mxu0 }
 0x124   :  { %v210_v6 = vpop.f32.mrb[1].mxu0  ;;  %v216_v27 = vadd.f32 %v4106_v5, %v5216_v4 }
 0x125   :  { %v211_v7 = vadd.f32 %v5216_v4, %v210_v6 }
 0x127   :  { %4704 = vtanh.f32 %v211_v7  ;;  %v3823_v9 = vmul.f32 -1.442695, %v211_v7 }
 0x128   :  { %v4109_v47 = vpop.f32.mrb[2].mxu0 }
 0x129   :  { %4706 = vpow2.f32 %v3823_v9  ;;  %v220_v48 = vpop.f32.mrb[3].mxu0 }
 0x12a   :  { %v221_v50 = vadd.f32 %v5216_v4, %v220_v48 }
 0x131   :  { %v4705_v8 = vpop.eup %4704 }
 0x132   :  { %270 = vrot.lane.b32.xlu0 %v4705_v8, %s5060_s1  ;;  %v5303_v8 = vpop.f32.mrb[4].mxu0 }
 0x133   :  { %v4707_v10 = vpop.eup %4706  ;;  %v230_v9 = vpop.f32.mrb[5].mxu0 }
 0x134   :  { %v265_v11 = vadd.f32 1.0, %v4707_v10  ;;  %v5305_v10 = vpop.f32.mrb[6].mxu0 }
 0x135   :  { %v246_v1 = vadd.f32 %v5305_v10, %v5216_v4 }
 0x136   :  { %4708 = vrcp.f32 %v265_v11  ;;  %v5307_v11 = vpop.f32.mrb[7].mxu0 }
 0x140   :  { %v4709_v12 = vpop.eup %4708 }
 0x1a4   :  { %v271_v13 = vpop.permute.xlu0 %270 }
 0x1a5   :  { %v273_v14 = vmul.f32 %v4709_v12, %v271_v13  ;;  %v226_v13 = vadd.f32 %v4109_v47, %v5216_v4 }
 0x1a7   :  { %4710 = vtanh.f32 %v273_v14 }
 0x1b1   :  { %v4711_v23 = vpop.eup %4710 }
 0x1b2   :  { %276 = vrot.lane.b32.xlu0 %v4711_v23, %s5064_s2 }
 0x1b6   :  { %368 = vrot.lane.b32.xlu0 %v273_v14, %s5060_s1 }
 0x224   :  { %v277_v24 = vpop.permute.xlu0 %276 }
 0x225   :  { %v279_v25 = vmul.f32 %v4709_v12, %v277_v24 }
 0x227   :  { %281 = vrot.lane.b32.xlu1 %v279_v25, %s5064_s2 }
 0x228   :  { %v369_v38 = vpop.permute.xlu0 %368 }
 0x299   :  { %v282_v26 = vpop.permute.xlu1 %281 }
 0x29a   :  { %285 = vst.msk [vmem:[#allocation2] sm:$0xff] %vm284_vm2, %v282_v26  ;;  %4125 = vmatmul.mubr.msk.f32.vlgmr.msra.gmra.mrb[0].mxu1 %vm284_vm2, %v282_v26 }
 0x29b   :  { %4503 = vmatpush3.bf16.msra.mxu1 %v5230_v19  ;;  %4135 = vmatprep.mubr.msk.f32.mxu1 %vm5062_vm1, %v5063_v21 }
 0x29c   :  { %4504 = vmatprep.subr.bf16.mxu1 %v5061_v18 }
 0x29f   :  { %4506 = vmatpush3.bf16.msra.mxu1 %v5239_v22 }
 0x2a0   :  { %4513 = vmatprep.subr.bf16.mxu1 %v5061_v18 }
 0x36d   :  { %v355_v28 = vpop.f32.mrb[0].mxu1 }
 0x36e   :  { %v359_v29 = vadd.f32 %v355_v28, %v216_v27  ;;  %v4126_v30 = vpop.f32.mrb[1].mxu1 }
 0x370   :  { %4712 = vtanh.f32 %v359_v29  ;;  %v3825_v32 = vmul.f32 -1.442695, %v359_v29 }
 0x372   :  { %4714 = vpow2.f32 %v3825_v32 }
 0x37a   :  { %v4713_v31 = vpop.eup %4712 }
 0x37b   :  { %373 = vrot.lane.b32.xlu1 %v4713_v31, %s5060_s1 }
 0x37c   :  { %v4715_v33 = vpop.eup %4714 }
 0x37d   :  { %v363_v34 = vadd.f32 1.0, %v4715_v33 }
 0x37f   :  { %4716 = vrcp.f32 %v363_v34 }
 0x389   :  { %v4717_v35 = vpop.eup %4716 }
 0x38a   :  { %v371_v39 = vmul.f32 %v4717_v35, %v369_v38 }
 0x3ed   :  { %v374_v36 = vpop.permute.xlu1 %373 }
 0x3ee   :  { %v376_v37 = vmul.f32 %v4717_v35, %v374_v36 }
 0x3f0   :  { %378 = vrot.lane.b32.xlu1 %v376_v37, %s5060_s1 }
 0x462   :  { %v379_v40 = vpop.permute.xlu1 %378 }
 0x463   :  { %v381_v41 = vadd.f32 %v379_v40, %v371_v39 }
 0x465   :  { %4718 = vtanh.f32 %v381_v41 }
 0x46f   :  { %v4719_v44 = vpop.eup %4718 }
 0x470   :  { %384 = vrot.lane.b32.xlu0 %v4719_v44, %s5060_s1 }
 0x4e2   :  { %v385_v45 = vpop.permute.xlu0 %384 }
 0x4e3   :  { %v387_v46 = vmul.f32 %v4717_v35, %v385_v45  ;;  %v231_v35 = vadd.f32 %v5216_v4, %v230_v9  ;;  %v1022_v9 = vld [vmem:[%s5851_s4 + $0x18] sm:$0xff] }
 0x4e5   :  { %389 = vrot.lane.b32.xlu1 %v387_v46, %s5064_s2 }
 0x557   :  { %v390_v49 = vpop.permute.xlu1 %389 }
 0x558   :  { %392 = vst.msk [vmem:[#allocation2 + $0x8] sm:$0xff] %vm284_vm2, %v390_v49  ;;  %4136 = vmatmul.mubr.msk.f32.vlgmr.msra.gmra.mrb[2].mxu1 %vm284_vm2, %v390_v49 }
 0x559   :  { %4515 = vmatpush3.bf16.msra.mxu1 %v5230_v19  ;;  %4157 = vmatprep.mubr.msk.f32.mxu1 %vm5062_vm1, %v5063_v21 }
 0x55a   :  { %4516 = vmatprep.subr.bf16.mxu1 %v5061_v18 }
 0x55d   :  { %4518 = vmatpush3.bf16.msra.mxu1 %v5239_v22 }
 0x55e   :  { %4525 = vmatprep.subr.bf16.mxu1 %v5061_v18 }
 0x62b   :  { %v462_v51 = vpop.f32.mrb[2].mxu1 }
 0x62c   :  { %v466_v52 = vadd.f32 %v462_v51, %v221_v50  ;;  %v4137_v53 = vpop.f32.mrb[3].mxu1 }
 0x62d   :  { %v236_v53 = vadd.f32 %v5303_v8, %v5216_v4  ;;  %v1021_v8 = vld [vmem:[%s5851_s4 + $0x10] sm:$0xff] }
 0x62e   :  { %4720 = vtanh.f32 %v466_v52  ;;  %v3827_v55 = vmul.f32 -1.442695, %v466_v52 }
 0x630   :  { %4722 = vpow2.f32 %v3827_v55 }
 0x638   :  { %v4721_v54 = vpop.eup %4720 }
 0x639   :  { %476 = vrot.lane.b32.xlu0 %v4721_v54, %s5060_s1 }
 0x63a   :  { %v4723_v56 = vpop.eup %4722 }
 0x63b   :  { %v470_v57 = vadd.f32 1.0, %v4723_v56 }
 0x63d   :  { %4724 = vrcp.f32 %v470_v57 }
 0x647   :  { %v4725_v58 = vpop.eup %4724 }
 0x648   :  { %v474_v61 = vmul.f32 %v4725_v58, %v381_v41 }
 0x6ab   :  { %v477_v59 = vpop.permute.xlu0 %476 }
 0x6ac   :  { %v479_v60 = vmul.f32 %v4725_v58, %v477_v59 }
 0x6ae   :  { %481 = vrot.lane.b32.xlu1 %v479_v60, %s5060_s1 }
 0x720   :  { %v482_v62 = vpop.permute.xlu1 %481 }
 0x721   :  { %v484_v63 = vadd.f32 %v482_v62, %v474_v61 }
 0x723   :  { %4726 = vtanh.f32 %v484_v63 }
 0x72d   :  { %v4727_v5 = vpop.eup %4726 }
 0x72e   :  { %487 = vrot.lane.b32.xlu0 %v4727_v5, %s5060_s1 }
 0x7a0   :  { %v488_v6 = vpop.permute.xlu0 %487 }
 0x7a1   :  { %v490_v7 = vmul.f32 %v4725_v58, %v488_v6 }
 0x7a3   :  { %492 = vrot.lane.b32.xlu1 %v490_v7, %s5064_s2 }
 0x815   :  { %v493_v12 = vpop.permute.xlu1 %492 }
 0x816   :  { %495 = vst.msk [vmem:[#allocation2 + $0x10] sm:$0xff] %vm284_vm2, %v493_v12  ;;  %4147 = vmatmul.mubr.msk.f32.vlgmr.msra.gmra.mrb[8].mxu0 %vm284_vm2, %v493_v12  ;;  %v4541_v12 = vpack.c.bf16 %v1022_v9, %v1021_v8 }
 0x817   :  { %4521 = vmatpush3.bf16.msra.mxu0 %v5230_v19  ;;  %4168 = vmatprep.mubr.msk.f32.mxu0 %vm5062_vm1, %v5063_v21 }
 0x818   :  { %4522 = vmatprep.subr.bf16.mxu0 %v5061_v18 }
 0x81b   :  { %4524 = vmatpush3.bf16.msra.mxu0 %v5239_v22 }
 0x81c   :  { %4531 = vmatprep.subr.bf16.mxu0 %v5061_v18 }
 0x8e9   :  { %v565_v14 = vpop.f32.mrb[8].mxu0 }
 0x8ea   :  { %v569_v15 = vadd.f32 %v565_v14, %v226_v13  ;;  %v4148_v16 = vpop.f32.mrb[9].mxu0  ;;  %v1011_v14 = vld [vmem:[#allocation2] sm:$0xff] }
 0x8eb   :  { %v1013_v16 = vld [vmem:[#allocation2 + $0x10] sm:$0xff] }
 0x8ec   :  { %4728 = vtanh.f32 %v569_v15  ;;  %v3829_v20 = vmul.f32 -1.442695, %v569_v15  ;;  %v1012_v15 = vld [vmem:[#allocation2 + $0x8] sm:$0xff] }
 0x8ee   :  { %4730 = vpow2.f32 %v3829_v20 }
 0x8f6   :  { %v4729_v17 = vpop.eup %4728 }
 0x8f7   :  { %579 = vrot.lane.b32.xlu0 %v4729_v17, %s5060_s1 }
 0x8f8   :  { %v4731_v23 = vpop.eup %4730 }
 0x8f9   :  { %v573_v24 = vadd.f32 1.0, %v4731_v23 }
 0x8fb   :  { %4732 = vrcp.f32 %v573_v24  ;;  %v241_v24 = vadd.f32 %v5216_v4, %v5307_v11 }
 0x905   :  { %v4733_v25 = vpop.eup %4732 }
 0x906   :  { %v577_v28 = vmul.f32 %v4733_v25, %v484_v63 }
 0x969   :  { %v580_v26 = vpop.permute.xlu0 %579 }
 0x96a   :  { %v582_v27 = vmul.f32 %v4733_v25, %v580_v26 }
 0x96c   :  { %584 = vrot.lane.b32.xlu1 %v582_v27, %s5060_s1 }
 0x9de   :  { %v585_v29 = vpop.permute.xlu1 %584 }
 0x9df   :  { %v587_v30 = vadd.f32 %v585_v29, %v577_v28  ;;  %v5377_v28 = vld [vmem:[%s5853_s6] ss:$0 sm:$0xff] }
 0x9e1   :  { %4734 = vtanh.f32 %v587_v30 }
 0x9eb   :  { %v4735_v31 = vpop.eup %4734 }
 0x9ec   :  { %590 = vrot.lane.b32.xlu0 %v4735_v31, %s5060_s1 }
 0xa5e   :  { %v591_v32 = vpop.permute.xlu0 %590 }
 0xa5f   :  { %v593_v33 = vmul.f32 %v4733_v25, %v591_v32 }
 0xa61   :  { %595 = vrot.lane.b32.xlu1 %v593_v33, %s5064_s2 }
 0xad3   :  { %v596_v34 = vpop.permute.xlu1 %595 }
 0xad4   :  { %598 = vst.msk [vmem:[#allocation2 + $0x18] sm:$0xff] %vm284_vm2, %v596_v34  ;;  %4158 = vmatmul.mubr.msk.f32.vlgmr.msra.gmra.mrb[4].mxu1 %vm284_vm2, %v596_v34 }
 0xad5   :  { %4527 = vmatpush3.bf16.msra.mxu1 %v5230_v19  ;;  %4179 = vmatprep.mubr.msk.f32.mxu1 %vm5062_vm1, %v5063_v21 }
 0xad6   :  { %4528 = vmatprep.subr.bf16.mxu1 %v5061_v18 }
 0xad9   :  { %4530 = vmatpush3.bf16.msra.mxu1 %v5239_v22 }
 0xada   :  { %4538 = vmatprep.subr.bf16.mxu1 %v4537_v3 }
 0xadb   :  { %v1014_v17 = vld [vmem:[#allocation2 + $0x18] sm:$0xff] }
 0xba7   :  { %v668_v36 = vpop.f32.mrb[4].mxu1 }
 0xba8   :  { %v672_v37 = vadd.f32 %v668_v36, %v231_v35  ;;  %v4159_v38 = vpop.f32.mrb[5].mxu1 }
 0xbaa   :  { %4736 = vtanh.f32 %v672_v37  ;;  %v3831_v40 = vmul.f32 -1.442695, %v672_v37 }
 0xbac   :  { %4738 = vpow2.f32 %v3831_v40 }
 0xbb4   :  { %v4737_v39 = vpop.eup %4736 }
 0xbb5   :  { %682 = vrot.lane.b32.xlu0 %v4737_v39, %s5060_s1 }
 0xbb6   :  { %v4739_v41 = vpop.eup %4738 }
 0xbb7   :  { %v676_v42 = vadd.f32 1.0, %v4739_v41 }
 0xbb9   :  { %4740 = vrcp.f32 %v676_v42 }
 0xbc3   :  { %v4741_v43 = vpop.eup %4740 }
 0xbc4   :  { %v680_v46 = vmul.f32 %v4741_v43, %v587_v30 }
 0xc27   :  { %v683_v44 = vpop.permute.xlu0 %682 }
 0xc28   :  { %v685_v45 = vmul.f32 %v4741_v43, %v683_v44 }
 0xc2a   :  { %687 = vrot.lane.b32.xlu1 %v685_v45, %s5060_s1 }
 0xc9c   :  { %v688_v47 = vpop.permute.xlu1 %687 }
 0xc9d   :  { %v690_v48 = vadd.f32 %v688_v47, %v680_v46 }
 0xc9f   :  { %4742 = vtanh.f32 %v690_v48 }
 0xca9   :  { %v4743_v49 = vpop.eup %4742 }
 0xcaa   :  { %693 = vrot.lane.b32.xlu0 %v4743_v49, %s5060_s1 }
 0xd1c   :  { %v694_v50 = vpop.permute.xlu0 %693 }
 0xd1d   :  { %v696_v51 = vmul.f32 %v4741_v43, %v694_v50 }
 0xd1f   :  { %698 = vrot.lane.b32.xlu1 %v696_v51, %s5064_s2 }
 0xd91   :  { %v699_v52 = vpop.permute.xlu1 %698 }
 0xd92   :  { %701 = vst.msk [vmem:[#allocation2 + $0x20] sm:$0xff] %vm284_vm2, %v699_v52  ;;  %4169 = vmatmul.mubr.msk.f32.vlgmr.msra.gmra.mrb[10].mxu0 %vm284_vm2, %v699_v52 }
 0xd93   :  { %4533 = vmatpush3.bf16.msra.mxu0 %v5230_v19  ;;  %4190 = vmatprep.mubr.msk.f32.mxu0 %vm5062_vm1, %v5063_v21 }
 0xd94   :  { %4534 = vmatprep.subr.bf16.mxu0 %v5061_v18 }
 0xd97   :  { %4536 = vmatpush3.bf16.msra.mxu0 %v5239_v22 }
 0xd98   :  { %4545 = vmatprep.subr.bf16.mxu0 %v5061_v18 }
 0xd99   :  { %v1015_v20 = vld [vmem:[#allocation2 + $0x20] sm:$0xff] }
 0xe65   :  { %v771_v54 = vpop.f32.mrb[10].mxu0 }
 0xe66   :  { %v775_v55 = vadd.f32 %v771_v54, %v236_v53  ;;  %v4170_v56 = vpop.f32.mrb[11].mxu0 }
 0xe67   :  { %v1167_v56 = vld [vmem:[%s5852_s5] sm:$0xff] }
 0xe68   :  { %4744 = vtanh.f32 %v775_v55  ;;  %v3833_v19 = vmul.f32 -1.442695, %v775_v55 }
 0xe6a   :  { %4746 = vpow2.f32 %v3833_v19 }
 0xe72   :  { %v4745_v57 = vpop.eup %4744 }
 0xe73   :  { %785 = vrot.lane.b32.xlu0 %v4745_v57, %s5060_s1  ;;  %v1168_v57 = vld [vmem:[%s5852_s5 + $0x8] sm:$0xff] }
 0xe74   :  { %v4747_v58 = vpop.eup %4746  ;;  %v5407_v19 = vpack.c.bf16 %v1168_v57, %v1167_v56 }
 0xe75   :  { %v779_v59 = vadd.f32 1.0, %v4747_v58  ;;  %v1169_v58 = vld [vmem:[%s5852_s5 + $0x10] sm:$0xff] }
 0xe77   :  { %4748 = vrcp.f32 %v779_v59  ;;  %v1170_v59 = vld [vmem:[%s5852_s5 + $0x18] sm:$0xff] }
 0xe81   :  { %v4749_v60 = vpop.eup %4748 }
 0xe82   :  { %v783_v62 = vmul.f32 %v4749_v60, %v690_v48 }
 0xee5   :  { %v786_v61 = vpop.permute.xlu0 %785 }
 0xee6   :  { %v788_v22 = vmul.f32 %v4749_v60, %v786_v61 }
 0xee8   :  { %790 = vrot.lane.b32.xlu1 %v788_v22, %s5060_s1 }
 0xf5a   :  { %v791_v63 = vpop.permute.xlu1 %790 }
 0xf5b   :  { %v5346_v0 = vadd.f32 %v791_v63, %v783_v62 }
 0xf5d   :  { %4750 = vtanh.f32 %v5346_v0 }
 0xf67   :  { %v4751_v5 = vpop.eup %4750 }
 0xf68   :  { %796 = vrot.lane.b32.xlu0 %v4751_v5, %s5060_s1 }
 0xfda   :  { %v797_v6 = vpop.permute.xlu0 %796 }
 0xfdb   :  { %v799_v7 = vmul.f32 %v4749_v60, %v797_v6  ;;  %v5417_v60 = vpack.c.bf16 %v1170_v59, %v1169_v58 }
 0xfdd   :  { %801 = vrot.lane.b32.xlu1 %v799_v7, %s5064_s2 }
0x104f   :  { %v802_v13 = vpop.permute.xlu1 %801 }
0x1050   :  { %804 = vst.msk [vmem:[#allocation2 + $0x28] sm:$0xff] %vm284_vm2, %v802_v13  ;;  %4180 = vmatmul.mubr.msk.f32.vlgmr.msra.gmra.mrb[6].mxu1 %vm284_vm2, %v802_v13 }
0x1051   :  { %4540 = vmatpush3.bf16.msra.mxu1 %v4537_v3  ;;  %4201 = vmatprep.mubr.msk.f32.mxu1 %vm284_vm2, %v1011_v14 }
0x1052   :  { %4542 = vmatprep.subr.bf16.mxu1 %v4541_v12 }
0x1055   :  { %4544 = vmatpush3.bf16.msra.mxu1 %v4541_v12 }
0x1056   :  { %4557 = vmatprep.subr.bf16.mxu1 %v5061_v18 }
0x1057   :  { %v1016_v23 = vld [vmem:[#allocation2 + $0x28] sm:$0xff] }
0x1058   :  { %4202 = vmatmul.mubr.msk.f32.vlgmr.msra.gmra.mrb[8].mxu1 %vm284_vm2, %v1012_v15 }
0x1059   :  { %4204 = vmatprep.mubr.msk.f32.mxu1 %vm284_vm2, %v1013_v16  ;;  %4559 = vmatpush3.bf16.msra.mxu1 %v5407_v19 }
0x105a   :  { %4560 = vmatprep.subr.bf16.mxu1 %v5061_v18 }
0x105c   :  { %4205 = vmatmul.mubr.msk.f32.gmra.mrb[10].mxu1 %vm284_vm2, %v1014_v17 }
0x105d   :  { %4207 = vmatprep.mubr.msk.f32.mxu1 %vm284_vm2, %v1015_v20  ;;  %4562 = vmatpush3.bf16.msra.mxu1 %v5417_v60 }
0x105e   :  { %4569 = vmatprep.subr.bf16.mxu1 %v5061_v18 }
0x1060   :  { %4208 = vmatmul.mubr.msk.f32.gmra.mrb[12].mxu1 %vm284_vm2, %v1016_v23 }
0x1123   :  { %v874_v25 = vpop.f32.mrb[6].mxu1 }
0x1124   :  { %v878_v26 = vadd.f32 %v874_v25, %v241_v24  ;;  %v4181_v27 = vpop.f32.mrb[7].mxu1 }
0x1126   :  { %4752 = vtanh.f32 %v878_v26  ;;  %v3835_v37 = vmul.f32 -1.442695, %v878_v26 }
0x112b   :  { %v5379_v29 = vpop.f32.mrb[8].mxu1 }
0x112c   :  { %v1120_v30 = vpop.f32.mrb[9].mxu1  ;;  %v1126_v6 = vadd.f32 %v5379_v29, %v5377_v28 }
0x112d   :  { %v1121_v31 = vadd.f32 %v5377_v28, %v1120_v30 }
0x112f   :  { %4754 = vtanh.f32 %v1121_v31  ;;  %v5382_v32 = vpop.f32.mrb[10].mxu1  ;;  %v3847_v38 = vmul.f32 -1.442695, %v1121_v31 }
0x1130   :  { %v4753_v33 = vpop.eup %4752  ;;  %v5384_v34 = vpop.f32.mrb[11].mxu1  ;;  %4756 = vpow2.f32 %v3835_v37 }
0x1131   :  { %888 = vrot.lane.b32.xlu0 %v4753_v33, %s5060_s1  ;;  %4758 = vpow2.f32 %v3847_v38 }
0x1133   :  { %v5387_v11 = vpop.f32.mrb[12].mxu1 }
0x1134   :  { %v5389_v35 = vpop.f32.mrb[13].mxu1 }
0x1139   :  { %v4755_v36 = vpop.eup %4754 }
0x113a   :  { %1180 = vrot.lane.b32.xlu0 %v4755_v36, %s5060_s1  ;;  %v4757_v39 = vpop.eup %4756 }
0x113b   :  { %v882_v40 = vadd.f32 1.0, %v4757_v39  ;;  %v4759_v41 = vpop.eup %4758 }
0x113c   :  { %v1175_v42 = vadd.f32 1.0, %v4759_v41 }
0x113d   :  { %4760 = vrcp.f32 %v882_v40 }
0x113e   :  { %4762 = vrcp.f32 %v1175_v42 }
0x1147   :  { %v4761_v43 = vpop.eup %4760 }
0x1148   :  { %v4763_v46 = vpop.eup %4762  ;;  %v886_v50 = vmul.f32 %v4761_v43, %v5346_v0 }
0x11a3   :  { %v889_v44 = vpop.permute.xlu0 %888 }
0x11a4   :  { %v891_v45 = vmul.f32 %v4761_v43, %v889_v44 }
0x11a6   :  { %893 = vrot.lane.b32.xlu1 %v891_v45, %s5060_s1 }
0x11ac   :  { %v1181_v47 = vpop.permute.xlu0 %1180 }
0x11ad   :  { %v1183_v48 = vmul.f32 %v4763_v46, %v1181_v47 }
0x11af   :  { %4764 = vtanh.f32 %v1183_v48 }
0x11b9   :  { %v4765_v49 = vpop.eup %4764 }
0x11ba   :  { %1186 = vrot.lane.b32.xlu0 %v4765_v49, %s5064_s2 }
0x1218   :  { %v894_v51 = vpop.permute.xlu1 %893 }
0x1219   :  { %v5395_v52 = vadd.f32 %v894_v51, %v886_v50 }
0x121b   :  { %4766 = vtanh.f32 %v5395_v52 }
0x1225   :  { %v4767_v53 = vpop.eup %4766 }
0x1226   :  { %899 = vrot.lane.b32.xlu1 %v4767_v53, %s5060_s1 }
0x122c   :  { %v1187_v54 = vpop.permute.xlu0 %1186 }
0x122d   :  { %v1189_v55 = vmul.f32 %v4763_v46, %v1187_v54  ;;  %v1131_v46 = vadd.f32 %v5377_v28, %v5384_v34 }
0x122f   :  { %1191 = vrot.lane.b32.xlu0 %v1189_v55, %s5064_s2 }
0x1233   :  { %1277 = vrot.lane.b32.xlu0 %v1183_v48, %s5060_s1 }
0x1298   :  { %v900_v61 = vpop.permute.xlu1 %899 }
0x1299   :  { %v902_v22 = vmul.f32 %v4761_v43, %v900_v61 }
0x129b   :  { %904 = vrot.lane.b32.xlu1 %v902_v22, %s5064_s2 }
0x12a1   :  { %v1192_v62 = vpop.permute.xlu0 %1191 }
0x12a2   :  { %1194 = vst.msk [vmem:[#allocation2] sm:$0xff] %vm284_vm2, %v1192_v62 }
0x12a5   :  { %v1278_v17 = vpop.permute.xlu0 %1277 }
0x130d   :  { %v905_v63 = vpop.permute.xlu1 %904 }
0x130e   :  { %907 = vst.msk [vmem:[#allocation2 + $0x30] sm:$0xff] %vm284_vm2, %v905_v63  ;;  %4191 = vmatmul.mubr.msk.f32.vlgmr.msra.gmra.mrb[12].mxu0 %vm284_vm2, %v905_v63 }
0x130f   :  { %4547 = vmatpush3.bf16.msra.mxu0 %v5407_v19  ;;  %4221 = vmatprep.mubr.msk.f32.mxu0 %vm5062_vm1, %v5063_v21 }
0x1310   :  { %4548 = vmatprep.subr.bf16.mxu0 %v5061_v18 }
0x1313   :  { %4550 = vmatpush3.bf16.msra.mxu0 %v5417_v60 }
0x1314   :  { %4551 = vmatprep.subr.bf16.mxu0 %v5061_v18 }
0x1315   :  { %v1017_v0 = vld [vmem:[#allocation2 + $0x30] sm:$0xff] }
0x1316   :  { %4222 = vmatmul.mubr.msk.f32.vlgmr.msra.gmra.mrb[14].mxu0 %vm284_vm2, %v1192_v62  ;;  %4210 = vmatprep.mubr.msk.f32.mxu1 %vm284_vm2, %v1017_v0 }
0x1317   :  { %4553 = vmatpush3.bf16.msra.mxu0 %v5407_v19  ;;  %4232 = vmatprep.mubr.msk.f32.mxu0 %vm5062_vm1, %v5063_v21 }
0x1318   :  { %4554 = vmatprep.subr.bf16.mxu0 %v5061_v18 }
0x131b   :  { %4556 = vmatpush3.bf16.msra.mxu0 %v5417_v60 }
0x131c   :  { %4563 = vmatprep.subr.bf16.mxu0 %v5061_v18 }
0x13e1   :  { %v977_v2 = vpop.f32.mrb[12].mxu0 }
0x13e2   :  { %v981_v3 = vadd.f32 %v977_v2, %v246_v1  ;;  %v4192_v5 = vpop.f32.mrb[13].mxu0 }
0x13e4   :  { %v3837_v27 = vmul.f32 -1.442695, %v981_v3 }
0x13e9   :  { %v1264_v7 = vpop.f32.mrb[14].mxu0 }
0x13ea   :  { %v1268_v8 = vadd.f32 %v1264_v7, %v1126_v6  ;;  %v4223_v9 = vpop.f32.mrb[15].mxu0 }
0x13ec   :  { %4768 = vtanh.f32 %v1268_v8  ;;  %v3849_v13 = vmul.f32 -1.442695, %v1268_v8 }
0x13ee   :  { %4770 = vpow2.f32 %v3849_v13 }
0x13f6   :  { %v4769_v12 = vpop.eup %4768 }
0x13f7   :  { %1282 = vrot.lane.b32.xlu1 %v4769_v12, %s5060_s1 }
0x13f8   :  { %v4771_v14 = vpop.eup %4770 }
0x13f9   :  { %v1272_v15 = vadd.f32 1.0, %v4771_v14 }
0x13fb   :  { %4772 = vrcp.f32 %v1272_v15 }
0x1405   :  { %v4773_v16 = vpop.eup %4772 }
0x1406   :  { %v1280_v20 = vmul.f32 %v4773_v16, %v1278_v17 }
0x1469   :  { %v1283_v4 = vpop.permute.xlu1 %1282 }
0x146a   :  { %v1285_v10 = vmul.f32 %v4773_v16, %v1283_v4 }
0x146c   :  { %1287 = vrot.lane.b32.xlu1 %v1285_v10, %s5060_s1 }
0x14de   :  { %v1288_v23 = vpop.permute.xlu1 %1287 }
0x14df   :  { %v1290_v24 = vadd.f32 %v1288_v23, %v1280_v20 }
0x14e1   :  { %4774 = vtanh.f32 %v1290_v24 }
0x14e2   :  { %4776 = vtanh.f32 %v981_v3  ;;  %v1136_v3 = vadd.f32 %v5382_v32, %v5377_v28 }
0x14e3   :  { %4778 = vpow2.f32 %v3837_v27 }
0x14eb   :  { %v4775_v25 = vpop.eup %4774 }
0x14ec   :  { %1293 = vrot.lane.b32.xlu0 %v4775_v25, %s5060_s1  ;;  %v4777_v26 = vpop.eup %4776  ;;  %v1141_v25 = vadd.f32 %v5377_v28, %v5389_v35 }
0x14ed   :  { %v4779_v29 = vpop.eup %4778 }
0x14ee   :  { %v985_v30 = vadd.f32 1.0, %v4779_v29 }
0x14f0   :  { %991 = vrot.lane.b32.xlu0 %v4777_v26, %s5060_s1  ;;  %4780 = vrcp.f32 %v985_v30 }
0x14fa   :  { %v4781_v36 = vpop.eup %4780 }
0x14fb   :  { %v989_v40 = vmul.f32 %v4781_v36, %v5395_v52 }
0x155e   :  { %v1294_v31 = vpop.permute.xlu0 %1293 }
0x155f   :  { %v1296_v33 = vmul.f32 %v4773_v16, %v1294_v31 }
0x1561   :  { %1298 = vrot.lane.b32.xlu1 %v1296_v33, %s5064_s2 }
0x1562   :  { %v992_v37 = vpop.permute.xlu0 %991 }
0x1563   :  { %v994_v38 = vmul.f32 %v4781_v36, %v992_v37 }
0x1565   :  { %996 = vrot.lane.b32.xlu0 %v994_v38, %s5060_s1 }
0x15d3   :  { %v1299_v39 = vpop.permute.xlu1 %1298 }
0x15d4   :  { %1301 = vst.msk [vmem:[#allocation2 + $0x8] sm:$0xff] %vm284_vm2, %v1299_v39  ;;  %4233 = vmatmul.mubr.msk.f32.vlgmr.msra.gmra.mrb[16].mxu0 %vm284_vm2, %v1299_v39 }
0x15d5   :  { %4565 = vmatpush3.bf16.msra.mxu0 %v5407_v19  ;;  %4254 = vmatprep.mubr.msk.f32.mxu0 %vm5062_vm1, %v5063_v21 }
0x15d6   :  { %4566 = vmatprep.subr.bf16.mxu0 %v5061_v18 }
0x15d7   :  { %v997_v41 = vpop.permute.xlu0 %996 }
0x15d8   :  { %v999_v42 = vadd.f32 %v997_v41, %v989_v40 }
0x15d9   :  { %4568 = vmatpush3.bf16.msra.mxu0 %v5417_v60 }
0x15da   :  { %4782 = vtanh.f32 %v999_v42  ;;  %4575 = vmatprep.subr.bf16.mxu0 %v5061_v18 }
0x15e4   :  { %v4783_v43 = vpop.eup %4782 }
0x15e5   :  { %1002 = vrot.lane.b32.xlu0 %v4783_v43, %s5060_s1 }
0x1657   :  { %v1003_v44 = vpop.permute.xlu0 %1002 }
0x1658   :  { %v1005_v45 = vmul.f32 %v4781_v36, %v1003_v44 }
0x165a   :  { %1007 = vrot.lane.b32.xlu0 %v1005_v45, %s5064_s2 }
0x16a7   :  { %v1371_v47 = vpop.f32.mrb[16].mxu0 }
0x16a8   :  { %v1375_v48 = vadd.f32 %v1371_v47, %v1131_v46  ;;  %v4234_v49 = vpop.f32.mrb[17].mxu0  ;;  %v1146_v46 = vadd.f32 %v5387_v11, %v5377_v28 }
0x16aa   :  { %4784 = vtanh.f32 %v1375_v48  ;;  %v3851_v53 = vmul.f32 -1.442695, %v1375_v48 }
0x16ac   :  { %4786 = vpow2.f32 %v3851_v53 }
0x16b4   :  { %v4785_v50 = vpop.eup %4784 }
0x16b5   :  { %1385 = vrot.lane.b32.xlu1 %v4785_v50, %s5060_s1 }
0x16b6   :  { %v4787_v54 = vpop.eup %4786 }
0x16b7   :  { %v1379_v34 = vadd.f32 1.0, %v4787_v54 }
0x16b9   :  { %4788 = vrcp.f32 %v1379_v34 }
0x16c3   :  { %v4789_v55 = vpop.eup %4788 }
0x16c4   :  { %v1383_v58 = vmul.f32 %v4789_v55, %v1290_v24 }
0x16cc   :  { %v1008_v51 = vpop.permute.xlu0 %1007 }
0x16cd   :  { %1010 = vst.msk [vmem:[#allocation2 + $0x38] sm:$0xff] %vm284_vm2, %v1008_v51 }
0x16d4   :  { %v1018_v52 = vld [vmem:[#allocation2 + $0x38] sm:$0xff] }
0x16d5   :  { %4211 = vmatmul.mubr.msk.f32.gmra.mrb[14].mxu1 %vm284_vm2, %v1018_v52 }
0x16d6   :  { %4243 = vmatprep.mubr.msk.f32.mxu1 %vm5062_vm1, %v5063_v21 }
0x1727   :  { %v1386_v56 = vpop.permute.xlu1 %1385 }
0x1728   :  { %v1388_v57 = vmul.f32 %v4789_v55, %v1386_v56  ;;  %v1928_v56 = vld [vmem:[%s5854_s7] sm:$0xff] }
0x172a   :  { %1390 = vrot.lane.b32.xlu1 %v1388_v57, %s5060_s1  ;;  %v1929_v57 = vld [vmem:[%s5854_s7 + $0x8] sm:$0xff] }
0x179c   :  { %v1391_v59 = vpop.permute.xlu1 %1390 }
0x179d   :  { %v1393_v61 = vadd.f32 %v1391_v59, %v1383_v58  ;;  %v4587_v58 = vpack.c.bf16 %v1929_v57, %v1928_v56 }
0x179f   :  { %4790 = vtanh.f32 %v1393_v61 }
0x17a8   :  { %v5468_v22 = vpop.f32.mrb[14].mxu1 }
0x17a9   :  { %v4791_v62 = vpop.eup %4790  ;;  %v5470_v63 = vpop.f32.mrb[15].mxu1  ;;  %v1156_v56 = vadd.f32 %v5468_v22, %v5377_v28 }
0x17aa   :  { %1396 = vrot.lane.b32.xlu1 %v4791_v62, %s5060_s1 }
0x181c   :  { %v1397_v0 = vpop.permute.xlu1 %1396 }
0x181d   :  { %v1399_v1 = vmul.f32 %v4789_v55, %v1397_v0  ;;  %v1930_v0 = vld [vmem:[%s5854_s7 + $0x10] sm:$0xff] }
0x181f   :  { %1401 = vrot.lane.b32.xlu1 %v1399_v1, %s5064_s2  ;;  %v1931_v1 = vld [vmem:[%s5854_s7 + $0x18] sm:$0xff] }
0x1891   :  { %v1402_v2 = vpop.permute.xlu1 %1401 }
0x1892   :  { %1404 = vst.msk [vmem:[#allocation2 + $0x10] sm:$0xff] %vm284_vm2, %v1402_v2  ;;  %4244 = vmatmul.mubr.msk.f32.vlgmr.msra.gmra.mrb[16].mxu1 %vm284_vm2, %v1402_v2  ;;  %v4591_v2 = vpack.c.bf16 %v1931_v1, %v1930_v0 }
0x1893   :  { %4571 = vmatpush3.bf16.msra.mxu1 %v5407_v19  ;;  %4265 = vmatprep.mubr.msk.f32.mxu1 %vm5062_vm1, %v5063_v21 }
0x1894   :  { %4572 = vmatprep.subr.bf16.mxu1 %v5061_v18 }
0x1897   :  { %4574 = vmatpush3.bf16.msra.mxu1 %v5417_v60 }
0x1898   :  { %4581 = vmatprep.subr.bf16.mxu1 %v5061_v18 }
0x1965   :  { %v1474_v5 = vpop.f32.mrb[16].mxu1 }
0x1966   :  { %v1478_v6 = vadd.f32 %v1474_v5, %v1136_v3  ;;  %v4245_v7 = vpop.f32.mrb[17].mxu1  ;;  %v1920_v5 = vld [vmem:[#allocation2] sm:$0xff] }
0x1967   :  { %v1922_v7 = vld [vmem:[#allocation2 + $0x10] sm:$0xff] }
0x1968   :  { %4792 = vtanh.f32 %v1478_v6  ;;  %v3853_v9 = vmul.f32 -1.442695, %v1478_v6  ;;  %v1921_v6 = vld [vmem:[#allocation2 + $0x8] sm:$0xff] }
0x196a   :  { %4794 = vpow2.f32 %v3853_v9 }
0x1972   :  { %v4793_v8 = vpop.eup %4792 }
0x1973   :  { %1488 = vrot.lane.b32.xlu0 %v4793_v8, %s5060_s1 }
0x1974   :  { %v4795_v12 = vpop.eup %4794 }
0x1975   :  { %v1482_v13 = vadd.f32 1.0, %v4795_v12 }
0x1977   :  { %4796 = vrcp.f32 %v1482_v13  ;;  %v1151_v13 = vadd.f32 %v5377_v28, %v5470_v63 }
0x1981   :  { %v4797_v14 = vpop.eup %4796 }
0x1982   :  { %v1486_v4 = vmul.f32 %v4797_v14, %v1393_v61 }
0x19e5   :  { %v1489_v15 = vpop.permute.xlu0 %1488 }
0x19e6   :  { %v1491_v16 = vmul.f32 %v4797_v14, %v1489_v15 }
0x19e8   :  { %1493 = vrot.lane.b32.xlu1 %v1491_v16, %s5060_s1 }
0x1a5a   :  { %v1494_v10 = vpop.permute.xlu1 %1493 }
0x1a5b   :  { %v1496_v32 = vadd.f32 %v1494_v10, %v1486_v4  ;;  %v5541_v4 = vld [vmem:[#allocation5] ss:$0 sm:$0xff] }
0x1a5d   :  { %4798 = vtanh.f32 %v1496_v32 }
0x1a67   :  { %v4799_v17 = vpop.eup %4798 }
0x1a68   :  { %1499 = vrot.lane.b32.xlu0 %v4799_v17, %s5060_s1 }
0x1ada   :  { %v1500_v20 = vpop.permute.xlu0 %1499 }
0x1adb   :  { %v1502_v23 = vmul.f32 %v4797_v14, %v1500_v20 }
0x1add   :  { %1504 = vrot.lane.b32.xlu1 %v1502_v23, %s5064_s2 }
0x1b4f   :  { %v1505_v24 = vpop.permute.xlu1 %1504 }
0x1b50   :  { %1507 = vst.msk [vmem:[#allocation2 + $0x18] sm:$0xff] %vm284_vm2, %v1505_v24  ;;  %4255 = vmatmul.mubr.msk.f32.vlgmr.msra.gmra.mrb[18].mxu0 %vm284_vm2, %v1505_v24 }
0x1b51   :  { %4577 = vmatpush3.bf16.msra.mxu0 %v5407_v19  ;;  %4276 = vmatprep.mubr.msk.f32.mxu0 %vm5062_vm1, %v5063_v21 }
0x1b52   :  { %4578 = vmatprep.subr.bf16.mxu0 %v5061_v18 }
0x1b55   :  { %4580 = vmatpush3.bf16.msra.mxu0 %v5417_v60 }
0x1b56   :  { %4588 = vmatprep.subr.bf16.mxu0 %v4587_v58 }
0x1b57   :  { %v1923_v8 = vld [vmem:[#allocation2 + $0x18] sm:$0xff] }
0x1c23   :  { %v1577_v26 = vpop.f32.mrb[18].mxu0 }
0x1c24   :  { %v1581_v27 = vadd.f32 %v1577_v26, %v1141_v25  ;;  %v4256_v29 = vpop.f32.mrb[19].mxu0 }
0x1c26   :  { %4800 = vtanh.f32 %v1581_v27  ;;  %v3855_v31 = vmul.f32 -1.442695, %v1581_v27 }
0x1c28   :  { %4802 = vpow2.f32 %v3855_v31 }
0x1c30   :  { %v4801_v30 = vpop.eup %4800 }
0x1c31   :  { %1591 = vrot.lane.b32.xlu0 %v4801_v30, %s5060_s1 }
0x1c32   :  { %v4803_v33 = vpop.eup %4802 }
0x1c33   :  { %v1585_v36 = vadd.f32 1.0, %v4803_v33 }
0x1c35   :  { %4804 = vrcp.f32 %v1585_v36 }
0x1c3f   :  { %v4805_v37 = vpop.eup %4804 }
0x1c40   :  { %v1589_v40 = vmul.f32 %v4805_v37, %v1496_v32 }
0x1ca3   :  { %v1592_v38 = vpop.permute.xlu0 %1591 }
0x1ca4   :  { %v1594_v39 = vmul.f32 %v4805_v37, %v1592_v38 }
0x1ca6   :  { %1596 = vrot.lane.b32.xlu1 %v1594_v39, %s5060_s1 }
0x1d18   :  { %v1597_v41 = vpop.permute.xlu1 %1596 }
0x1d19   :  { %v1599_v35 = vadd.f32 %v1597_v41, %v1589_v40 }
0x1d1b   :  { %4806 = vtanh.f32 %v1599_v35 }
0x1d25   :  { %v4807_v42 = vpop.eup %4806 }
0x1d26   :  { %1602 = vrot.lane.b32.xlu0 %v4807_v42, %s5060_s1 }
0x1d98   :  { %v1603_v43 = vpop.permute.xlu0 %1602 }
0x1d99   :  { %v1605_v44 = vmul.f32 %v4805_v37, %v1603_v43 }
0x1d9b   :  { %1607 = vrot.lane.b32.xlu1 %v1605_v44, %s5064_s2 }
0x1e0d   :  { %v1608_v45 = vpop.permute.xlu1 %1607 }
0x1e0e   :  { %1610 = vst.msk [vmem:[#allocation2 + $0x20] sm:$0xff] %vm284_vm2, %v1608_v45  ;;  %4266 = vmatmul.mubr.msk.f32.vlgmr.msra.gmra.mrb[18].mxu1 %vm284_vm2, %v1608_v45 }
0x1e0f   :  { %4583 = vmatpush3.bf16.msra.mxu1 %v5407_v19  ;;  %4287 = vmatprep.mubr.msk.f32.mxu1 %vm5062_vm1, %v5063_v21 }
0x1e10   :  { %4584 = vmatprep.subr.bf16.mxu1 %v5061_v18 }
0x1e13   :  { %4586 = vmatpush3.bf16.msra.mxu1 %v5417_v60 }
0x1e14   :  { %4595 = vmatprep.subr.bf16.mxu1 %v5061_v18 }
0x1e15   :  { %v1924_v9 = vld [vmem:[#allocation2 + $0x20] sm:$0xff] }
0x1ee1   :  { %v1680_v47 = vpop.f32.mrb[18].mxu1 }
0x1ee2   :  { %v1684_v48 = vadd.f32 %v1680_v47, %v1146_v46  ;;  %v4267_v49 = vpop.f32.mrb[19].mxu1 }
0x1ee3   :  { %v2076_v49 = vld [vmem:[%s5855_s8] sm:$0xff] }
0x1ee4   :  { %4808 = vtanh.f32 %v1684_v48  ;;  %v3857_v19 = vmul.f32 -1.442695, %v1684_v48 }
0x1ee6   :  { %4810 = vpow2.f32 %v3857_v19 }
0x1eee   :  { %v4809_v50 = vpop.eup %4808 }
0x1eef   :  { %1694 = vrot.lane.b32.xlu0 %v4809_v50, %s5060_s1  ;;  %v2077_v50 = vld [vmem:[%s5855_s8 + $0x8] sm:$0xff] }
0x1ef0   :  { %v4811_v51 = vpop.eup %4810  ;;  %v5571_v19 = vpack.c.bf16 %v2077_v50, %v2076_v49 }
0x1ef1   :  { %v1688_v52 = vadd.f32 1.0, %v4811_v51  ;;  %v2078_v51 = vld [vmem:[%s5855_s8 + $0x10] sm:$0xff] }
0x1ef3   :  { %4812 = vrcp.f32 %v1688_v52  ;;  %v2079_v52 = vld [vmem:[%s5855_s8 + $0x18] sm:$0xff] }
0x1efd   :  { %v4813_v53 = vpop.eup %4812 }
0x1efe   :  { %v1692_v34 = vmul.f32 %v4813_v53, %v1599_v35 }
0x1f61   :  { %v1695_v54 = vpop.permute.xlu0 %1694 }
0x1f62   :  { %v1697_v60 = vmul.f32 %v4813_v53, %v1695_v54 }
0x1f64   :  { %1699 = vrot.lane.b32.xlu1 %v1697_v60, %s5060_s1 }
0x1fd6   :  { %v1700_v55 = vpop.permute.xlu1 %1699 }
0x1fd7   :  { %v5513_v11 = vadd.f32 %v1700_v55, %v1692_v34 }
0x1fd9   :  { %4814 = vtanh.f32 %v5513_v11 }
0x1fe3   :  { %v4815_v59 = vpop.eup %4814 }
0x1fe4   :  { %1705 = vrot.lane.b32.xlu0 %v4815_v59, %s5060_s1 }
0x2056   :  { %v1706_v61 = vpop.permute.xlu0 %1705 }
0x2057   :  { %v1708_v62 = vmul.f32 %v4813_v53, %v1706_v61  ;;  %v5581_v53 = vpack.c.bf16 %v2079_v52, %v2078_v51 }
0x2059   :  { %1710 = vrot.lane.b32.xlu1 %v1708_v62, %s5064_s2 }
0x20cb   :  { %v1711_v3 = vpop.permute.xlu1 %1710 }
0x20cc   :  { %1713 = vst.msk [vmem:[#allocation2 + $0x28] sm:$0xff] %vm284_vm2, %v1711_v3  ;;  %4277 = vmatmul.mubr.msk.f32.vlgmr.msra.gmra.mrb[20].mxu0 %vm284_vm2, %v1711_v3 }
0x20cd   :  { %4590 = vmatpush3.bf16.msra.mxu0 %v4587_v58  ;;  %4298 = vmatprep.mubr.msk.f32.mxu0 %vm284_vm2, %v1920_v5 }
0x20ce   :  { %4592 = vmatprep.subr.bf16.mxu0 %v4591_v2 }
0x20d1   :  { %4594 = vmatpush3.bf16.msra.mxu0 %v4591_v2 }
0x20d2   :  { %4607 = vmatprep.subr.bf16.mxu0 %v5061_v18 }
0x20d3   :  { %v1925_v12 = vld [vmem:[#allocation2 + $0x28] sm:$0xff] }
0x20d4   :  { %4299 = vmatmul.mubr.msk.f32.vlgmr.msra.gmra.mrb[22].mxu0 %vm284_vm2, %v1921_v6 }
0x20d5   :  { %4301 = vmatprep.mubr.msk.f32.mxu0 %vm284_vm2, %v1922_v7  ;;  %4609 = vmatpush3.bf16.msra.mxu0 %v5571_v19 }
0x20d6   :  { %4610 = vmatprep.subr.bf16.mxu0 %v5061_v18 }
0x20d8   :  { %4302 = vmatmul.mubr.msk.f32.gmra.mrb[24].mxu0 %vm284_vm2, %v1923_v8 }
0x20d9   :  { %4304 = vmatprep.mubr.msk.f32.mxu0 %vm284_vm2, %v1924_v9  ;;  %4612 = vmatpush3.bf16.msra.mxu0 %v5581_v53 }
0x20da   :  { %4619 = vmatprep.subr.bf16.mxu0 %v5061_v18 }
0x20dc   :  { %4305 = vmatmul.mubr.msk.f32.gmra.mrb[26].mxu0 %vm284_vm2, %v1925_v12 }
0x219f   :  { %v1783_v14 = vpop.f32.mrb[20].mxu0 }
0x21a0   :  { %v1787_v15 = vadd.f32 %v1783_v14, %v1151_v13  ;;  %v4278_v16 = vpop.f32.mrb[21].mxu0 }
0x21a2   :  { %4816 = vtanh.f32 %v1787_v15  ;;  %v3859_v27 = vmul.f32 -1.442695, %v1787_v15 }
0x21a7   :  { %v5543_v10 = vpop.f32.mrb[22].mxu0 }
0x21a8   :  { %v2029_v32 = vpop.f32.mrb[23].mxu0  ;;  %v2035_v61 = vadd.f32 %v5543_v10, %v5541_v4 }
0x21a9   :  { %v2030_v17 = vadd.f32 %v5541_v4, %v2029_v32 }
0x21ab   :  { %4818 = vtanh.f32 %v2030_v17  ;;  %v5546_v20 = vpop.f32.mrb[24].mxu0  ;;  %v3871_v29 = vmul.f32 -1.442695, %v2030_v17 }
0x21ac   :  { %v4817_v23 = vpop.eup %4816  ;;  %v5548_v24 = vpop.f32.mrb[25].mxu0  ;;  %4820 = vpow2.f32 %v3859_v27 }
0x21ad   :  { %1797 = vrot.lane.b32.xlu0 %v4817_v23, %s5060_s1  ;;  %4822 = vpow2.f32 %v3871_v29 }
0x21af   :  { %v5551_v63 = vpop.f32.mrb[26].mxu0 }
0x21b0   :  { %v5553_v25 = vpop.f32.mrb[27].mxu0 }
0x21b5   :  { %v4819_v26 = vpop.eup %4818 }
0x21b6   :  { %2089 = vrot.lane.b32.xlu0 %v4819_v26, %s5060_s1  ;;  %v4821_v30 = vpop.eup %4820 }
0x21b7   :  { %v1791_v31 = vadd.f32 1.0, %v4821_v30  ;;  %v4823_v33 = vpop.eup %4822 }
0x21b8   :  { %v2084_v36 = vadd.f32 1.0, %v4823_v33 }
0x21b9   :  { %4824 = vrcp.f32 %v1791_v31 }
0x21ba   :  { %4826 = vrcp.f32 %v2084_v36 }
0x21c3   :  { %v4825_v37 = vpop.eup %4824 }
0x21c4   :  { %v4827_v40 = vpop.eup %4826  ;;  %v1795_v43 = vmul.f32 %v4825_v37, %v5513_v11 }
0x221f   :  { %v1798_v38 = vpop.permute.xlu0 %1797 }
0x2220   :  { %v1800_v39 = vmul.f32 %v4825_v37, %v1798_v38 }
0x2222   :  { %1802 = vrot.lane.b32.xlu1 %v1800_v39, %s5060_s1 }
0x2228   :  { %v2090_v41 = vpop.permute.xlu0 %2089 }
0x2229   :  { %v2092_v35 = vmul.f32 %v4827_v40, %v2090_v41 }
0x222b   :  { %4828 = vtanh.f32 %v2092_v35 }
0x2235   :  { %v4829_v42 = vpop.eup %4828 }
0x2236   :  { %2095 = vrot.lane.b32.xlu0 %v4829_v42, %s5064_s2 }
0x2294   :  { %v1803_v44 = vpop.permute.xlu1 %1802 }
0x2295   :  { %v5559_v45 = vadd.f32 %v1803_v44, %v1795_v43 }
0x2297   :  { %4830 = vtanh.f32 %v5559_v45 }
0x22a1   :  { %v4831_v46 = vpop.eup %4830 }
0x22a2   :  { %1808 = vrot.lane.b32.xlu1 %v4831_v46, %s5060_s1 }
0x22a8   :  { %v2096_v47 = vpop.permute.xlu0 %2095 }
0x22a9   :  { %v2098_v48 = vmul.f32 %v4827_v40, %v2096_v47  ;;  %v2040_v40 = vadd.f32 %v5541_v4, %v5548_v24 }
0x22ab   :  { %2100 = vrot.lane.b32.xlu0 %v2098_v48, %s5064_s2 }
0x22af   :  { %2186 = vrot.lane.b32.xlu0 %v2092_v35, %s5060_s1 }
0x2314   :  { %v1809_v54 = vpop.permute.xlu1 %1808 }
0x2315   :  { %v1811_v60 = vmul.f32 %v4825_v37, %v1809_v54 }
0x2317   :  { %1813 = vrot.lane.b32.xlu1 %v1811_v60, %s5064_s2 }
0x231d   :  { %v2101_v34 = vpop.permute.xlu0 %2100 }
0x231e   :  { %2103 = vst.msk [vmem:[#allocation2] sm:$0xff] %vm284_vm2, %v2101_v34 }
0x2321   :  { %v2187_v8 = vpop.permute.xlu0 %2186 }
0x2389   :  { %v1814_v55 = vpop.permute.xlu1 %1813 }
0x238a   :  { %1816 = vst.msk [vmem:[#allocation2 + $0x30] sm:$0xff] %vm284_vm2, %v1814_v55  ;;  %4288 = vmatmul.mubr.msk.f32.vlgmr.msra.gmra.mrb[20].mxu1 %vm284_vm2, %v1814_v55 }
0x238b   :  { %4597 = vmatpush3.bf16.msra.mxu1 %v5571_v19  ;;  %4318 = vmatprep.mubr.msk.f32.mxu1 %vm5062_vm1, %v5063_v21 }
0x238c   :  { %4598 = vmatprep.subr.bf16.mxu1 %v5061_v18 }
0x238f   :  { %4600 = vmatpush3.bf16.msra.mxu1 %v5581_v53 }
0x2390   :  { %4601 = vmatprep.subr.bf16.mxu1 %v5061_v18 }
0x2391   :  { %v1926_v11 = vld [vmem:[#allocation2 + $0x30] sm:$0xff] }
0x2392   :  { %4319 = vmatmul.mubr.msk.f32.vlgmr.msra.gmra.mrb[22].mxu1 %vm284_vm2, %v2101_v34  ;;  %4307 = vmatprep.mubr.msk.f32.mxu0 %vm284_vm2, %v1926_v11 }
0x2393   :  { %4603 = vmatpush3.bf16.msra.mxu1 %v5571_v19  ;;  %4329 = vmatprep.mubr.msk.f32.mxu1 %vm5062_vm1, %v5063_v21 }
0x2394   :  { %4604 = vmatprep.subr.bf16.mxu1 %v5061_v18 }
0x2397   :  { %4606 = vmatpush3.bf16.msra.mxu1 %v5581_v53 }
0x2398   :  { %4613 = vmatprep.subr.bf16.mxu1 %v5061_v18 }
0x245d   :  { %v1886_v57 = vpop.f32.mrb[20].mxu1 }
0x245e   :  { %v1890_v58 = vadd.f32 %v1886_v57, %v1156_v56  ;;  %v4289_v59 = vpop.f32.mrb[21].mxu1 }
0x2460   :  { %v3861_v16 = vmul.f32 -1.442695, %v1890_v58 }
0x2465   :  { %v2173_v62 = vpop.f32.mrb[22].mxu1 }
0x2466   :  { %v2177_v0 = vadd.f32 %v2173_v62, %v2035_v61  ;;  %v4320_v1 = vpop.f32.mrb[23].mxu1 }
0x2468   :  { %4832 = vtanh.f32 %v2177_v0  ;;  %v3873_v3 = vmul.f32 -1.442695, %v2177_v0 }
0x246a   :  { %4834 = vpow2.f32 %v3873_v3 }
0x2472   :  { %v4833_v2 = vpop.eup %4832 }
0x2473   :  { %2191 = vrot.lane.b32.xlu1 %v4833_v2, %s5060_s1 }
0x2474   :  { %v4835_v5 = vpop.eup %4834 }
0x2475   :  { %v2181_v6 = vadd.f32 1.0, %v4835_v5 }
0x2477   :  { %4836 = vrcp.f32 %v2181_v6 }
0x2481   :  { %v4837_v7 = vpop.eup %4836 }
0x2482   :  { %v2189_v9 = vmul.f32 %v4837_v7, %v2187_v8 }
0x24e5   :  { %v2192_v28 = vpop.permute.xlu1 %2191 }
0x24e6   :  { %v2194_v22 = vmul.f32 %v4837_v7, %v2192_v28 }
0x24e8   :  { %2196 = vrot.lane.b32.xlu1 %v2194_v22, %s5060_s1 }
0x255a   :  { %v2197_v12 = vpop.permute.xlu1 %2196 }
0x255b   :  { %v2199_v13 = vadd.f32 %v2197_v12, %v2189_v9 }
0x255d   :  { %4838 = vtanh.f32 %v2199_v13 }
0x255e   :  { %4840 = vtanh.f32 %v1890_v58  ;;  %v2045_v58 = vadd.f32 %v5546_v20, %v5541_v4 }
0x255f   :  { %4842 = vpow2.f32 %v3861_v16 }
0x2567   :  { %v4839_v14 = vpop.eup %4838 }
0x2568   :  { %2202 = vrot.lane.b32.xlu0 %v4839_v14, %s5060_s1  ;;  %v4841_v15 = vpop.eup %4840  ;;  %v2050_v14 = vadd.f32 %v5541_v4, %v5553_v25 }
0x2569   :  { %v4843_v10 = vpop.eup %4842 }
0x256a   :  { %v1894_v32 = vadd.f32 1.0, %v4843_v10 }
0x256c   :  { %1900 = vrot.lane.b32.xlu0 %v4841_v15, %s5060_s1  ;;  %4844 = vrcp.f32 %v1894_v32 }
0x2576   :  { %v4845_v26 = vpop.eup %4844 }
0x2577   :  { %v1898_v31 = vmul.f32 %v4845_v26, %v5559_v45 }
0x25da   :  { %v2203_v17 = vpop.permute.xlu0 %2202 }
0x25db   :  { %v2205_v23 = vmul.f32 %v4837_v7, %v2203_v17 }
0x25dd   :  { %2207 = vrot.lane.b32.xlu1 %v2205_v23, %s5064_s2 }
0x25de   :  { %v1901_v27 = vpop.permute.xlu0 %1900 }
0x25df   :  { %v1903_v29 = vmul.f32 %v4845_v26, %v1901_v27 }
0x25e1   :  { %1905 = vrot.lane.b32.xlu0 %v1903_v29, %s5060_s1 }
0x264f   :  { %v2208_v30 = vpop.permute.xlu1 %2207 }
0x2650   :  { %2210 = vst.msk [vmem:[#allocation2 + $0x8] sm:$0xff] %vm284_vm2, %v2208_v30  ;;  %4330 = vmatmul.mubr.msk.f32.vlgmr.msra.gmra.mrb[24].mxu1 %vm284_vm2, %v2208_v30 }
0x2651   :  { %4615 = vmatpush3.bf16.msra.mxu1 %v5571_v19  ;;  %4351 = vmatprep.mubr.msk.f32.mxu1 %vm5062_vm1, %v5063_v21 }
0x2652   :  { %4616 = vmatprep.subr.bf16.mxu1 %v5061_v18 }
0x2653   :  { %v1906_v33 = vpop.permute.xlu0 %1905 }
0x2654   :  { %v1908_v36 = vadd.f32 %v1906_v33, %v1898_v31 }
0x2655   :  { %4618 = vmatpush3.bf16.msra.mxu1 %v5581_v53 }
0x2656   :  { %4846 = vtanh.f32 %v1908_v36  ;;  %4625 = vmatprep.subr.bf16.mxu1 %v5061_v18 }
0x2660   :  { %v4847_v37 = vpop.eup %4846 }
0x2661   :  { %1911 = vrot.lane.b32.xlu0 %v4847_v37, %s5060_s1 }
0x26d3   :  { %v1912_v38 = vpop.permute.xlu0 %1911 }
0x26d4   :  { %v1914_v39 = vmul.f32 %v4845_v26, %v1912_v38 }
0x26d6   :  { %1916 = vrot.lane.b32.xlu0 %v1914_v39, %s5064_s2 }
0x2723   :  { %v2280_v41 = vpop.f32.mrb[24].mxu1 }
0x2724   :  { %v2284_v35 = vadd.f32 %v2280_v41, %v2040_v40  ;;  %v4331_v42 = vpop.f32.mrb[25].mxu1  ;;  %v2055_v40 = vadd.f32 %v5551_v63, %v5541_v4 }
0x2726   :  { %4848 = vtanh.f32 %v2284_v35  ;;  %v3875_v46 = vmul.f32 -1.442695, %v2284_v35 }
0x2728   :  { %4850 = vpow2.f32 %v3875_v46 }
0x2730   :  { %v4849_v43 = vpop.eup %4848 }
0x2731   :  { %2294 = vrot.lane.b32.xlu1 %v4849_v43, %s5060_s1 }
0x2732   :  { %v4851_v47 = vpop.eup %4850 }
0x2733   :  { %v2288_v24 = vadd.f32 1.0, %v4851_v47 }
0x2735   :  { %4852 = vrcp.f32 %v2288_v24 }
0x273f   :  { %v4853_v48 = vpop.eup %4852 }
0x2740   :  { %v2292_v51 = vmul.f32 %v4853_v48, %v2199_v13 }
0x2748   :  { %v1917_v44 = vpop.permute.xlu0 %1916 }
0x2749   :  { %1919 = vst.msk [vmem:[#allocation2 + $0x38] sm:$0xff] %vm284_vm2, %v1917_v44 }
0x2750   :  { %v1927_v45 = vld [vmem:[#allocation2 + $0x38] sm:$0xff] }
0x2751   :  { %4308 = vmatmul.mubr.msk.f32.gmra.mrb[28].mxu0 %vm284_vm2, %v1927_v45 }
0x2752   :  { %4340 = vmatprep.mubr.msk.f32.mxu0 %vm5062_vm1, %v5063_v21 }
0x27a3   :  { %v2295_v49 = vpop.permute.xlu1 %2294 }
0x27a4   :  { %v2297_v50 = vmul.f32 %v4853_v48, %v2295_v49  ;;  %v2837_v49 = vld [vmem:[#allocation7] sm:$0xff] }
0x27a6   :  { %2299 = vrot.lane.b32.xlu1 %v2297_v50, %s5060_s1  ;;  %v2838_v50 = vld [vmem:[#allocation7 + $0x8] sm:$0xff] }
0x2818   :  { %v2300_v52 = vpop.permute.xlu1 %2299 }
0x2819   :  { %v2302_v54 = vadd.f32 %v2300_v52, %v2292_v51  ;;  %v4637_v51 = vpack.c.bf16 %v2838_v50, %v2837_v49 }
0x281b   :  { %4854 = vtanh.f32 %v2302_v54 }
0x2824   :  { %v5632_v60 = vpop.f32.mrb[28].mxu0 }
0x2825   :  { %v4855_v34 = vpop.eup %4854  ;;  %v5634_v55 = vpop.f32.mrb[29].mxu0  ;;  %v2065_v49 = vadd.f32 %v5632_v60, %v5541_v4 }
0x2826   :  { %2305 = vrot.lane.b32.xlu1 %v4855_v34, %s5060_s1 }
0x2898   :  { %v2306_v11 = vpop.permute.xlu1 %2305 }
0x2899   :  { %v2308_v56 = vmul.f32 %v4853_v48, %v2306_v11  ;;  %v2839_v11 = vld [vmem:[#allocation7 + $0x10] sm:$0xff] }
0x289b   :  { %2310 = vrot.lane.b32.xlu1 %v2308_v56, %s5064_s2  ;;  %v2840_v56 = vld [vmem:[#allocation7 + $0x18] sm:$0xff] }
0x290d   :  { %v2311_v57 = vpop.permute.xlu1 %2310 }
0x290e   :  { %2313 = vst.msk [vmem:[#allocation2 + $0x10] sm:$0xff] %vm284_vm2, %v2311_v57  ;;  %4341 = vmatmul.mubr.msk.f32.vlgmr.msra.gmra.mrb[30].mxu0 %vm284_vm2, %v2311_v57  ;;  %v4641_v57 = vpack.c.bf16 %v2840_v56, %v2839_v11 }
0x290f   :  { %4621 = vmatpush3.bf16.msra.mxu0 %v5571_v19  ;;  %4362 = vmatprep.mubr.msk.f32.mxu0 %vm5062_vm1, %v5063_v21 }
0x2910   :  { %4622 = vmatprep.subr.bf16.mxu0 %v5061_v18 }
0x2913   :  { %4624 = vmatpush3.bf16.msra.mxu0 %v5581_v53 }
0x2914   :  { %4631 = vmatprep.subr.bf16.mxu0 %v5061_v18 }
0x29e1   :  { %v2383_v59 = vpop.f32.mrb[30].mxu0 }
0x29e2   :  { %v2387_v61 = vadd.f32 %v2383_v59, %v2045_v58  ;;  %v4342_v62 = vpop.f32.mrb[31].mxu0  ;;  %v2829_v59 = vld [vmem:[#allocation2] sm:$0xff] }
0x29e3   :  { %v2831_v62 = vld [vmem:[#allocation2 + $0x10] sm:$0xff] }
0x29e4   :  { %4856 = vtanh.f32 %v2387_v61  ;;  %v3877_v1 = vmul.f32 -1.442695, %v2387_v61  ;;  %v2830_v61 = vld [vmem:[#allocation2 + $0x8] sm:$0xff] }
0x29e6   :  { %4858 = vpow2.f32 %v3877_v1 }
0x29ee   :  { %v4857_v0 = vpop.eup %4856 }
0x29ef   :  { %2397 = vrot.lane.b32.xlu0 %v4857_v0, %s5060_s1 }
0x29f0   :  { %v4859_v2 = vpop.eup %4858 }
0x29f1   :  { %v2391_v3 = vadd.f32 1.0, %v4859_v2 }
0x29f3   :  { %4860 = vrcp.f32 %v2391_v3  ;;  %v2060_v3 = vadd.f32 %v5541_v4, %v5634_v55 }
0x29fd   :  { %v4861_v5 = vpop.eup %4860 }
0x29fe   :  { %v2395_v28 = vmul.f32 %v4861_v5, %v2302_v54 }
0x2a61   :  { %v2398_v6 = vpop.permute.xlu0 %2397 }
0x2a62   :  { %v2400_v7 = vmul.f32 %v4861_v5, %v2398_v6 }
0x2a64   :  { %2402 = vrot.lane.b32.xlu1 %v2400_v7, %s5060_s1 }
0x2ad6   :  { %v2403_v22 = vpop.permute.xlu1 %2402 }
0x2ad7   :  { %v2405_v20 = vadd.f32 %v2403_v22, %v2395_v28  ;;  %v5693_v28 = vld [vmem:[#allocation10] ss:$0 sm:$0xff] }
0x2ad9   :  { %4862 = vtanh.f32 %v2405_v20 }
0x2ae3   :  { %v4863_v8 = vpop.eup %4862 }
0x2ae4   :  { %2408 = vrot.lane.b32.xlu0 %v4863_v8, %s5060_s1 }
0x2b56   :  { %v2409_v9 = vpop.permute.xlu0 %2408 }
0x2b57   :  { %v2411_v12 = vmul.f32 %v4861_v5, %v2409_v9 }
0x2b59   :  { %2413 = vrot.lane.b32.xlu1 %v2411_v12, %s5064_s2 }
0x2bcb   :  { %v2414_v13 = vpop.permute.xlu1 %2413 }
0x2bcc   :  { %2416 = vst.msk [vmem:[#allocation2 + $0x18] sm:$0xff] %vm284_vm2, %v2414_v13  ;;  %4352 = vmatmul.mubr.msk.f32.vlgmr.msra.gmra.mrb[26].mxu1 %vm284_vm2, %v2414_v13 }
0x2bcd   :  { %4627 = vmatpush3.bf16.msra.mxu1 %v5571_v19  ;;  %4373 = vmatprep.mubr.msk.f32.mxu1 %vm5062_vm1, %v5063_v21 }
0x2bce   :  { %4628 = vmatprep.subr.bf16.mxu1 %v5061_v18 }
0x2bd1   :  { %4630 = vmatpush3.bf16.msra.mxu1 %v5581_v53 }
0x2bd2   :  { %4638 = vmatprep.subr.bf16.mxu1 %v4637_v51 }
0x2bd3   :  { %v2832_v0 = vld [vmem:[#allocation2 + $0x18] sm:$0xff] }
0x2c9f   :  { %v2486_v15 = vpop.f32.mrb[26].mxu1 }
0x2ca0   :  { %v2490_v16 = vadd.f32 %v2486_v15, %v2050_v14  ;;  %v4353_v10 = vpop.f32.mrb[27].mxu1 }
0x2ca2   :  { %4864 = vtanh.f32 %v2490_v16  ;;  %v3879_v17 = vmul.f32 -1.442695, %v2490_v16 }
0x2ca4   :  { %4866 = vpow2.f32 %v3879_v17 }
0x2cac   :  { %v4865_v32 = vpop.eup %4864 }
0x2cad   :  { %2500 = vrot.lane.b32.xlu0 %v4865_v32, %s5060_s1 }
0x2cae   :  { %v4867_v23 = vpop.eup %4866 }
0x2caf   :  { %v2494_v26 = vadd.f32 1.0, %v4867_v23 }
0x2cb1   :  { %4868 = vrcp.f32 %v2494_v26 }
0x2cbb   :  { %v4869_v27 = vpop.eup %4868 }
0x2cbc   :  { %v2498_v31 = vmul.f32 %v4869_v27, %v2405_v20 }
0x2d1f   :  { %v2501_v29 = vpop.permute.xlu0 %2500 }
0x2d20   :  { %v2503_v30 = vmul.f32 %v4869_v27, %v2501_v29 }
0x2d22   :  { %2505 = vrot.lane.b32.xlu1 %v2503_v30, %s5060_s1 }
0x2d94   :  { %v2506_v33 = vpop.permute.xlu1 %2505 }
0x2d95   :  { %v2508_v25 = vadd.f32 %v2506_v33, %v2498_v31 }
0x2d97   :  { %4870 = vtanh.f32 %v2508_v25 }
0x2da1   :  { %v4871_v36 = vpop.eup %4870 }
0x2da2   :  { %2511 = vrot.lane.b32.xlu0 %v4871_v36, %s5060_s1 }
0x2e14   :  { %v2512_v37 = vpop.permute.xlu0 %2511 }
0x2e15   :  { %v2514_v38 = vmul.f32 %v4869_v27, %v2512_v37 }
0x2e17   :  { %2516 = vrot.lane.b32.xlu1 %v2514_v38, %s5064_s2 }
0x2e89   :  { %v2517_v39 = vpop.permute.xlu1 %2516 }
0x2e8a   :  { %2519 = vst.msk [vmem:[#allocation2 + $0x20] sm:$0xff] %vm284_vm2, %v2517_v39  ;;  %4363 = vmatmul.mubr.msk.f32.vlgmr.msra.gmra.mrb[32].mxu0 %vm284_vm2, %v2517_v39 }
0x2e8b   :  { %4633 = vmatpush3.bf16.msra.mxu0 %v5571_v19  ;;  %4384 = vmatprep.mubr.msk.f32.mxu0 %vm5062_vm1, %v5063_v21 }
0x2e8c   :  { %4634 = vmatprep.subr.bf16.mxu0 %v5061_v18 }
0x2e8f   :  { %4636 = vmatpush3.bf16.msra.mxu0 %v5581_v53 }
0x2e90   :  { %4645 = vmatprep.subr.bf16.mxu0 %v5061_v18 }
0x2e91   :  { %v2833_v1 = vld [vmem:[#allocation2 + $0x20] sm:$0xff] }
0x2f5d   :  { %v2589_v41 = vpop.f32.mrb[32].mxu0 }
0x2f5e   :  { %v2593_v35 = vadd.f32 %v2589_v41, %v2055_v40  ;;  %v4364_v42 = vpop.f32.mrb[33].mxu0 }
0x2f5f   :  { %v2985_v42 = vld [vmem:[#allocation9] sm:$0xff] }
0x2f60   :  { %4872 = vtanh.f32 %v2593_v35  ;;  %v3881_v19 = vmul.f32 -1.442695, %v2593_v35 }
0x2f62   :  { %4874 = vpow2.f32 %v3881_v19 }
0x2f6a   :  { %v4873_v43 = vpop.eup %4872 }
0x2f6b   :  { %2603 = vrot.lane.b32.xlu0 %v4873_v43, %s5060_s1  ;;  %v2986_v43 = vld [vmem:[#allocation9 + $0x8] sm:$0xff] }
0x2f6c   :  { %v4875_v44 = vpop.eup %4874  ;;  %v5717_v19 = vpack.c.bf16 %v2986_v43, %v2985_v42 }
0x2f6d   :  { %v2597_v45 = vadd.f32 1.0, %v4875_v44  ;;  %v2987_v44 = vld [vmem:[#allocation9 + $0x10] sm:$0xff] }
0x2f6f   :  { %4876 = vrcp.f32 %v2597_v45  ;;  %v2988_v45 = vld [vmem:[#allocation9 + $0x18] sm:$0xff] }
0x2f79   :  { %v4877_v46 = vpop.eup %4876 }
0x2f7a   :  { %v2601_v24 = vmul.f32 %v4877_v46, %v2508_v25 }
0x2fdd   :  { %v2604_v47 = vpop.permute.xlu0 %2603 }
0x2fde   :  { %v2606_v53 = vmul.f32 %v4877_v46, %v2604_v47 }
0x2fe0   :  { %2608 = vrot.lane.b32.xlu1 %v2606_v53, %s5060_s1 }
0x3052   :  { %v2609_v48 = vpop.permute.xlu1 %2608 }
0x3053   :  { %v5677_v63 = vadd.f32 %v2609_v48, %v2601_v24 }
0x3055   :  { %4878 = vtanh.f32 %v5677_v63 }
0x305f   :  { %v4879_v52 = vpop.eup %4878 }
0x3060   :  { %2614 = vrot.lane.b32.xlu0 %v4879_v52, %s5060_s1 }
0x30d2   :  { %v2615_v54 = vpop.permute.xlu0 %2614 }
0x30d3   :  { %v2617_v34 = vmul.f32 %v4877_v46, %v2615_v54  ;;  %v5721_v46 = vpack.c.bf16 %v2988_v45, %v2987_v44 }
0x30d5   :  { %2619 = vrot.lane.b32.xlu1 %v2617_v34, %s5064_s2 }
0x3147   :  { %v2620_v58 = vpop.permute.xlu1 %2619 }
0x3148   :  { %2622 = vst.msk [vmem:[#allocation2 + $0x28] sm:$0xff] %vm284_vm2, %v2620_v58  ;;  %4374 = vmatmul.mubr.msk.f32.vlgmr.msra.gmra.mrb[28].mxu1 %vm284_vm2, %v2620_v58 }
0x3149   :  { %4640 = vmatpush3.bf16.msra.mxu1 %v4637_v51  ;;  %4395 = vmatprep.mubr.msk.f32.mxu1 %vm284_vm2, %v2829_v59 }
0x314a   :  { %4642 = vmatprep.subr.bf16.mxu1 %v4641_v57 }
0x314d   :  { %4644 = vmatpush3.bf16.msra.mxu1 %v4641_v57 }
0x314e   :  { %4657 = vmatprep.subr.bf16.mxu1 %v5061_v18 }
0x314f   :  { %v2834_v2 = vld [vmem:[#allocation2 + $0x28] sm:$0xff] }
0x3150   :  { %4396 = vmatmul.mubr.msk.f32.vlgmr.msra.gmra.mrb[30].mxu1 %vm284_vm2, %v2830_v61 }
0x3151   :  { %4398 = vmatprep.mubr.msk.f32.mxu1 %vm284_vm2, %v2831_v62  ;;  %4659 = vmatpush3.bf16.msra.mxu1 %v5717_v19 }
0x3152   :  { %4660 = vmatprep.subr.bf16.mxu1 %v5061_v18 }
0x3154   :  { %4399 = vmatmul.mubr.msk.f32.gmra.mrb[32].mxu1 %vm284_vm2, %v2832_v0 }
0x3155   :  { %4401 = vmatprep.mubr.msk.f32.mxu1 %vm284_vm2, %v2833_v1  ;;  %4662 = vmatpush3.bf16.msra.mxu1 %v5721_v46 }
0x3156   :  { %4669 = vmatprep.subr.bf16.mxu1 %v5061_v18 }
0x3158   :  { %4402 = vmatmul.mubr.msk.f32.gmra.mrb[34].mxu1 %vm284_vm2, %v2834_v2 }
0x321b   :  { %v2692_v5 = vpop.f32.mrb[28].mxu1 }
0x321c   :  { %v2696_v6 = vadd.f32 %v2692_v5, %v2060_v3  ;;  %v4375_v7 = vpop.f32.mrb[29].mxu1 }
0x321e   :  { %4880 = vtanh.f32 %v2696_v6  ;;  %v3883_v16 = vmul.f32 -1.442695, %v2696_v6 }
0x3223   :  { %v5695_v22 = vpop.f32.mrb[30].mxu1 }
0x3224   :  { %v2938_v20 = vpop.f32.mrb[31].mxu1  ;;  %v2944_v54 = vadd.f32 %v5695_v22, %v5693_v28 }
0x3225   :  { %v2939_v8 = vadd.f32 %v5693_v28, %v2938_v20 }
0x3227   :  { %4882 = vtanh.f32 %v2939_v8  ;;  %v5698_v9 = vpop.f32.mrb[32].mxu1  ;;  %v3895_v10 = vmul.f32 -1.442695, %v2939_v8 }
0x3228   :  { %v4881_v12 = vpop.eup %4880  ;;  %v5700_v13 = vpop.f32.mrb[33].mxu1  ;;  %4884 = vpow2.f32 %v3883_v16 }
0x3229   :  { %2706 = vrot.lane.b32.xlu0 %v4881_v12, %s5060_s1  ;;  %4886 = vpow2.f32 %v3895_v10 }
0x322b   :  { %v5703_v55 = vpop.f32.mrb[34].mxu1 }
0x322c   :  { %v5705_v14 = vpop.f32.mrb[35].mxu1 }
0x3231   :  { %v4883_v15 = vpop.eup %4882 }
0x3232   :  { %2998 = vrot.lane.b32.xlu0 %v4883_v15, %s5060_s1  ;;  %v4885_v32 = vpop.eup %4884 }
0x3233   :  { %v2700_v17 = vadd.f32 1.0, %v4885_v32  ;;  %v4887_v23 = vpop.eup %4886 }
0x3234   :  { %v2993_v26 = vadd.f32 1.0, %v4887_v23 }
0x3235   :  { %4888 = vrcp.f32 %v2700_v17 }
0x3236   :  { %4890 = vrcp.f32 %v2993_v26 }
0x323f   :  { %v4889_v27 = vpop.eup %4888 }
0x3240   :  { %v4891_v31 = vpop.eup %4890  ;;  %v2704_v37 = vmul.f32 %v4889_v27, %v5677_v63 }
0x329b   :  { %v2707_v29 = vpop.permute.xlu0 %2706 }
0x329c   :  { %v2709_v30 = vmul.f32 %v4889_v27, %v2707_v29 }
0x329e   :  { %2711 = vrot.lane.b32.xlu1 %v2709_v30, %s5060_s1 }
0x32a4   :  { %v2999_v33 = vpop.permute.xlu0 %2998 }
0x32a5   :  { %v3001_v25 = vmul.f32 %v4891_v31, %v2999_v33 }
0x32a7   :  { %4892 = vtanh.f32 %v3001_v25 }
0x32b1   :  { %v4893_v36 = vpop.eup %4892 }
0x32b2   :  { %3004 = vrot.lane.b32.xlu0 %v4893_v36, %s5064_s2 }
0x3310   :  { %v2712_v38 = vpop.permute.xlu1 %2711 }
0x3311   :  { %v5711_v39 = vadd.f32 %v2712_v38, %v2704_v37 }
0x3313   :  { %4894 = vtanh.f32 %v5711_v39 }
0x331d   :  { %v4895_v40 = vpop.eup %4894 }
0x331e   :  { %2717 = vrot.lane.b32.xlu1 %v4895_v40, %s5060_s1 }
0x3324   :  { %v3005_v41 = vpop.permute.xlu0 %3004 }
0x3325   :  { %v3007_v35 = vmul.f32 %v4891_v31, %v3005_v41  ;;  %v2949_v31 = vadd.f32 %v5693_v28, %v5700_v13 }
0x3327   :  { %3010 = vrot.lane.b32.xlu0 %v3007_v35, %s5064_s2 }
0x332b   :  { %3093 = vrot.lane.b32.xlu0 %v3001_v25, %s5060_s1 }
0x3390   :  { %v2718_v47 = vpop.permute.xlu1 %2717 }
0x3391   :  { %v2720_v53 = vmul.f32 %v4889_v27, %v2718_v47 }
0x3393   :  { %2722 = vrot.lane.b32.xlu1 %v2720_v53, %s5064_s2 }
0x3399   :  { %v3011_v48 = vpop.permute.xlu0 %3010 }
0x339d   :  { %v3094_v0 = vpop.permute.xlu0 %3093 }
0x3405   :  { %v2723_v24 = vpop.permute.xlu1 %2722 }
0x3406   :  { %2725 = vst.msk [vmem:[#allocation2 + $0x30] sm:$0xff] %vm284_vm2, %v2723_v24  ;;  %4385 = vmatmul.mubr.msk.f32.vlgmr.msra.gmra.mrb[34].mxu0 %vm284_vm2, %v2723_v24 }
0x3407   :  { %4647 = vmatpush3.bf16.msra.mxu0 %v5717_v19  ;;  %4415 = vmatprep.mubr.msk.f32.mxu0 %vm5062_vm1, %v5063_v21 }
0x3408   :  { %4648 = vmatprep.subr.bf16.mxu0 %v5061_v18 }
0x340b   :  { %4650 = vmatpush3.bf16.msra.mxu0 %v5721_v46 }
0x340c   :  { %4651 = vmatprep.subr.bf16.mxu0 %v5061_v18 }
0x340d   :  { %v2835_v63 = vld [vmem:[#allocation2 + $0x30] sm:$0xff] }
0x340e   :  { %4416 = vmatmul.mubr.msk.f32.vlgmr.msra.gmra.mrb[36].mxu0 %vm284_vm2, %v3011_v48  ;;  %4404 = vmatprep.mubr.msk.f32.mxu1 %vm284_vm2, %v2835_v63 }
0x340f   :  { %4653 = vmatpush3.bf16.msra.mxu0 %v5717_v19  ;;  %4426 = vmatprep.mubr.msk.f32.mxu0 %vm5062_vm1, %v5063_v21 }
0x3410   :  { %4654 = vmatprep.subr.bf16.mxu0 %v5061_v18 }
0x3413   :  { %4656 = vmatpush3.bf16.msra.mxu0 %v5721_v46 }
0x3414   :  { %4663 = vmatprep.subr.bf16.mxu0 %v5061_v18 }
0x34d9   :  { %v2795_v50 = vpop.f32.mrb[34].mxu0 }
0x34da   :  { %v2799_v51 = vadd.f32 %v2795_v50, %v2065_v49  ;;  %v4386_v52 = vpop.f32.mrb[35].mxu0 }
0x34dc   :  { %v3885_v7 = vmul.f32 -1.442695, %v2799_v51 }
0x34e1   :  { %v3080_v34 = vpop.f32.mrb[36].mxu0 }
0x34e2   :  { %v3084_v11 = vadd.f32 %v3080_v34, %v2944_v54  ;;  %v4417_v56 = vpop.f32.mrb[37].mxu0 }
0x34e4   :  { %4896 = vtanh.f32 %v3084_v11  ;;  %v3897_v58 = vmul.f32 -1.442695, %v3084_v11 }
0x34e6   :  { %4898 = vpow2.f32 %v3897_v58 }
0x34ee   :  { %v4897_v57 = vpop.eup %4896 }
0x34ef   :  { %3098 = vrot.lane.b32.xlu1 %v4897_v57, %s5060_s1 }
0x34f0   :  { %v4899_v59 = vpop.eup %4898 }
0x34f1   :  { %v3088_v61 = vadd.f32 1.0, %v4899_v59 }
0x34f3   :  { %4900 = vrcp.f32 %v3088_v61 }
0x34fd   :  { %v4901_v62 = vpop.eup %4900 }
0x34fe   :  { %v3096_v1 = vmul.f32 %v4901_v62, %v3094_v0 }
0x3561   :  { %v3099_v4 = vpop.permute.xlu1 %3098 }
0x3562   :  { %v3101_v60 = vmul.f32 %v4901_v62, %v3099_v4 }
0x3564   :  { %3103 = vrot.lane.b32.xlu1 %v3101_v60, %s5060_s1 }
0x35d6   :  { %v3104_v2 = vpop.permute.xlu1 %3103 }
0x35d7   :  { %v3106_v3 = vadd.f32 %v3104_v2, %v3096_v1 }
0x35d9   :  { %4902 = vtanh.f32 %v3106_v3 }
0x35da   :  { %4904 = vtanh.f32 %v2799_v51  ;;  %v2954_v51 = vadd.f32 %v5698_v9, %v5693_v28 }
0x35db   :  { %4906 = vpow2.f32 %v3885_v7 }
0x35e3   :  { %v4903_v5 = vpop.eup %4902 }
0x35e4   :  { %3109 = vrot.lane.b32.xlu0 %v4903_v5, %s5060_s1  ;;  %v4905_v6 = vpop.eup %4904  ;;  %v2959_v5 = vadd.f32 %v5693_v28, %v5705_v14 }
0x35e5   :  { %v4907_v22 = vpop.eup %4906 }
0x35e6   :  { %v2803_v20 = vadd.f32 1.0, %v4907_v22 }
0x35e8   :  { %2809 = vrot.lane.b32.xlu0 %v4905_v6, %s5060_s1  ;;  %4908 = vrcp.f32 %v2803_v20 }
0x35f2   :  { %v4909_v15 = vpop.eup %4908 }
0x35f3   :  { %v2807_v17 = vmul.f32 %v4909_v15, %v5711_v39 }
0x3656   :  { %v3110_v8 = vpop.permute.xlu0 %3109 }
0x3657   :  { %v3112_v12 = vmul.f32 %v4901_v62, %v3110_v8 }
0x3659   :  { %3115 = vrot.lane.b32.xlu1 %v3112_v12, %s5064_s2 }
0x365a   :  { %v2810_v16 = vpop.permute.xlu0 %2809 }
0x365b   :  { %v2812_v10 = vmul.f32 %v4909_v15, %v2810_v16 }
0x365d   :  { %2814 = vrot.lane.b32.xlu0 %v2812_v10, %s5060_s1 }
0x36cb   :  { %v3116_v32 = vpop.permute.xlu1 %3115 }
0x36cc   :  { %4427 = vmatmul.mubr.msk.f32.vlgmr.msra.gmra.mrb[38].mxu0 %vm284_vm2, %v3116_v32 }
0x36cd   :  { %4665 = vmatpush3.bf16.msra.mxu0 %v5717_v19  ;;  %4448 = vmatprep.mubr.msk.f32.mxu0 %vm5062_vm1, %v5063_v21 }
0x36ce   :  { %4666 = vmatprep.subr.bf16.mxu0 %v5061_v18 }
0x36cf   :  { %v2815_v23 = vpop.permute.xlu0 %2814 }
0x36d0   :  { %v2817_v26 = vadd.f32 %v2815_v23, %v2807_v17 }
0x36d1   :  { %4668 = vmatpush3.bf16.msra.mxu0 %v5721_v46 }
0x36d2   :  { %4910 = vtanh.f32 %v2817_v26  ;;  %4675 = vmatprep.subr.bf16.mxu0 %v5061_v18 }
0x36dc   :  { %v4911_v27 = vpop.eup %4910 }
0x36dd   :  { %2820 = vrot.lane.b32.xlu0 %v4911_v27, %s5060_s1 }
0x374f   :  { %v2821_v29 = vpop.permute.xlu0 %2820 }
0x3750   :  { %v2823_v30 = vmul.f32 %v4909_v15, %v2821_v29 }
0x3752   :  { %2825 = vrot.lane.b32.xlu0 %v2823_v30, %s5064_s2 }
0x379f   :  { %v3185_v33 = vpop.f32.mrb[38].mxu0 }
0x37a0   :  { %v3189_v25 = vadd.f32 %v3185_v33, %v2949_v31  ;;  %v4428_v36 = vpop.f32.mrb[39].mxu0  ;;  %v2964_v31 = vadd.f32 %v5703_v55, %v5693_v28 }
0x37a2   :  { %4912 = vtanh.f32 %v3189_v25  ;;  %v3899_v40 = vmul.f32 -1.442695, %v3189_v25 }
0x37a4   :  { %4914 = vpow2.f32 %v3899_v40 }
0x37ac   :  { %v4913_v37 = vpop.eup %4912 }
0x37ad   :  { %3199 = vrot.lane.b32.xlu1 %v4913_v37, %s5060_s1 }
0x37ae   :  { %v4915_v41 = vpop.eup %4914 }
0x37af   :  { %v3193_v13 = vadd.f32 1.0, %v4915_v41 }
0x37b1   :  { %4916 = vrcp.f32 %v3193_v13 }
0x37bb   :  { %v4917_v35 = vpop.eup %4916 }
0x37bc   :  { %v3197_v44 = vmul.f32 %v4917_v35, %v3106_v3 }
0x37c4   :  { %v2826_v38 = vpop.permute.xlu0 %2825 }
0x37c5   :  { %2828 = vst.msk [vmem:[#allocation2 + $0x38] sm:$0xff] %vm284_vm2, %v2826_v38 }
0x37cc   :  { %v2836_v39 = vld [vmem:[#allocation2 + $0x38] sm:$0xff] }
0x37cd   :  { %4405 = vmatmul.mubr.msk.f32.gmra.mrb[36].mxu1 %vm284_vm2, %v2836_v39 }
0x37ce   :  { %4437 = vmatprep.mubr.msk.f32.mxu1 %vm5062_vm1, %v5063_v21 }
0x381f   :  { %v3200_v42 = vpop.permute.xlu1 %3199 }
0x3820   :  { %v3202_v43 = vmul.f32 %v4917_v35, %v3200_v42 }
0x3822   :  { %3204 = vrot.lane.b32.xlu1 %v3202_v43, %s5060_s1 }
0x3894   :  { %v3205_v45 = vpop.permute.xlu1 %3204 }
0x3895   :  { %v3207_v47 = vadd.f32 %v3205_v45, %v3197_v44 }
0x3897   :  { %4918 = vtanh.f32 %v3207_v47 }
0x38a0   :  { %v5770_v53 = vpop.f32.mrb[36].mxu1 }
0x38a1   :  { %v4919_v24 = vpop.eup %4918  ;;  %v5772_v48 = vpop.f32.mrb[37].mxu1 }
0x38a2   :  { %3210 = vrot.lane.b32.xlu1 %v4919_v24, %s5060_s1 }
0x3914   :  { %v3211_v63 = vpop.permute.xlu1 %3210 }
0x3915   :  { %v3213_v49 = vmul.f32 %v4917_v35, %v3211_v63 }
0x3917   :  { %3216 = vrot.lane.b32.xlu1 %v3213_v49, %s5064_s2 }
0x3989   :  { %v3217_v50 = vpop.permute.xlu1 %3216 }
0x398a   :  { %4438 = vmatmul.mubr.msk.f32.vlgmr.msra.gmra.mrb[38].mxu1 %vm284_vm2, %v3217_v50 }
0x398b   :  { %4671 = vmatpush3.bf16.msra.mxu1 %v5717_v19  ;;  %4459 = vmatprep.mubr.msk.f32.mxu1 %vm5062_vm1, %v5063_v21 }
0x398c   :  { %4672 = vmatprep.subr.bf16.mxu1 %v5061_v18 }
0x398f   :  { %4674 = vmatpush3.bf16.msra.mxu1 %v5721_v46 }
0x3990   :  { %4681 = vmatprep.subr.bf16.mxu1 %v5061_v18 }
0x3a5d   :  { %v3286_v52 = vpop.f32.mrb[38].mxu1 }
0x3a5e   :  { %v3290_v54 = vadd.f32 %v3286_v52, %v2954_v51  ;;  %v4439_v34 = vpop.f32.mrb[39].mxu1 }
0x3a60   :  { %4920 = vtanh.f32 %v3290_v54  ;;  %v3901_v56 = vmul.f32 -1.442695, %v3290_v54 }
0x3a62   :  { %4922 = vpow2.f32 %v3901_v56 }
0x3a6a   :  { %v4921_v11 = vpop.eup %4920 }
0x3a6b   :  { %3300 = vrot.lane.b32.xlu0 %v4921_v11, %s5060_s1 }
0x3a6c   :  { %v4923_v57 = vpop.eup %4922 }
0x3a6d   :  { %v3294_v58 = vadd.f32 1.0, %v4923_v57 }
0x3a6f   :  { %4924 = vrcp.f32 %v3294_v58 }
0x3a79   :  { %v4925_v59 = vpop.eup %4924 }
0x3a7a   :  { %v3298_v4 = vmul.f32 %v4925_v59, %v3207_v47  ;;  %v2969_v47 = vadd.f32 %v5693_v28, %v5772_v48 }
0x3add   :  { %v3301_v61 = vpop.permute.xlu0 %3300 }
0x3ade   :  { %v3303_v62 = vmul.f32 %v4925_v59, %v3301_v61 }
0x3ae0   :  { %3305 = vrot.lane.b32.xlu1 %v3303_v62, %s5060_s1 }
0x3b52   :  { %v3306_v60 = vpop.permute.xlu1 %3305 }
0x3b53   :  { %v3308_v9 = vadd.f32 %v3306_v60, %v3298_v4  ;;  %v2974_v4 = vadd.f32 %v5770_v53, %v5693_v28  ;;  %v3719_v53 = vld [vmem:[%s5860_s13] sm:$0xff] }
0x3b55   :  { %4926 = vtanh.f32 %v3308_v9 }
0x3b5f   :  { %v4927_v0 = vpop.eup %4926 }
0x3b60   :  { %3311 = vrot.lane.b32.xlu0 %v4927_v0, %s5060_s1 }
0x3bd2   :  { %v3312_v1 = vpop.permute.xlu0 %3311 }
0x3bd3   :  { %v3314_v2 = vmul.f32 %v4925_v59, %v3312_v1 }
0x3bd5   :  { %3317 = vrot.lane.b32.xlu1 %v3314_v2, %s5064_s2 }
0x3c47   :  { %v3318_v3 = vpop.permute.xlu1 %3317 }
0x3c48   :  { %4449 = vmatmul.mubr.msk.f32.vlgmr.msra.gmra.mrb[40].mxu0 %vm284_vm2, %v3318_v3 }
0x3c49   :  { %4677 = vmatpush3.bf16.msra.mxu0 %v5717_v19  ;;  %4470 = vmatprep.mubr.msk.f32.mxu0 %vm5062_vm1, %v5063_v21 }
0x3c4a   :  { %4678 = vmatprep.subr.bf16.mxu0 %v5061_v18 }
0x3c4d   :  { %4680 = vmatpush3.bf16.msra.mxu0 %v5721_v46 }
0x3c4e   :  { %4687 = vmatprep.subr.bf16.mxu0 %v5061_v18 }
0x3d1b   :  { %v3387_v6 = vpop.f32.mrb[40].mxu0 }
0x3d1c   :  { %v3391_v7 = vadd.f32 %v3387_v6, %v2959_v5  ;;  %v4450_v22 = vpop.f32.mrb[41].mxu0 }
0x3d1e   :  { %4928 = vtanh.f32 %v3391_v7  ;;  %v3903_v8 = vmul.f32 -1.442695, %v3391_v7 }
0x3d20   :  { %4930 = vpow2.f32 %v3903_v8 }
0x3d28   :  { %v4929_v20 = vpop.eup %4928 }
0x3d29   :  { %3401 = vrot.lane.b32.xlu0 %v4929_v20, %s5060_s1 }
0x3d2a   :  { %v4931_v12 = vpop.eup %4930 }
0x3d2b   :  { %v3395_v15 = vadd.f32 1.0, %v4931_v12  ;;  %v3720_v12 = vld [vmem:[%s5860_s13 + $0x8] sm:$0xff] }
0x3d2d   :  { %4932 = vrcp.f32 %v3395_v15  ;;  %v3721_v15 = vld [vmem:[%s5860_s13 + $0x10] sm:$0xff] }
0x3d37   :  { %v4933_v16 = vpop.eup %4932 }
0x3d38   :  { %v3399_v17 = vmul.f32 %v4933_v16, %v3308_v9 }
0x3d9b   :  { %v3402_v10 = vpop.permute.xlu0 %3401 }
0x3d9c   :  { %v3404_v32 = vmul.f32 %v4933_v16, %v3402_v10  ;;  %v3722_v10 = vld [vmem:[%s5860_s13 + $0x18] sm:$0xff] }
0x3d9e   :  { %3406 = vrot.lane.b32.xlu1 %v3404_v32, %s5060_s1  ;;  %v4691_v32 = vpack.c.bf16 %v3722_v10, %v3721_v15 }
0x3e10   :  { %v3407_v23 = vpop.permute.xlu1 %3406 }
0x3e11   :  { %v3409_v14 = vadd.f32 %v3407_v23, %v3399_v17 }
0x3e13   :  { %4934 = vtanh.f32 %v3409_v14 }
0x3e1d   :  { %v4935_v26 = vpop.eup %4934 }
0x3e1e   :  { %3412 = vrot.lane.b32.xlu0 %v4935_v26, %s5060_s1 }
0x3e90   :  { %v3413_v27 = vpop.permute.xlu0 %3412 }
0x3e91   :  { %v3415_v29 = vmul.f32 %v4933_v16, %v3413_v27  ;;  %v4688_v16 = vpack.c.bf16 %v3720_v12, %v3719_v53  ;;  %v3910_v27 = vld [vmem:[#allocation4] ss:$0 sm:$0xff] }
0x3e93   :  { %3418 = vrot.lane.b32.xlu1 %v3415_v29, %s5064_s2 }
0x3f05   :  { %v3419_v30 = vpop.permute.xlu1 %3418 }
0x3f06   :  { %4460 = vmatmul.mubr.msk.f32.vlgmr.msra.gmra.mrb[40].mxu1 %vm284_vm2, %v3419_v30 }
0x3f07   :  { %4683 = vmatpush3.bf16.msra.mxu1 %v5717_v19  ;;  %4481 = vmatprep.mubr.msk.f32.mxu1 %vm5062_vm1, %v5063_v21 }
0x3f08   :  { %4684 = vmatprep.subr.bf16.mxu1 %v5061_v18 }
0x3f0b   :  { %4686 = vmatpush3.bf16.msra.mxu1 %v5721_v46 }
0x3fd9   :  { %v3488_v33 = vpop.f32.mrb[40].mxu1 }
0x3fda   :  { %v3492_v25 = vadd.f32 %v3488_v33, %v2964_v31  ;;  %v4461_v36 = vpop.f32.mrb[41].mxu1 }
0x3fdc   :  { %4936 = vtanh.f32 %v3492_v25  ;;  %v3905_v38 = vmul.f32 -1.442695, %v3492_v25 }
0x3fde   :  { %4938 = vpow2.f32 %v3905_v38 }
0x3fe6   :  { %v4937_v37 = vpop.eup %4936 }
0x3fe7   :  { %3502 = vrot.lane.b32.xlu0 %v4937_v37, %s5060_s1 }
0x3fe8   :  { %v4939_v19 = vpop.eup %4938 }
0x3fe9   :  { %v3496_v39 = vadd.f32 1.0, %v4939_v19 }
0x3feb   :  { %4940 = vrcp.f32 %v3496_v39 }
0x3ff5   :  { %v4941_v40 = vpop.eup %4940 }
0x3ff6   :  { %v3500_v46 = vmul.f32 %v4941_v40, %v3409_v14 }
0x4059   :  { %v3503_v41 = vpop.permute.xlu0 %3502 }
0x405a   :  { %v3505_v13 = vmul.f32 %v4941_v40, %v3503_v41 }
0x405c   :  { %3507 = vrot.lane.b32.xlu1 %v3505_v13, %s5060_s1 }
0x40ce   :  { %v3508_v35 = vpop.permute.xlu1 %3507 }
0x40cf   :  { %v3510_v55 = vadd.f32 %v3508_v35, %v3500_v46 }
0x40d1   :  { %4942 = vtanh.f32 %v3510_v55 }
0x40db   :  { %v4943_v42 = vpop.eup %4942 }
0x40dc   :  { %3513 = vrot.lane.b32.xlu0 %v4943_v42, %s5060_s1 }
0x414e   :  { %v3514_v43 = vpop.permute.xlu0 %3513 }
0x414f   :  { %v3516_v44 = vmul.f32 %v4941_v40, %v3514_v43 }
0x4151   :  { %3519 = vrot.lane.b32.xlu1 %v3516_v44, %s5064_s2 }
0x41c3   :  { %v3520_v45 = vpop.permute.xlu1 %3519 }
0x41c4   :  { %4471 = vmatmul.mubr.msk.f32.vlgmr.msra.gmra.mrb[42].mxu0 %vm284_vm2, %v3520_v45 }
0x41c5   :  { %4492 = vmatprep.mubr.msk.f32.mxu0 %vm5062_vm1, %v5063_v21  ;;  %4689 = vmatpush3.bf16.msra.mxu0 %v4688_v16 }
0x41c6   :  { %4690 = vmatprep.subr.bf16.mxu0 %v5061_v18 }
0x41c9   :  { %4692 = vmatpush3.bf16.msra.mxu0 %v4691_v32 }
0x4297   :  { %v3589_v24 = vpop.f32.mrb[42].mxu0 }
0x4298   :  { %v3593_v63 = vadd.f32 %v3589_v24, %v2969_v47  ;;  %v4472_v49 = vpop.f32.mrb[43].mxu0 }
0x429a   :  { %4944 = vtanh.f32 %v3593_v63  ;;  %v3907_v51 = vmul.f32 -1.442695, %v3593_v63 }
0x429c   :  { %4946 = vpow2.f32 %v3907_v51 }
0x42a4   :  { %v4945_v50 = vpop.eup %4944 }
0x42a5   :  { %3603 = vrot.lane.b32.xlu0 %v4945_v50, %s5060_s1 }
0x42a6   :  { %v4947_v52 = vpop.eup %4946 }
0x42a7   :  { %v3597_v54 = vadd.f32 1.0, %v4947_v52 }
0x42a9   :  { %4948 = vrcp.f32 %v3597_v54 }
0x42b3   :  { %v4949_v34 = vpop.eup %4948 }
0x42b4   :  { %v3601_v21 = vmul.f32 %v4949_v34, %v3510_v55 }
0x4317   :  { %v3604_v11 = vpop.permute.xlu0 %3603 }
0x4318   :  { %v3606_v56 = vmul.f32 %v4949_v34, %v3604_v11 }
0x431a   :  { %3608 = vrot.lane.b32.xlu1 %v3606_v56, %s5060_s1 }
0x438c   :  { %v3609_v57 = vpop.permute.xlu1 %3608 }
0x438d   :  { %v3611_v48 = vadd.f32 %v3609_v57, %v3601_v21 }
0x438f   :  { %4950 = vtanh.f32 %v3611_v48 }
0x4399   :  { %v4951_v58 = vpop.eup %4950 }
0x439a   :  { %3614 = vrot.lane.b32.xlu0 %v4951_v58, %s5060_s1 }
0x440c   :  { %v3615_v59 = vpop.permute.xlu0 %3614 }
0x440d   :  { %v3617_v61 = vmul.f32 %v4949_v34, %v3615_v59 }
0x440f   :  { %3620 = vrot.lane.b32.xlu1 %v3617_v61, %s5064_s2 }
0x4481   :  { %v3621_v62 = vpop.permute.xlu1 %3620 }
0x4482   :  { %4482 = vmatmul.mubr.msk.f32.vlgmr.msra.gmra.mrb[42].mxu1 %vm284_vm2, %v3621_v62 }
0x4555   :  { %v3690_v60 = vpop.f32.mrb[42].mxu1 }
0x4556   :  { %v3694_v9 = vadd.f32 %v3690_v60, %v2974_v4  ;;  %v4483_v0 = vpop.f32.mrb[43].mxu1 }
0x4558   :  { %4952 = vtanh.f32 %v3694_v9  ;;  %v3909_v2 = vmul.f32 -1.442695, %v3694_v9 }
0x455a   :  { %4954 = vpow2.f32 %v3909_v2 }
0x4562   :  { %v4953_v1 = vpop.eup %4952 }
0x4563   :  { %3704 = vrot.lane.b32.xlu0 %v4953_v1, %s5060_s1 }
0x4564   :  { %v4955_v3 = vpop.eup %4954 }
0x4565   :  { %v3698_v5 = vadd.f32 1.0, %v4955_v3 }
0x4567   :  { %4956 = vrcp.f32 %v3698_v5 }
0x4571   :  { %v4957_v6 = vpop.eup %4956 }
0x4572   :  { %v3702_v20 = vmul.f32 %v4957_v6, %v3611_v48 }
0x45d5   :  { %v3705_v7 = vpop.permute.xlu0 %3704 }
0x45d6   :  { %v3707_v22 = vmul.f32 %v4957_v6, %v3705_v7 }
0x45d8   :  { %3709 = vrot.lane.b32.xlu1 %v3707_v22, %s5060_s1 }
0x464a   :  { %v3710_v8 = vpop.permute.xlu1 %3709 }
0x464b   :  { %v3712_v28 = vadd.f32 %v3710_v8, %v3702_v20 }
0x464d   :  { %4958 = vtanh.f32 %v3712_v28 }
0x4657   :  { %v4959_v17 = vpop.eup %4958 }
0x4658   :  { %3715 = vrot.lane.b32.xlu0 %v4959_v17, %s5060_s1 }
0x46ca   :  { %v3716_v23 = vpop.permute.xlu0 %3715 }
0x46cb   :  { %v3718_v14 = vmul.f32 %v4957_v6, %v3716_v23 }
0x46cd   :  { %3731 = vrot.lane.b32.xlu1 %v3718_v14, %s5064_s2 }
0x473f   :  { %v3732_v26 = vpop.permute.xlu1 %3731 }
0x4740   :  { %4493 = vmatmul.mubr.msk.f32.vlgmr.msra.gmra.mrb[44].mxu0 %vm284_vm2, %v3732_v26 }
0x4813   :  { %v3801_v29 = vpop.f32.mrb[44].mxu0 }
0x4814   :  { %v3802_v30 = vadd.f32 %v3910_v27, %v3801_v29  ;;  %v4494_v31 = vpop.f32.mrb[45].mxu0 }
0x4816   :  { %3806 = vst.msk [vmem:[%s5862_s15] sm:$0xff] %vm3805_vm3, %v3802_v30 }
0x4817   :  { %3811 = vsyncpa [#allocation6], 1 }
0x4818   :  { %3812 = vsyncpa [#allocation8], 1 }
0x4819   :  { %3813 = vsyncpa [#allocation11], 1 }

</bundles_post_ra>
